<compile_context>
chip_gen: v6e
topology: v6e:2x2x1
jax: 0.10.0
libtpu: 0.0.40
codegen_flags: <defaults>
</compile_context>

<pallas_src>
import math
import functools

import jax
import jax.numpy as jnp
from jax.experimental import pallas as pl
from jax.experimental.pallas import tpu as pltpu


_NEG_BIG = -1e30          # finite "minus infinity" for the boolean attention mask
_Q_CHUNK = 128            # query-row chunk inside the attention kernel (multiple of 8)


# ------------------------- per-generation tuning -------------------------
@functools.lru_cache(maxsize=None)
def _tuning():
    """(vmem_limit_bytes, row_tile).  v5e/v6e: 128 MiB VMEM -> big tiles; v7x
    (64 MiB/TC) or unknown chip -> conservative, known-good settings."""
    vmem_cap = None
    try:
        vmem_cap = getattr(pltpu.get_tpu_info(), "vmem_capacity_bytes", None)
    except Exception:
        vmem_cap = None
    if vmem_cap is not None and vmem_cap > 96 * 1024 * 1024:
        return 100 * 1024 * 1024, 512        # v5e / v6e class
    return 48 * 1024 * 1024, 256             # v7x class / unknown


def _invariant_spec(shape, single_buffer):
    """Grid-invariant (constant index_map) block.  Single-buffer when supported:
    the block never changes so no prefetch is needed and resident VMEM halves."""
    index_map = lambda *_: (0,) * len(shape)
    if single_buffer:
        buffered = getattr(pl, "Buffered", None)
        if buffered is not None:
            try:
                return pl.BlockSpec(shape, index_map, pipeline_mode=buffered(1))
            except Exception:
                pass
    return pl.BlockSpec(shape, index_map)


# ----------------------------- in-kernel helpers -----------------------------
def _layernorm(x, w, b, eps=1e-5):
    x = x.astype(jnp.float32)                      # fp32 LN like the torch subclass
    mu = jnp.mean(x, axis=-1, keepdims=True)
    var = jnp.mean((x - mu) ** 2, axis=-1, keepdims=True)
    return (x - mu) * jax.lax.rsqrt(var + eps) * w + b


def _softmax(x):
    m = jnp.max(x, axis=-1, keepdims=True)
    e = jnp.exp(x - m)                             # EUP
    return e * pl.reciprocal(jnp.sum(e, axis=-1, keepdims=True), approx=True)


# ---------------- Kernel 1: row-tiled LayerNorm + linear (bf16 matmul) ----------------
def _ln_linear_kernel(x_ref, lnw_ref, lnb_ref, w_ref, b_ref, out_ref):
    x = _layernorm(x_ref[...], lnw_ref[...], lnb_ref[...])          # fp32
    y = jnp.dot(x.astype(jnp.bfloat16), w_ref[...],                 # bf16 MXU, fp32 acc
                preferred_element_type=jnp.float32) + b_ref[...]
    out_ref[...] = y.astype(out_ref.dtype)


def _ln_linear(x2, lnw, lnb, w_t, b, out_dtype, row_tile, vmem_limit, single_buffer):
    rows, d = x2.shape
    dout = w_t.shape[1]
    if rows <= row_tile:
        tile, grid = rows, 1                       # full-extent block (always legal)
    else:
        tile, grid = row_tile, pl.cdiv(rows, row_tile)
    const = lambda shape: _invariant_spec(shape, single_buffer)
    return pl.pallas_call(
        _ln_linear_kernel,
        grid=(grid,),
        in_specs=[
            pl.BlockSpec((tile, d), lambda i: (i, 0)),
            const((1, d)), const((1, d)),            # ln_1
            const((d, dout)), const((1, dout)),      # projection weight / bias
        ],
        out_specs=pl.BlockSpec((tile, dout), lambda i: (i, 0)),
        out_shape=jax.ShapeDtypeStruct((rows, dout), out_dtype),
        compiler_params=pltpu.CompilerParams(
            dimension_semantics=("parallel",),
            vmem_limit_bytes=vmem_limit),
    )(x2, lnw, lnb, w_t, b)


# ---------------- Kernel 2: per-batch dual-branch attention (all heads) ----------------
def _attn_kernel(n_head, head_dim, q_chunk, qkv_ref, newq_ref, mask_ref, out_ref):
    d = n_head * head_dim
    scale = 1.0 / math.sqrt(head_dim)
    skv = qkv_ref.shape[0]
    nq = newq_ref.shape[0]
    seq = nq + skv

    qkv = qkv_ref[...]                      # (skv, 3d) bf16
    q_all = qkv[:, :d]                      # clip-branch queries
    k_t = qkv[:, d:2 * d].T                 # (d, skv): ONE transpose per batch step
    v_all = qkv[:, 2 * d:]                  # (skv, d)

    # Stack both branches' LHS rows once: rows [:nq] = masked new-query branch,
    # rows [nq:] = clip self-attention branch.  Output row order then matches
    # torch's concat([mask_output, clip_output]) so each chunk stores directly.
    lhs = jnp.concatenate([newq_ref[...], q_all], axis=0)                 # (seq, d) bf16
    mask_full = jnp.concatenate(
        [mask_ref[...], jnp.zeros((skv, skv), jnp.float32)], axis=0)      # (seq, skv) f32

    bounds = list(range(0, seq, q_chunk)) + [seq]

    for h in range(n_head):                                 # static unroll; each head's
        cols = slice(h * head_dim, (h + 1) * head_dim)      # temporaries die at its store
        kh_t = k_t[cols, :]                                 # (hd, skv)
        vh = v_all[:, cols]                                 # (skv, hd)
        lhs_h = lhs[:, cols]                                # (seq, hd)
        for r0, r1 in zip(bounds[:-1], bounds[1:]):         # static row chunks keep the
            s = jnp.dot(lhs_h[r0:r1, :], kh_t,              # score/softmax tile in vregs
                        preferred_element_type=jnp.float32) * scale + mask_full[r0:r1, :]
            p = _softmax(s).astype(jnp.bfloat16)
            o = jnp.dot(p, vh, preferred_element_type=jnp.float32)
            out_ref[r0:r1, cols] = o.astype(out_ref.dtype)


# -------- Kernel 3: row-tiled out_proj + residual + ln_2 + MLP(QuickGELU) + residual --------
def _out_mlp_kernel(attn_ref, y_ref,
                    wo_ref, bo_ref, ln2w_ref, ln2b_ref,
                    wfc_ref, bfc_ref, wproj_ref, bproj_ref,
                    out_ref):
    a = jnp.dot(attn_ref[...], wo_ref[...],
                preferred_element_type=jnp.float32) + bo_ref[...]
    y1 = y_ref[...].astype(jnp.float32) + a
    x2 = _layernorm(y1, ln2w_ref[...], ln2b_ref[...])
    h = jnp.dot(x2.astype(jnp.bfloat16), wfc_ref[...],
                preferred_element_type=jnp.float32) + bfc_ref[...]
    h = h * pl.reciprocal(1.0 + jnp.exp(-1.702 * h), approx=True)   # QuickGELU (EUP, f32)
    m = jnp.dot(h.astype(jnp.bfloat16), wproj_ref[...],
                preferred_element_type=jnp.float32) + bproj_ref[...]
    # TODO(synk): for d >= 1280 additionally tile the 4*d hidden axis as a grid axis.
    out_ref[...] = (y1 + m).astype(out_ref.dtype)


# --------------------------------- parameter prep ---------------------------------
def prepare_params(params):
    """One-time weight staging (transpose to x @ W^T layout, cast matmul operands to
    bf16, biases / LN params to fp32).  Call once, OUTSIDE the jitted forward."""
    bf, f32 = jnp.bfloat16, jnp.float32
    return {
        "ln1_w": params["ln1_w"].astype(f32)[None],
        "ln1_b": params["ln1_b"].astype(f32)[None],
        "in_w_t": params["in_w"].T.astype(bf),        # (d, 3d), fused q|k|v
        "in_b": params["in_b"].astype(f32)[None],
        "nq_w_t": params["nq_w"].T.astype(bf),
        "nq_b": params["nq_b"].astype(f32)[None],
        "out_w_t": params["out_w"].T.astype(bf),
        "out_b": params["out_b"].astype(f32)[None],
        "ln2_w": params["ln2_w"].astype(f32)[None],
        "ln2_b": params["ln2_b"].astype(f32)[None],
        "fc_w_t": params["fc_w"].T.astype(bf),
        "fc_b": params["fc_b"].astype(f32)[None],
        "proj_w_t": params["proj_w"].T.astype(bf),
        "proj_b": params["proj_b"].astype(f32)[None],
    }


# --------------------------------- wrapper ---------------------------------
def residual_attention_block(y, attn_mask, pp, n_head, *,
                             q_chunk=_Q_CHUNK, single_buffer_weights=True):
    seq, bs, d = y.shape
    _, nq, skv = attn_mask.shape
    assert skv == seq - nq and d % n_head == 0
    hd = d // n_head
    orig_dtype = y.dtype
    vmem_limit, row_tile = _tuning()
    bf = jnp.bfloat16

    # TODO(synk): if adjacent blocks can carry batch-major (bs, seq, d) activations,
    # drop this entry transpose and the exit transpose (pure HBM traffic).
    y_b = jnp.transpose(y, (1, 0, 2))                        # (bs, seq, d)
    y_kv2 = y_b[:, nq:, :].reshape(bs * skv, d)              # self-attention (kv) rows
    y_q2 = y_b[:, :nq, :].reshape(bs * nq, d)                # new-query rows
    y_b2 = y_b.reshape(bs * seq, d)

    # --- kernel 1: fused LN1 + QKV projection (kv rows) & new_q projection ---
    qkv2 = _ln_linear(y_kv2, pp["ln1_w"], pp["ln1_b"], pp["in_w_t"], pp["in_b"],
                      bf, row_tile, vmem_limit, single_buffer_weights)     # (bs*skv, 3d)
    newq2 = _ln_linear(y_q2, pp["ln1_w"], pp["ln1_b"], pp["nq_w_t"], pp["nq_b"],
                       bf, row_tile, vmem_limit, single_buffer_weights)    # (bs*nq, d)

    qkv_b = qkv2.reshape(bs, skv, 3 * d)                     # free reshapes (batch-major)
    newq_b = newq2.reshape(bs, nq, d)
    mask_f = jnp.where(attn_mask, _NEG_BIG, 0.0).astype(jnp.float32)   # (bs, nq, skv)

    # --- kernel 2: dual-branch attention, one batch element (all heads) per step ---
    attn_b = pl.pallas_call(
        functools.partial(_attn_kernel, n_head, hd, q_chunk),
        grid=(bs,),
        in_specs=[
            pl.BlockSpec((None, skv, 3 * d), lambda b: (b, 0, 0)),
            pl.BlockSpec((None, nq, d), lambda b: (b, 0, 0)),
            pl.BlockSpec((None, nq, skv), lambda b: (b, 0, 0)),
        ],
        out_specs=pl.BlockSpec((None, seq, d), lambda b: (b, 0, 0)),
        out_shape=jax.ShapeDtypeStruct((bs, seq, d), bf),
        compiler_params=pltpu.CompilerParams(
            dimension_semantics=("parallel",),
            vmem_limit_bytes=vmem_limit),
    )(qkv_b, newq_b, mask_f)

    attn2 = attn_b.reshape(bs * seq, d)                      # rows aligned with y_b2

    # --- kernel 3: out_proj + residual + LN2 + MLP(QuickGELU) + residual ---
    rows = bs * seq
    if rows <= row_tile:
        tile, grid = rows, 1
    else:
        tile, grid = row_tile, pl.cdiv(rows, row_tile)
    row_in = pl.BlockSpec((tile, d), lambda i: (i, 0))
    const = lambda shape: _invariant_spec(shape, single_buffer_weights)

    out_b2 = pl.pallas_call(
        _out_mlp_kernel,
        grid=(grid,),
        in_specs=[
            row_in,                                   # attention output (bf16)
            row_in,                                   # residual y rows (aliased to output)
            const((d, d)), const((1, d)),             # out_proj
            const((1, d)), const((1, d)),             # ln_2
            const((d, 4 * d)), const((1, 4 * d)),     # c_fc
            const((4 * d, d)), const((1, d)),         # c_proj
        ],
        out_specs=pl.BlockSpec((tile, d), lambda i: (i, 0)),
        out_shape=jax.ShapeDtypeStruct((rows, d), orig_dtype),
        input_output_aliases={1: 0},                  # reuse residual buffer
        compiler_params=pltpu.CompilerParams(
            dimension_semantics=("parallel",),
            vmem_limit_bytes=vmem_limit),
    )(attn2, y_b2,
      pp["out_w_t"], pp["out_b"], pp["ln2_w"], pp["ln2_b"],
      pp["fc_w_t"], pp["fc_b"], pp["proj_w_t"], pp["proj_b"])

    # back to sequence-first layout
    return jnp.transpose(out_b2.reshape(bs, seq, d), (1, 0, 2))


# ------------------------------ parameters ------------------------------
def init_params(key, d):
    ks = jax.random.split(key, 12)

    def w(k, shape, scale=0.05):
        return (scale * jax.random.normal(k, shape)).astype(jnp.float32)

    return {
        "ln1_w": 1.0 + w(ks[0], (d,), 0.02),
        "ln1_b": w(ks[1], (d,), 0.02),
        "in_w": w(ks[2], (3 * d, d)),
        "in_b": w(ks[3], (3 * d,)),
        "nq_w": w(ks[4], (d, d)),
        "nq_b": w(ks[5], (d,)),
        "out_w": w(ks[6], (d, d)),
        "out_b": w(ks[7], (d,)),
        "ln2_w": 1.0 + w(ks[8], (d,), 0.02),
        "ln2_b": w(ks[9], (d,), 0.02),
        "fc_w": w(ks[10], (4 * d, d)),
        "fc_b": jnp.zeros((4 * d,), jnp.float32),
        "proj_w": w(ks[11], (d, 4 * d)),
        "proj_b": jnp.zeros((d,), jnp.float32),
    }


# ------------------------- pure-JAX reference (check) -------------------------
def ref_forward(y, mask_bool, p, n_head):
    seq, bs, d = y.shape
    _, nq, skv = mask_bool.shape
    hd = d // n_head

    def ln(x, w, b):
        mu = x.mean(-1, keepdims=True)
        var = ((x - mu) ** 2).mean(-1, keepdims=True)
        return (x - mu) / jnp.sqrt(var + 1e-5) * w + b

    x = ln(y, p["ln1_w"], p["ln1_b"])
    kv, qq = x[nq:], x[:nq]
    qkv = kv @ p["in_w"].T + p["in_b"]
    q, k, v = jnp.split(qkv, 3, axis=-1)

    def heads(t, s):
        return t.reshape(s, bs, n_head, hd).transpose(1, 2, 0, 3)

    qh, kh, vh = heads(q, skv), heads(k, skv), heads(v, skv)
    nqh = heads(qq @ p["nq_w"].T + p["nq_b"], nq)
    scale = 1.0 / math.sqrt(hd)
    s_clip = jnp.einsum("bhqd,bhkd->bhqk", qh * scale, kh)
    clip = jnp.einsum("bhqk,bhkd->bhqd", jax.nn.softmax(s_clip, -1), vh)
    maskf = jnp.where(mask_bool, -jnp.inf, 0.0)[:, None]
    s_mask = jnp.einsum("bhqd,bhkd->bhqk", nqh * scale, kh) + maskf
    mout = jnp.einsum("bhqk,bhkd->bhqd", jax.nn.softmax(s_mask, -1), vh)

    def unheads(t, s):
        return t.transpose(2, 0, 1, 3).reshape(s, bs, d)

    attn = jnp.concatenate([unheads(mout, nq), unheads(clip, skv)], 0)
    attn = attn @ p["out_w"].T + p["out_b"]
    y1 = y + attn
    x2 = ln(y1, p["ln2_w"], p["ln2_b"])
    h = x2 @ p["fc_w"].T + p["fc_b"]
    h = h * jax.nn.sigmoid(1.702 * h)
    return y1 + h @ p["proj_w"].T + p["proj_b"]


if __name__ == "__main__":
    key = jax.random.PRNGKey(0)
    d_model, n_head = 32, 4
    seq, bs, nq = 8, 2, 3
    skv = seq - nq

    k1, k2, k3 = jax.random.split(key, 3)
    y = jax.random.normal(k1, (seq, bs, d_model), jnp.float32)
    attn_mask = jax.random.bernoulli(k2, 0.3, (bs, nq, skv))
    attn_mask = attn_mask.at[:, :, 0].set(False)  # keep >=1 unmasked key per row
    params = init_params(k3, d_model)
    prepped = prepare_params(params)              # one-time weight staging (outside jit)

    def run(single_buffer_weights):
        fwd = jax.jit(functools.partial(residual_attention_block, n_head=n_head,
                                        single_buffer_weights=single_buffer_weights))
        return jax.block_until_ready(fwd(y, attn_mask, prepped))

    try:
        out = run(True)
    except Exception:
        # Pallas build without BlockSpec pipeline_mode support -> default buffering.
        out = run(False)

    ref = ref_forward(y, attn_mask, params, n_head)
    err = float(jnp.max(jnp.abs(out - ref)))
    # bf16 matmuls with fp32 accumulation + approx reciprocals -> loosened tolerance
    assert out.shape == ref.shape and jnp.allclose(out, ref, atol=2e-2, rtol=2e-2), err
    print("KERNEL_OK")
</pallas_src>

<mosaic_0001>
module attributes {stable_mosaic.version = 11 : i64} {
  func.func @_ln_linear_kernel(%arg0: i32, %arg1: memref<6x32xf32, #tpu.memory_space<vmem>>, %arg2: memref<1x32xf32, #tpu.memory_space<vmem>>, %arg3: memref<1x32xf32, #tpu.memory_space<vmem>>, %arg4: memref<32x32xbf16, #tpu.memory_space<vmem>>, %arg5: memref<1x32xf32, #tpu.memory_space<vmem>>, %arg6: memref<6x32xbf16, #tpu.memory_space<vmem>>) attributes {dimension_semantics = [#tpu.dimension_semantics<parallel>], iteration_bounds = array<i64: 1>, scalar_prefetch = 0 : i64, scratch_operands = 0 : i64, tpu.core_type = #tpu.core_type<tc>, window_params = [{transform_indices = @transform_0, window_bounds = array<i64: 6, 32>}, {pipeline_mode = #tpu.pipeline_mode<synchronous>, transform_indices = @transform_1, window_bounds = array<i64: 1, 32>}, {pipeline_mode = #tpu.pipeline_mode<synchronous>, transform_indices = @transform_2, window_bounds = array<i64: 1, 32>}, {pipeline_mode = #tpu.pipeline_mode<synchronous>, transform_indices = @transform_3, window_bounds = array<i64: 32, 32>}, {pipeline_mode = #tpu.pipeline_mode<synchronous>, transform_indices = @transform_4, window_bounds = array<i64: 1, 32>}, {transform_indices = @transform_5, window_bounds = array<i64: 6, 32>}]} {
    %c0 = arith.constant 0 : index
    %c0_0 = arith.constant 0 : index
    %0 = vector.load %arg1[%c0, %c0_0] : memref<6x32xf32, #tpu.memory_space<vmem>>, vector<6x32xf32>
    %c0_1 = arith.constant 0 : index
    %c0_2 = arith.constant 0 : index
    %1 = vector.load %arg2[%c0_1, %c0_2] : memref<1x32xf32, #tpu.memory_space<vmem>>, vector<1x32xf32>
    %c0_3 = arith.constant 0 : index
    %c0_4 = arith.constant 0 : index
    %2 = vector.load %arg3[%c0_3, %c0_4] : memref<1x32xf32, #tpu.memory_space<vmem>>, vector<1x32xf32>
    %cst = arith.constant dense<0.000000e+00> : vector<6xf32>
    %3 = vector.multi_reduction <add>, %0, %cst [1] : vector<6x32xf32> to vector<6xf32>
    %4 = vector.shape_cast %3 : vector<6xf32> to vector<6x1xf32>
    %cst_5 = arith.constant 3.200000e+01 : f32
    %5 = vector.broadcast %cst_5 : f32 to vector<6x1xf32>
    %6 = arith.divf %4, %5 : vector<6x1xf32>
    %7 = vector.broadcast %6 : vector<6x1xf32> to vector<6x32xf32>
    %8 = arith.subf %0, %7 : vector<6x32xf32>
    %9 = arith.mulf %8, %8 : vector<6x32xf32>
    %cst_6 = arith.constant dense<0.000000e+00> : vector<6xf32>
    %10 = vector.multi_reduction <add>, %9, %cst_6 [1] : vector<6x32xf32> to vector<6xf32>
    %11 = vector.shape_cast %10 : vector<6xf32> to vector<6x1xf32>
    %cst_7 = arith.constant 3.200000e+01 : f32
    %12 = vector.broadcast %cst_7 : f32 to vector<6x1xf32>
    %13 = arith.divf %11, %12 : vector<6x1xf32>
    %14 = vector.broadcast %6 : vector<6x1xf32> to vector<6x32xf32>
    %15 = arith.subf %0, %14 : vector<6x32xf32>
    %cst_8 = arith.constant 9.99999974E-6 : f32
    %16 = vector.broadcast %cst_8 : f32 to vector<6x1xf32>
    %17 = arith.addf %13, %16 : vector<6x1xf32>
    %18 = math.rsqrt %17 : vector<6x1xf32>
    %19 = vector.broadcast %18 : vector<6x1xf32> to vector<6x32xf32>
    %20 = arith.mulf %15, %19 : vector<6x32xf32>
    %21 = vector.broadcast %1 : vector<1x32xf32> to vector<6x32xf32>
    %22 = arith.mulf %20, %21 : vector<6x32xf32>
    %23 = vector.broadcast %2 : vector<1x32xf32> to vector<6x32xf32>
    %24 = arith.addf %22, %23 : vector<6x32xf32>
    %25 = arith.truncf %24 : vector<6x32xf32> to vector<6x32xbf16>
    %c0_9 = arith.constant 0 : index
    %c0_10 = arith.constant 0 : index
    %26 = vector.load %arg4[%c0_9, %c0_10] : memref<32x32xbf16, #tpu.memory_space<vmem>>, vector<32x32xbf16>
    %cst_11 = arith.constant dense<0.000000e+00> : vector<6x32xf32>
    %27 = tpu.matmul %25, %26, %cst_11 {dimension_numbers = #tpu.dot_dimension_numbers<[1], [0], [0], [1], [0, 0, 1, 1], [], []>} : vector<6x32xbf16>, vector<32x32xbf16>, vector<6x32xf32> -> vector<6x32xf32>
    %c0_12 = arith.constant 0 : index
    %c0_13 = arith.constant 0 : index
    %28 = vector.load %arg5[%c0_12, %c0_13] : memref<1x32xf32, #tpu.memory_space<vmem>>, vector<1x32xf32>
    %29 = vector.broadcast %28 : vector<1x32xf32> to vector<6x32xf32>
    %30 = arith.addf %27, %29 : vector<6x32xf32>
    %31 = arith.truncf %30 : vector<6x32xf32> to vector<6x32xbf16>
    %c0_14 = arith.constant 0 : index
    %c0_15 = arith.constant 0 : index
    %32 = vector.load %arg6[%c0_14, %c0_15] : memref<6x32xbf16, #tpu.memory_space<vmem>>, vector<6x32xbf16>
    tpu.vector_store %arg6[%c0_14, %c0_15], %31 {strides = array<i32>} : memref<6x32xbf16, #tpu.memory_space<vmem>>, vector<6x32xbf16>,
    return
  }
  func.func @transform_0(%arg0: i32) -> (i32, i32) {
    %c0_i32 = arith.constant 0 : i32
    %c0_i32_0 = arith.constant 0 : i32
    return %arg0, %c0_i32 : i32, i32
  }
  func.func @transform_1(%arg0: i32) -> (i32, i32) {
    %c0_i32 = arith.constant 0 : i32
    %c0_i32_0 = arith.constant 0 : i32
    %c0_i32_1 = arith.constant 0 : i32
    return %c0_i32, %c0_i32_0 : i32, i32
  }
  func.func @transform_2(%arg0: i32) -> (i32, i32) {
    %c0_i32 = arith.constant 0 : i32
    %c0_i32_0 = arith.constant 0 : i32
    %c0_i32_1 = arith.constant 0 : i32
    return %c0_i32, %c0_i32_0 : i32, i32
  }
  func.func @transform_3(%arg0: i32) -> (i32, i32) {
    %c0_i32 = arith.constant 0 : i32
    %c0_i32_0 = arith.constant 0 : i32
    %c0_i32_1 = arith.constant 0 : i32
    return %c0_i32, %c0_i32_0 : i32, i32
  }
  func.func @transform_4(%arg0: i32) -> (i32, i32) {
    %c0_i32 = arith.constant 0 : i32
    %c0_i32_0 = arith.constant 0 : i32
    %c0_i32_1 = arith.constant 0 : i32
    return %c0_i32, %c0_i32_0 : i32, i32
  }
  func.func @transform_5(%arg0: i32) -> (i32, i32) {
    %c0_i32 = arith.constant 0 : i32
    %c0_i32_0 = arith.constant 0 : i32
    return %arg0, %c0_i32 : i32, i32
  }
}

module attributes {stable_mosaic.version = 11 : i64} {
  func.func @_ln_linear_kernel(%arg0: i32, %arg1: memref<10x32xf32, #tpu.memory_space<vmem>>, %arg2: memref<1x32xf32, #tpu.memory_space<vmem>>, %arg3: memref<1x32xf32, #tpu.memory_space<vmem>>, %arg4: memref<32x96xbf16, #tpu.memory_space<vmem>>, %arg5: memref<1x96xf32, #tpu.memory_space<vmem>>, %arg6: memref<10x96xbf16, #tpu.memory_space<vmem>>) attributes {dimension_semantics = [#tpu.dimension_semantics<parallel>], iteration_bounds = array<i64: 1>, scalar_prefetch = 0 : i64, scratch_operands = 0 : i64, tpu.core_type = #tpu.core_type<tc>, window_params = [{transform_indices = @transform_0, window_bounds = array<i64: 10, 32>}, {pipeline_mode = #tpu.pipeline_mode<synchronous>, transform_indices = @transform_1, window_bounds = array<i64: 1, 32>}, {pipeline_mode = #tpu.pipeline_mode<synchronous>, transform_indices = @transform_2, window_bounds = array<i64: 1, 32>}, {pipeline_mode = #tpu.pipeline_mode<synchronous>, transform_indices = @transform_3, window_bounds = array<i64: 32, 96>}, {pipeline_mode = #tpu.pipeline_mode<synchronous>, transform_indices = @transform_4, window_bounds = array<i64: 1, 96>}, {transform_indices = @transform_5, window_bounds = array<i64: 10, 96>}]} {
    %c0 = arith.constant 0 : index
    %c0_0 = arith.constant 0 : index
    %0 = vector.load %arg1[%c0, %c0_0] : memref<10x32xf32, #tpu.memory_space<vmem>>, vector<10x32xf32>
    %c0_1 = arith.constant 0 : index
    %c0_2 = arith.constant 0 : index
    %1 = vector.load %arg2[%c0_1, %c0_2] : memref<1x32xf32, #tpu.memory_space<vmem>>, vector<1x32xf32>
    %c0_3 = arith.constant 0 : index
    %c0_4 = arith.constant 0 : index
    %2 = vector.load %arg3[%c0_3, %c0_4] : memref<1x32xf32, #tpu.memory_space<vmem>>, vector<1x32xf32>
    %cst = arith.constant dense<0.000000e+00> : vector<10xf32>
    %3 = vector.multi_reduction <add>, %0, %cst [1] : vector<10x32xf32> to vector<10xf32>
    %4 = vector.shape_cast %3 : vector<10xf32> to vector<10x1xf32>
    %cst_5 = arith.constant 3.200000e+01 : f32
    %5 = vector.broadcast %cst_5 : f32 to vector<10x1xf32>
    %6 = arith.divf %4, %5 : vector<10x1xf32>
    %7 = vector.broadcast %6 : vector<10x1xf32> to vector<10x32xf32>
    %8 = arith.subf %0, %7 : vector<10x32xf32>
    %9 = arith.mulf %8, %8 : vector<10x32xf32>
    %cst_6 = arith.constant dense<0.000000e+00> : vector<10xf32>
    %10 = vector.multi_reduction <add>, %9, %cst_6 [1] : vector<10x32xf32> to vector<10xf32>
    %11 = vector.shape_cast %10 : vector<10xf32> to vector<10x1xf32>
    %cst_7 = arith.constant 3.200000e+01 : f32
    %12 = vector.broadcast %cst_7 : f32 to vector<10x1xf32>
    %13 = arith.divf %11, %12 : vector<10x1xf32>
    %14 = vector.broadcast %6 : vector<10x1xf32> to vector<10x32xf32>
    %15 = arith.subf %0, %14 : vector<10x32xf32>
    %cst_8 = arith.constant 9.99999974E-6 : f32
    %16 = vector.broadcast %cst_8 : f32 to vector<10x1xf32>
    %17 = arith.addf %13, %16 : vector<10x1xf32>
    %18 = math.rsqrt %17 : vector<10x1xf32>
    %19 = vector.broadcast %18 : vector<10x1xf32> to vector<10x32xf32>
    %20 = arith.mulf %15, %19 : vector<10x32xf32>
    %21 = vector.broadcast %1 : vector<1x32xf32> to vector<10x32xf32>
    %22 = arith.mulf %20, %21 : vector<10x32xf32>
    %23 = vector.broadcast %2 : vector<1x32xf32> to vector<10x32xf32>
    %24 = arith.addf %22, %23 : vector<10x32xf32>
    %25 = arith.truncf %24 : vector<10x32xf32> to vector<10x32xbf16>
    %c0_9 = arith.constant 0 : index
    %c0_10 = arith.constant 0 : index
    %26 = vector.load %arg4[%c0_9, %c0_10] : memref<32x96xbf16, #tpu.memory_space<vmem>>, vector<32x96xbf16>
    %cst_11 = arith.constant dense<0.000000e+00> : vector<10x96xf32>
    %27 = tpu.matmul %25, %26, %cst_11 {dimension_numbers = #tpu.dot_dimension_numbers<[1], [0], [0], [1], [0, 0, 1, 1], [], []>} : vector<10x32xbf16>, vector<32x96xbf16>, vector<10x96xf32> -> vector<10x96xf32>
    %c0_12 = arith.constant 0 : index
    %c0_13 = arith.constant 0 : index
    %28 = vector.load %arg5[%c0_12, %c0_13] : memref<1x96xf32, #tpu.memory_space<vmem>>, vector<1x96xf32>
    %29 = vector.broadcast %28 : vector<1x96xf32> to vector<10x96xf32>
    %30 = arith.addf %27, %29 : vector<10x96xf32>
    %31 = arith.truncf %30 : vector<10x96xf32> to vector<10x96xbf16>
    %c0_14 = arith.constant 0 : index
    %c0_15 = arith.constant 0 : index
    %32 = vector.load %arg6[%c0_14, %c0_15] : memref<10x96xbf16, #tpu.memory_space<vmem>>, vector<10x96xbf16>
    tpu.vector_store %arg6[%c0_14, %c0_15], %31 {strides = array<i32>} : memref<10x96xbf16, #tpu.memory_space<vmem>>, vector<10x96xbf16>,
    return
  }
  func.func @transform_0(%arg0: i32) -> (i32, i32) {
    %c0_i32 = arith.constant 0 : i32
    %c0_i32_0 = arith.constant 0 : i32
    return %arg0, %c0_i32 : i32, i32
  }
  func.func @transform_1(%arg0: i32) -> (i32, i32) {
    %c0_i32 = arith.constant 0 : i32
    %c0_i32_0 = arith.constant 0 : i32
    %c0_i32_1 = arith.constant 0 : i32
    return %c0_i32, %c0_i32_0 : i32, i32
  }
  func.func @transform_2(%arg0: i32) -> (i32, i32) {
    %c0_i32 = arith.constant 0 : i32
    %c0_i32_0 = arith.constant 0 : i32
    %c0_i32_1 = arith.constant 0 : i32
    return %c0_i32, %c0_i32_0 : i32, i32
  }
  func.func @transform_3(%arg0: i32) -> (i32, i32) {
    %c0_i32 = arith.constant 0 : i32
    %c0_i32_0 = arith.constant 0 : i32
    %c0_i32_1 = arith.constant 0 : i32
    return %c0_i32, %c0_i32_0 : i32, i32
  }
  func.func @transform_4(%arg0: i32) -> (i32, i32) {
    %c0_i32 = arith.constant 0 : i32
    %c0_i32_0 = arith.constant 0 : i32
    %c0_i32_1 = arith.constant 0 : i32
    return %c0_i32, %c0_i32_0 : i32, i32
  }
  func.func @transform_5(%arg0: i32) -> (i32, i32) {
    %c0_i32 = arith.constant 0 : i32
    %c0_i32_0 = arith.constant 0 : i32
    return %arg0, %c0_i32 : i32, i32
  }
}

module attributes {stable_mosaic.version = 11 : i64} {
  func.func @_attn_kernel(%arg0: i32, %arg1: memref<1x5x96xbf16, #tpu.memory_space<vmem>>, %arg2: memref<1x3x32xbf16, #tpu.memory_space<vmem>>, %arg3: memref<1x3x5xf32, #tpu.memory_space<vmem>>, %arg4: memref<1x8x32xbf16, #tpu.memory_space<vmem>>) attributes {dimension_semantics = [#tpu.dimension_semantics<parallel>], iteration_bounds = array<i64: 2>, scalar_prefetch = 0 : i64, scratch_operands = 0 : i64, tpu.core_type = #tpu.core_type<tc>, window_params = [{transform_indices = @transform_0, window_bounds = array<i64: 1, 5, 96>}, {transform_indices = @transform_1, window_bounds = array<i64: 1, 3, 32>}, {transform_indices = @transform_2, window_bounds = array<i64: 1, 3, 5>}, {transform_indices = @transform_3, window_bounds = array<i64: 1, 8, 32>}]} {
    %c0 = arith.constant 0 : index
    %c0_0 = arith.constant 0 : index
    %c0_1 = arith.constant 0 : index
    %0 = vector.load %arg1[%c0, %c0_0, %c0_1] : memref<1x5x96xbf16, #tpu.memory_space<vmem>>, vector<1x5x96xbf16>
    %1 = vector.shape_cast %0 : vector<1x5x96xbf16> to vector<5x96xbf16>
    %2 = vector.extract_strided_slice %1 {offsets = [0, 0], sizes = [5, 32], strides = [1, 1]} : vector<5x96xbf16> to vector<5x32xbf16>
    %3 = vector.extract_strided_slice %1 {offsets = [0, 32], sizes = [5, 32], strides = [1, 1]} : vector<5x96xbf16> to vector<5x32xbf16>
    %4 = tpu.transpose %3, [1, 0] : vector<5x32xbf16> -> vector<32x5xbf16>
    %5 = vector.extract_strided_slice %1 {offsets = [0, 64], sizes = [5, 32], strides = [1, 1]} : vector<5x96xbf16> to vector<5x32xbf16>
    %c0_2 = arith.constant 0 : index
    %c0_3 = arith.constant 0 : index
    %c0_4 = arith.constant 0 : index
    %6 = vector.load %arg2[%c0_2, %c0_3, %c0_4] : memref<1x3x32xbf16, #tpu.memory_space<vmem>>, vector<1x3x32xbf16>
    %7 = vector.shape_cast %6 : vector<1x3x32xbf16> to vector<3x32xbf16>
    %8 = tpu.concatenate %7, %2 in 0 : vector<3x32xbf16>, vector<5x32xbf16> -> vector<8x32xbf16>
    %c0_5 = arith.constant 0 : index
    %c0_6 = arith.constant 0 : index
    %c0_7 = arith.constant 0 : index
    %9 = vector.load %arg3[%c0_5, %c0_6, %c0_7] : memref<1x3x5xf32, #tpu.memory_space<vmem>>, vector<1x3x5xf32>
    %10 = vector.shape_cast %9 : vector<1x3x5xf32> to vector<3x5xf32>
    %cst = arith.constant 0.000000e+00 : f32
    %11 = vector.broadcast %cst : f32 to vector<5x5xf32>
    %12 = tpu.concatenate %10, %11 in 0 : vector<3x5xf32>, vector<5x5xf32> -> vector<8x5xf32>
    %13 = vector.extract_strided_slice %4 {offsets = [0, 0], sizes = [8, 5], strides = [1, 1]} : vector<32x5xbf16> to vector<8x5xbf16>
    %14 = vector.extract_strided_slice %5 {offsets = [0, 0], sizes = [5, 8], strides = [1, 1]} : vector<5x32xbf16> to vector<5x8xbf16>
    %15 = vector.extract_strided_slice %8 {offsets = [0, 0], sizes = [8, 8], strides = [1, 1]} : vector<8x32xbf16> to vector<8x8xbf16>
    %cst_8 = arith.constant dense<0.000000e+00> : vector<8x5xf32>
    %16 = tpu.matmul %15, %13, %cst_8 {dimension_numbers = #tpu.dot_dimension_numbers<[1], [0], [0], [1], [0, 0, 1, 1], [], []>} : vector<8x8xbf16>, vector<8x5xbf16>, vector<8x5xf32> -> vector<8x5xf32>
    %cst_9 = arith.constant 0.353553385 : f32
    %17 = vector.broadcast %cst_9 : f32 to vector<8x5xf32>
    %18 = arith.mulf %16, %17 : vector<8x5xf32>
    %19 = arith.addf %18, %12 : vector<8x5xf32>
    %cst_10 = arith.constant dense<0xFF800000> : vector<8xf32>
    %20 = vector.multi_reduction <maximumf>, %19, %cst_10 [1] : vector<8x5xf32> to vector<8xf32>
    %21 = vector.shape_cast %20 : vector<8xf32> to vector<8x1xf32>
    %22 = vector.broadcast %21 : vector<8x1xf32> to vector<8x5xf32>
    %23 = arith.subf %19, %22 : vector<8x5xf32>
    %24 = math.exp %23 : vector<8x5xf32>
    %cst_11 = arith.constant dense<0.000000e+00> : vector<8xf32>
    %25 = vector.multi_reduction <add>, %24, %cst_11 [1] : vector<8x5xf32> to vector<8xf32>
    %26 = vector.shape_cast %25 : vector<8xf32> to vector<8x1xf32>
    %27 = tpu.reciprocal %26 {approx = true} : vector<8x1xf32> -> vector<8x1xf32>
    %28 = vector.broadcast %27 : vector<8x1xf32> to vector<8x5xf32>
    %29 = arith.mulf %24, %28 : vector<8x5xf32>
    %30 = arith.truncf %29 : vector<8x5xf32> to vector<8x5xbf16>
    %cst_12 = arith.constant dense<0.000000e+00> : vector<8x8xf32>
    %31 = tpu.matmul %30, %14, %cst_12 {dimension_numbers = #tpu.dot_dimension_numbers<[1], [0], [0], [1], [0, 0, 1, 1], [], []>} : vector<8x5xbf16>, vector<5x8xbf16>, vector<8x8xf32> -> vector<8x8xf32>
    %32 = arith.truncf %31 : vector<8x8xf32> to vector<8x8xbf16>
    %c0_13 = arith.constant 0 : index
    %c0_14 = arith.constant 0 : index
    %c0_15 = arith.constant 0 : index
    %33 = vector.load %arg4[%c0_13, %c0_14, %c0_15] : memref<1x8x32xbf16, #tpu.memory_space<vmem>>, vector<1x8x8xbf16>
    %34 = vector.shape_cast %33 : vector<1x8x8xbf16> to vector<8x8xbf16>
    %35 = vector.shape_cast %32 : vector<8x8xbf16> to vector<1x8x8xbf16>
    tpu.vector_store %arg4[%c0_13, %c0_14, %c0_15], %35 {strides = array<i32>} : memref<1x8x32xbf16, #tpu.memory_space<vmem>>, vector<1x8x8xbf16>,
    %36 = vector.extract_strided_slice %4 {offsets = [8, 0], sizes = [8, 5], strides = [1, 1]} : vector<32x5xbf16> to vector<8x5xbf16>
    %37 = vector.extract_strided_slice %5 {offsets = [0, 8], sizes = [5, 8], strides = [1, 1]} : vector<5x32xbf16> to vector<5x8xbf16>
    %38 = vector.extract_strided_slice %8 {offsets = [0, 8], sizes = [8, 8], strides = [1, 1]} : vector<8x32xbf16> to vector<8x8xbf16>
    %cst_16 = arith.constant dense<0.000000e+00> : vector<8x5xf32>
    %39 = tpu.matmul %38, %36, %cst_16 {dimension_numbers = #tpu.dot_dimension_numbers<[1], [0], [0], [1], [0, 0, 1, 1], [], []>} : vector<8x8xbf16>, vector<8x5xbf16>, vector<8x5xf32> -> vector<8x5xf32>
    %cst_17 = arith.constant 0.353553385 : f32
    %40 = vector.broadcast %cst_17 : f32 to vector<8x5xf32>
    %41 = arith.mulf %39, %40 : vector<8x5xf32>
    %42 = arith.addf %41, %12 : vector<8x5xf32>
    %cst_18 = arith.constant dense<0xFF800000> : vector<8xf32>
    %43 = vector.multi_reduction <maximumf>, %42, %cst_18 [1] : vector<8x5xf32> to vector<8xf32>
    %44 = vector.shape_cast %43 : vector<8xf32> to vector<8x1xf32>
    %45 = vector.broadcast %44 : vector<8x1xf32> to vector<8x5xf32>
    %46 = arith.subf %42, %45 : vector<8x5xf32>
    %47 = math.exp %46 : vector<8x5xf32>
    %cst_19 = arith.constant dense<0.000000e+00> : vector<8xf32>
    %48 = vector.multi_reduction <add>, %47, %cst_19 [1] : vector<8x5xf32> to vector<8xf32>
    %49 = vector.shape_cast %48 : vector<8xf32> to vector<8x1xf32>
    %50 = tpu.reciprocal %49 {approx = true} : vector<8x1xf32> -> vector<8x1xf32>
    %51 = vector.broadcast %50 : vector<8x1xf32> to vector<8x5xf32>
    %52 = arith.mulf %47, %51 : vector<8x5xf32>
    %53 = arith.truncf %52 : vector<8x5xf32> to vector<8x5xbf16>
    %cst_20 = arith.constant dense<0.000000e+00> : vector<8x8xf32>
    %54 = tpu.matmul %53, %37, %cst_20 {dimension_numbers = #tpu.dot_dimension_numbers<[1], [0], [0], [1], [0, 0, 1, 1], [], []>} : vector<8x5xbf16>, vector<5x8xbf16>, vector<8x8xf32> -> vector<8x8xf32>
    %55 = arith.truncf %54 : vector<8x8xf32> to vector<8x8xbf16>
    %c0_21 = arith.constant 0 : index
    %c0_22 = arith.constant 0 : index
    %c8 = arith.constant 8 : index
    %56 = vector.load %arg4[%c0_21, %c0_22, %c8] : memref<1x8x32xbf16, #tpu.memory_space<vmem>>, vector<1x8x8xbf16>
    %57 = vector.shape_cast %56 : vector<1x8x8xbf16> to vector<8x8xbf16>
    %58 = vector.shape_cast %55 : vector<8x8xbf16> to vector<1x8x8xbf16>
    tpu.vector_store %arg4[%c0_21, %c0_22, %c8], %58 {strides = array<i32>} : memref<1x8x32xbf16, #tpu.memory_space<vmem>>, vector<1x8x8xbf16>,
    %59 = vector.extract_strided_slice %4 {offsets = [16, 0], sizes = [8, 5], strides = [1, 1]} : vector<32x5xbf16> to vector<8x5xbf16>
    %60 = vector.extract_strided_slice %5 {offsets = [0, 16], sizes = [5, 8], strides = [1, 1]} : vector<5x32xbf16> to vector<5x8xbf16>
    %61 = vector.extract_strided_slice %8 {offsets = [0, 16], sizes = [8, 8], strides = [1, 1]} : vector<8x32xbf16> to vector<8x8xbf16>
    %cst_23 = arith.constant dense<0.000000e+00> : vector<8x5xf32>
    %62 = tpu.matmul %61, %59, %cst_23 {dimension_numbers = #tpu.dot_dimension_numbers<[1], [0], [0], [1], [0, 0, 1, 1], [], []>} : vector<8x8xbf16>, vector<8x5xbf16>, vector<8x5xf32> -> vector<8x5xf32>
    %cst_24 = arith.constant 0.353553385 : f32
    %63 = vector.broadcast %cst_24 : f32 to vector<8x5xf32>
    %64 = arith.mulf %62, %63 : vector<8x5xf32>
    %65 = arith.addf %64, %12 : vector<8x5xf32>
    %cst_25 = arith.constant dense<0xFF800000> : vector<8xf32>
    %66 = vector.multi_reduction <maximumf>, %65, %cst_25 [1] : vector<8x5xf32> to vector<8xf32>
    %67 = vector.shape_cast %66 : vector<8xf32> to vector<8x1xf32>
    %68 = vector.broadcast %67 : vector<8x1xf32> to vector<8x5xf32>
    %69 = arith.subf %65, %68 : vector<8x5xf32>
    %70 = math.exp %69 : vector<8x5xf32>
    %cst_26 = arith.constant dense<0.000000e+00> : vector<8xf32>
    %71 = vector.multi_reduction <add>, %70, %cst_26 [1] : vector<8x5xf32> to vector<8xf32>
    %72 = vector.shape_cast %71 : vector<8xf32> to vector<8x1xf32>
    %73 = tpu.reciprocal %72 {approx = true} : vector<8x1xf32> -> vector<8x1xf32>
    %74 = vector.broadcast %73 : vector<8x1xf32> to vector<8x5xf32>
    %75 = arith.mulf %70, %74 : vector<8x5xf32>
    %76 = arith.truncf %75 : vector<8x5xf32> to vector<8x5xbf16>
    %cst_27 = arith.constant dense<0.000000e+00> : vector<8x8xf32>
    %77 = tpu.matmul %76, %60, %cst_27 {dimension_numbers = #tpu.dot_dimension_numbers<[1], [0], [0], [1], [0, 0, 1, 1], [], []>} : vector<8x5xbf16>, vector<5x8xbf16>, vector<8x8xf32> -> vector<8x8xf32>
    %78 = arith.truncf %77 : vector<8x8xf32> to vector<8x8xbf16>
    %c0_28 = arith.constant 0 : index
    %c0_29 = arith.constant 0 : index
    %c16 = arith.constant 16 : index
    %79 = vector.load %arg4[%c0_28, %c0_29, %c16] : memref<1x8x32xbf16, #tpu.memory_space<vmem>>, vector<1x8x8xbf16>
    %80 = vector.shape_cast %79 : vector<1x8x8xbf16> to vector<8x8xbf16>
    %81 = vector.shape_cast %78 : vector<8x8xbf16> to vector<1x8x8xbf16>
    tpu.vector_store %arg4[%c0_28, %c0_29, %c16], %81 {strides = array<i32>} : memref<1x8x32xbf16, #tpu.memory_space<vmem>>, vector<1x8x8xbf16>,
    %82 = vector.extract_strided_slice %4 {offsets = [24, 0], sizes = [8, 5], strides = [1, 1]} : vector<32x5xbf16> to vector<8x5xbf16>
    %83 = vector.extract_strided_slice %5 {offsets = [0, 24], sizes = [5, 8], strides = [1, 1]} : vector<5x32xbf16> to vector<5x8xbf16>
    %84 = vector.extract_strided_slice %8 {offsets = [0, 24], sizes = [8, 8], strides = [1, 1]} : vector<8x32xbf16> to vector<8x8xbf16>
    %cst_30 = arith.constant dense<0.000000e+00> : vector<8x5xf32>
    %85 = tpu.matmul %84, %82, %cst_30 {dimension_numbers = #tpu.dot_dimension_numbers<[1], [0], [0], [1], [0, 0, 1, 1], [], []>} : vector<8x8xbf16>, vector<8x5xbf16>, vector<8x5xf32> -> vector<8x5xf32>
    %cst_31 = arith.constant 0.353553385 : f32
    %86 = vector.broadcast %cst_31 : f32 to vector<8x5xf32>
    %87 = arith.mulf %85, %86 : vector<8x5xf32>
    %88 = arith.addf %87, %12 : vector<8x5xf32>
    %cst_32 = arith.constant dense<0xFF800000> : vector<8xf32>
    %89 = vector.multi_reduction <maximumf>, %88, %cst_32 [1] : vector<8x5xf32> to vector<8xf32>
    %90 = vector.shape_cast %89 : vector<8xf32> to vector<8x1xf32>
    %91 = vector.broadcast %90 : vector<8x1xf32> to vector<8x5xf32>
    %92 = arith.subf %88, %91 : vector<8x5xf32>
    %93 = math.exp %92 : vector<8x5xf32>
    %cst_33 = arith.constant dense<0.000000e+00> : vector<8xf32>
    %94 = vector.multi_reduction <add>, %93, %cst_33 [1] : vector<8x5xf32> to vector<8xf32>
    %95 = vector.shape_cast %94 : vector<8xf32> to vector<8x1xf32>
    %96 = tpu.reciprocal %95 {approx = true} : vector<8x1xf32> -> vector<8x1xf32>
    %97 = vector.broadcast %96 : vector<8x1xf32> to vector<8x5xf32>
    %98 = arith.mulf %93, %97 : vector<8x5xf32>
    %99 = arith.truncf %98 : vector<8x5xf32> to vector<8x5xbf16>
    %cst_34 = arith.constant dense<0.000000e+00> : vector<8x8xf32>
    %100 = tpu.matmul %99, %83, %cst_34 {dimension_numbers = #tpu.dot_dimension_numbers<[1], [0], [0], [1], [0, 0, 1, 1], [], []>} : vector<8x5xbf16>, vector<5x8xbf16>, vector<8x8xf32> -> vector<8x8xf32>
    %101 = arith.truncf %100 : vector<8x8xf32> to vector<8x8xbf16>
    %c0_35 = arith.constant 0 : index
    %c0_36 = arith.constant 0 : index
    %c24 = arith.constant 24 : index
    %102 = vector.load %arg4[%c0_35, %c0_36, %c24] : memref<1x8x32xbf16, #tpu.memory_space<vmem>>, vector<1x8x8xbf16>
    %103 = vector.shape_cast %102 : vector<1x8x8xbf16> to vector<8x8xbf16>
    %104 = vector.shape_cast %101 : vector<8x8xbf16> to vector<1x8x8xbf16>
    tpu.vector_store %arg4[%c0_35, %c0_36, %c24], %104 {strides = array<i32>} : memref<1x8x32xbf16, #tpu.memory_space<vmem>>, vector<1x8x8xbf16>,
    return
  }
  func.func @transform_0(%arg0: i32) -> (i32, i32, i32) {
    %c0_i32 = arith.constant 0 : i32
    %c0_i32_0 = arith.constant 0 : i32
    %c0_i32_1 = arith.constant 0 : i32
    return %arg0, %c0_i32, %c0_i32_0 : i32, i32, i32
  }
  func.func @transform_1(%arg0: i32) -> (i32, i32, i32) {
    %c0_i32 = arith.constant 0 : i32
    %c0_i32_0 = arith.constant 0 : i32
    %c0_i32_1 = arith.constant 0 : i32
    return %arg0, %c0_i32, %c0_i32_0 : i32, i32, i32
  }
  func.func @transform_2(%arg0: i32) -> (i32, i32, i32) {
    %c0_i32 = arith.constant 0 : i32
    %c0_i32_0 = arith.constant 0 : i32
    %c0_i32_1 = arith.constant 0 : i32
    return %arg0, %c0_i32, %c0_i32_0 : i32, i32, i32
  }
  func.func @transform_3(%arg0: i32) -> (i32, i32, i32) {
    %c0_i32 = arith.constant 0 : i32
    %c0_i32_0 = arith.constant 0 : i32
    %c0_i32_1 = arith.constant 0 : i32
    return %arg0, %c0_i32, %c0_i32_0 : i32, i32, i32
  }
}

module attributes {stable_mosaic.version = 11 : i64} {
  func.func @_out_mlp_kernel(%arg0: i32, %arg1: memref<16x32xbf16, #tpu.memory_space<vmem>>, %arg2: memref<16x32xf32, #tpu.memory_space<vmem>>, %arg3: memref<32x32xbf16, #tpu.memory_space<vmem>>, %arg4: memref<1x32xf32, #tpu.memory_space<vmem>>, %arg5: memref<1x32xf32, #tpu.memory_space<vmem>>, %arg6: memref<1x32xf32, #tpu.memory_space<vmem>>, %arg7: memref<32x128xbf16, #tpu.memory_space<vmem>>, %arg8: memref<1x128xf32, #tpu.memory_space<vmem>>, %arg9: memref<128x32xbf16, #tpu.memory_space<vmem>>, %arg10: memref<1x32xf32, #tpu.memory_space<vmem>>, %arg11: memref<16x32xf32, #tpu.memory_space<vmem>>) attributes {dimension_semantics = [#tpu.dimension_semantics<parallel>], iteration_bounds = array<i64: 1>, scalar_prefetch = 0 : i64, scratch_operands = 0 : i64, tpu.core_type = #tpu.core_type<tc>, window_params = [{transform_indices = @transform_0, window_bounds = array<i64: 16, 32>}, {transform_indices = @transform_1, window_bounds = array<i64: 16, 32>}, {pipeline_mode = #tpu.pipeline_mode<synchronous>, transform_indices = @transform_2, window_bounds = array<i64: 32, 32>}, {pipeline_mode = #tpu.pipeline_mode<synchronous>, transform_indices = @transform_3, window_bounds = array<i64: 1, 32>}, {pipeline_mode = #tpu.pipeline_mode<synchronous>, transform_indices = @transform_4, window_bounds = array<i64: 1, 32>}, {pipeline_mode = #tpu.pipeline_mode<synchronous>, transform_indices = @transform_5, window_bounds = array<i64: 1, 32>}, {pipeline_mode = #tpu.pipeline_mode<synchronous>, transform_indices = @transform_6, window_bounds = array<i64: 32, 128>}, {pipeline_mode = #tpu.pipeline_mode<synchronous>, transform_indices = @transform_7, window_bounds = array<i64: 1, 128>}, {pipeline_mode = #tpu.pipeline_mode<synchronous>, transform_indices = @transform_8, window_bounds = array<i64: 128, 32>}, {pipeline_mode = #tpu.pipeline_mode<synchronous>, transform_indices = @transform_9, window_bounds = array<i64: 1, 32>}, {transform_indices = @transform_10, window_bounds = array<i64: 16, 32>}]} {
    %c0 = arith.constant 0 : index
    %c0_0 = arith.constant 0 : index
    %0 = vector.load %arg1[%c0, %c0_0] : memref<16x32xbf16, #tpu.memory_space<vmem>>, vector<16x32xbf16>
    %c0_1 = arith.constant 0 : index
    %c0_2 = arith.constant 0 : index
    %1 = vector.load %arg3[%c0_1, %c0_2] : memref<32x32xbf16, #tpu.memory_space<vmem>>, vector<32x32xbf16>
    %cst = arith.constant dense<0.000000e+00> : vector<16x32xf32>
    %2 = tpu.matmul %0, %1, %cst {dimension_numbers = #tpu.dot_dimension_numbers<[1], [0], [0], [1], [0, 0, 1, 1], [], []>} : vector<16x32xbf16>, vector<32x32xbf16>, vector<16x32xf32> -> vector<16x32xf32>
    %c0_3 = arith.constant 0 : index
    %c0_4 = arith.constant 0 : index
    %3 = vector.load %arg4[%c0_3, %c0_4] : memref<1x32xf32, #tpu.memory_space<vmem>>, vector<1x32xf32>
    %4 = vector.broadcast %3 : vector<1x32xf32> to vector<16x32xf32>
    %5 = arith.addf %2, %4 : vector<16x32xf32>
    %c0_5 = arith.constant 0 : index
    %c0_6 = arith.constant 0 : index
    %6 = vector.load %arg2[%c0_5, %c0_6] : memref<16x32xf32, #tpu.memory_space<vmem>>, vector<16x32xf32>
    %7 = arith.addf %6, %5 : vector<16x32xf32>
    %c0_7 = arith.constant 0 : index
    %c0_8 = arith.constant 0 : index
    %8 = vector.load %arg5[%c0_7, %c0_8] : memref<1x32xf32, #tpu.memory_space<vmem>>, vector<1x32xf32>
    %c0_9 = arith.constant 0 : index
    %c0_10 = arith.constant 0 : index
    %9 = vector.load %arg6[%c0_9, %c0_10] : memref<1x32xf32, #tpu.memory_space<vmem>>, vector<1x32xf32>
    %cst_11 = arith.constant dense<0.000000e+00> : vector<16xf32>
    %10 = vector.multi_reduction <add>, %7, %cst_11 [1] : vector<16x32xf32> to vector<16xf32>
    %11 = vector.shape_cast %10 : vector<16xf32> to vector<16x1xf32>
    %cst_12 = arith.constant 3.200000e+01 : f32
    %12 = vector.broadcast %cst_12 : f32 to vector<16x1xf32>
    %13 = arith.divf %11, %12 : vector<16x1xf32>
    %14 = vector.broadcast %13 : vector<16x1xf32> to vector<16x32xf32>
    %15 = arith.subf %7, %14 : vector<16x32xf32>
    %16 = arith.mulf %15, %15 : vector<16x32xf32>
    %cst_13 = arith.constant dense<0.000000e+00> : vector<16xf32>
    %17 = vector.multi_reduction <add>, %16, %cst_13 [1] : vector<16x32xf32> to vector<16xf32>
    %18 = vector.shape_cast %17 : vector<16xf32> to vector<16x1xf32>
    %cst_14 = arith.constant 3.200000e+01 : f32
    %19 = vector.broadcast %cst_14 : f32 to vector<16x1xf32>
    %20 = arith.divf %18, %19 : vector<16x1xf32>
    %21 = vector.broadcast %13 : vector<16x1xf32> to vector<16x32xf32>
    %22 = arith.subf %7, %21 : vector<16x32xf32>
    %cst_15 = arith.constant 9.99999974E-6 : f32
    %23 = vector.broadcast %cst_15 : f32 to vector<16x1xf32>
    %24 = arith.addf %20, %23 : vector<16x1xf32>
    %25 = math.rsqrt %24 : vector<16x1xf32>
    %26 = vector.broadcast %25 : vector<16x1xf32> to vector<16x32xf32>
    %27 = arith.mulf %22, %26 : vector<16x32xf32>
    %28 = vector.broadcast %8 : vector<1x32xf32> to vector<16x32xf32>
    %29 = arith.mulf %27, %28 : vector<16x32xf32>
    %30 = vector.broadcast %9 : vector<1x32xf32> to vector<16x32xf32>
    %31 = arith.addf %29, %30 : vector<16x32xf32>
    %32 = arith.truncf %31 : vector<16x32xf32> to vector<16x32xbf16>
    %c0_16 = arith.constant 0 : index
    %c0_17 = arith.constant 0 : index
    %33 = vector.load %arg7[%c0_16, %c0_17] : memref<32x128xbf16, #tpu.memory_space<vmem>>, vector<32x128xbf16>
    %cst_18 = arith.constant dense<0.000000e+00> : vector<16x128xf32>
    %34 = tpu.matmul %32, %33, %cst_18 {dimension_numbers = #tpu.dot_dimension_numbers<[1], [0], [0], [1], [0, 0, 1, 1], [], []>} : vector<16x32xbf16>, vector<32x128xbf16>, vector<16x128xf32> -> vector<16x128xf32>
    %c0_19 = arith.constant 0 : index
    %c0_20 = arith.constant 0 : index
    %35 = vector.load %arg8[%c0_19, %c0_20] : memref<1x128xf32, #tpu.memory_space<vmem>>, vector<1x128xf32>
    %36 = vector.broadcast %35 : vector<1x128xf32> to vector<16x128xf32>
    %37 = arith.addf %34, %36 : vector<16x128xf32>
    %cst_21 = arith.constant -1.702000e+00 : f32
    %38 = vector.broadcast %cst_21 : f32 to vector<16x128xf32>
    %39 = arith.mulf %38, %37 : vector<16x128xf32>
    %40 = math.exp %39 : vector<16x128xf32>
    %cst_22 = arith.constant 1.000000e+00 : f32
    %41 = vector.broadcast %cst_22 : f32 to vector<16x128xf32>
    %42 = arith.addf %41, %40 : vector<16x128xf32>
    %43 = tpu.reciprocal %42 {approx = true} : vector<16x128xf32> -> vector<16x128xf32>
    %44 = arith.mulf %37, %43 : vector<16x128xf32>
    %45 = arith.truncf %44 : vector<16x128xf32> to vector<16x128xbf16>
    %c0_23 = arith.constant 0 : index
    %c0_24 = arith.constant 0 : index
    %46 = vector.load %arg9[%c0_23, %c0_24] : memref<128x32xbf16, #tpu.memory_space<vmem>>, vector<128x32xbf16>
    %cst_25 = arith.constant dense<0.000000e+00> : vector<16x32xf32>
    %47 = tpu.matmul %45, %46, %cst_25 {dimension_numbers = #tpu.dot_dimension_numbers<[1], [0], [0], [1], [0, 0, 1, 1], [], []>} : vector<16x128xbf16>, vector<128x32xbf16>, vector<16x32xf32> -> vector<16x32xf32>
    %c0_26 = arith.constant 0 : index
    %c0_27 = arith.constant 0 : index
    %48 = vector.load %arg10[%c0_26, %c0_27] : memref<1x32xf32, #tpu.memory_space<vmem>>, vector<1x32xf32>
    %49 = vector.broadcast %48 : vector<1x32xf32> to vector<16x32xf32>
    %50 = arith.addf %47, %49 : vector<16x32xf32>
    %51 = arith.addf %7, %50 : vector<16x32xf32>
    %c0_28 = arith.constant 0 : index
    %c0_29 = arith.constant 0 : index
    %52 = vector.load %arg11[%c0_28, %c0_29] : memref<16x32xf32, #tpu.memory_space<vmem>>, vector<16x32xf32>
    tpu.vector_store %arg11[%c0_28, %c0_29], %51 {strides = array<i32>} : memref<16x32xf32, #tpu.memory_space<vmem>>, vector<16x32xf32>,
    return
  }
  func.func @transform_0(%arg0: i32) -> (i32, i32) {
    %c0_i32 = arith.constant 0 : i32
    %c0_i32_0 = arith.constant 0 : i32
    return %arg0, %c0_i32 : i32, i32
  }
  func.func @transform_1(%arg0: i32) -> (i32, i32) {
    %c0_i32 = arith.constant 0 : i32
    %c0_i32_0 = arith.constant 0 : i32
    return %arg0, %c0_i32 : i32, i32
  }
  func.func @transform_2(%arg0: i32) -> (i32, i32) {
    %c0_i32 = arith.constant 0 : i32
    %c0_i32_0 = arith.constant 0 : i32
    %c0_i32_1 = arith.constant 0 : i32
    return %c0_i32, %c0_i32_0 : i32, i32
  }
  func.func @transform_3(%arg0: i32) -> (i32, i32) {
    %c0_i32 = arith.constant 0 : i32
    %c0_i32_0 = arith.constant 0 : i32
    %c0_i32_1 = arith.constant 0 : i32
    return %c0_i32, %c0_i32_0 : i32, i32
  }
  func.func @transform_4(%arg0: i32) -> (i32, i32) {
    %c0_i32 = arith.constant 0 : i32
    %c0_i32_0 = arith.constant 0 : i32
    %c0_i32_1 = arith.constant 0 : i32
    return %c0_i32, %c0_i32_0 : i32, i32
  }
  func.func @transform_5(%arg0: i32) -> (i32, i32) {
    %c0_i32 = arith.constant 0 : i32
    %c0_i32_0 = arith.constant 0 : i32
    %c0_i32_1 = arith.constant 0 : i32
    return %c0_i32, %c0_i32_0 : i32, i32
  }
  func.func @transform_6(%arg0: i32) -> (i32, i32) {
    %c0_i32 = arith.constant 0 : i32
    %c0_i32_0 = arith.constant 0 : i32
    %c0_i32_1 = arith.constant 0 : i32
    return %c0_i32, %c0_i32_0 : i32, i32
  }
  func.func @transform_7(%arg0: i32) -> (i32, i32) {
    %c0_i32 = arith.constant 0 : i32
    %c0_i32_0 = arith.constant 0 : i32
    %c0_i32_1 = arith.constant 0 : i32
    return %c0_i32, %c0_i32_0 : i32, i32
  }
  func.func @transform_8(%arg0: i32) -> (i32, i32) {
    %c0_i32 = arith.constant 0 : i32
    %c0_i32_0 = arith.constant 0 : i32
    %c0_i32_1 = arith.constant 0 : i32
    return %c0_i32, %c0_i32_0 : i32, i32
  }
  func.func @transform_9(%arg0: i32) -> (i32, i32) {
    %c0_i32 = arith.constant 0 : i32
    %c0_i32_0 = arith.constant 0 : i32
    %c0_i32_1 = arith.constant 0 : i32
    return %c0_i32, %c0_i32_0 : i32, i32
  }
  func.func @transform_10(%arg0: i32) -> (i32, i32) {
    %c0_i32 = arith.constant 0 : i32
    %c0_i32_0 = arith.constant 0 : i32
    return %arg0, %c0_i32 : i32, i32
  }
}

module attributes {stable_mosaic.version = 11 : i64} {
  func.func @_ln_linear_kernel(%arg0: i32, %arg1: memref<6x32xf32, #tpu.memory_space<vmem>>, %arg2: memref<1x32xf32, #tpu.memory_space<vmem>>, %arg3: memref<1x32xf32, #tpu.memory_space<vmem>>, %arg4: memref<32x32xbf16, #tpu.memory_space<vmem>>, %arg5: memref<1x32xf32, #tpu.memory_space<vmem>>, %arg6: memref<6x32xbf16, #tpu.memory_space<vmem>>) attributes {dimension_semantics = [#tpu.dimension_semantics<parallel>], iteration_bounds = array<i64: 1>, scalar_prefetch = 0 : i64, scratch_operands = 0 : i64, tpu.core_type = #tpu.core_type<tc>, window_params = [{transform_indices = @transform_0, window_bounds = array<i64: 6, 32>}, {pipeline_mode = #tpu.pipeline_mode<synchronous>, transform_indices = @transform_1, window_bounds = array<i64: 1, 32>}, {pipeline_mode = #tpu.pipeline_mode<synchronous>, transform_indices = @transform_2, window_bounds = array<i64: 1, 32>}, {pipeline_mode = #tpu.pipeline_mode<synchronous>, transform_indices = @transform_3, window_bounds = array<i64: 32, 32>}, {pipeline_mode = #tpu.pipeline_mode<synchronous>, transform_indices = @transform_4, window_bounds = array<i64: 1, 32>}, {transform_indices = @transform_5, window_bounds = array<i64: 6, 32>}]} {
    %c0 = arith.constant 0 : index
    %c0_0 = arith.constant 0 : index
    %0 = vector.load %arg1[%c0, %c0_0] : memref<6x32xf32, #tpu.memory_space<vmem>>, vector<6x32xf32>
    %c0_1 = arith.constant 0 : index
    %c0_2 = arith.constant 0 : index
    %1 = vector.load %arg2[%c0_1, %c0_2] : memref<1x32xf32, #tpu.memory_space<vmem>>, vector<1x32xf32>
    %c0_3 = arith.constant 0 : index
    %c0_4 = arith.constant 0 : index
    %2 = vector.load %arg3[%c0_3, %c0_4] : memref<1x32xf32, #tpu.memory_space<vmem>>, vector<1x32xf32>
    %cst = arith.constant dense<0.000000e+00> : vector<6xf32>
    %3 = vector.multi_reduction <add>, %0, %cst [1] : vector<6x32xf32> to vector<6xf32>
    %4 = vector.shape_cast %3 : vector<6xf32> to vector<6x1xf32>
    %cst_5 = arith.constant 3.200000e+01 : f32
    %5 = vector.broadcast %cst_5 : f32 to vector<6x1xf32>
    %6 = arith.divf %4, %5 : vector<6x1xf32>
    %7 = vector.broadcast %6 : vector<6x1xf32> to vector<6x32xf32>
    %8 = arith.subf %0, %7 : vector<6x32xf32>
    %9 = arith.mulf %8, %8 : vector<6x32xf32>
    %cst_6 = arith.constant dense<0.000000e+00> : vector<6xf32>
    %10 = vector.multi_reduction <add>, %9, %cst_6 [1] : vector<6x32xf32> to vector<6xf32>
    %11 = vector.shape_cast %10 : vector<6xf32> to vector<6x1xf32>
    %cst_7 = arith.constant 3.200000e+01 : f32
    %12 = vector.broadcast %cst_7 : f32 to vector<6x1xf32>
    %13 = arith.divf %11, %12 : vector<6x1xf32>
    %14 = vector.broadcast %6 : vector<6x1xf32> to vector<6x32xf32>
    %15 = arith.subf %0, %14 : vector<6x32xf32>
    %cst_8 = arith.constant 9.99999974E-6 : f32
    %16 = vector.broadcast %cst_8 : f32 to vector<6x1xf32>
    %17 = arith.addf %13, %16 : vector<6x1xf32>
    %18 = math.rsqrt %17 : vector<6x1xf32>
    %19 = vector.broadcast %18 : vector<6x1xf32> to vector<6x32xf32>
    %20 = arith.mulf %15, %19 : vector<6x32xf32>
    %21 = vector.broadcast %1 : vector<1x32xf32> to vector<6x32xf32>
    %22 = arith.mulf %20, %21 : vector<6x32xf32>
    %23 = vector.broadcast %2 : vector<1x32xf32> to vector<6x32xf32>
    %24 = arith.addf %22, %23 : vector<6x32xf32>
    %25 = arith.truncf %24 : vector<6x32xf32> to vector<6x32xbf16>
    %c0_9 = arith.constant 0 : index
    %c0_10 = arith.constant 0 : index
    %26 = vector.load %arg4[%c0_9, %c0_10] : memref<32x32xbf16, #tpu.memory_space<vmem>>, vector<32x32xbf16>
    %cst_11 = arith.constant dense<0.000000e+00> : vector<6x32xf32>
    %27 = tpu.matmul %25, %26, %cst_11 {dimension_numbers = #tpu.dot_dimension_numbers<[1], [0], [0], [1], [0, 0, 1, 1], [], []>} : vector<6x32xbf16>, vector<32x32xbf16>, vector<6x32xf32> -> vector<6x32xf32>
    %c0_12 = arith.constant 0 : index
    %c0_13 = arith.constant 0 : index
    %28 = vector.load %arg5[%c0_12, %c0_13] : memref<1x32xf32, #tpu.memory_space<vmem>>, vector<1x32xf32>
    %29 = vector.broadcast %28 : vector<1x32xf32> to vector<6x32xf32>
    %30 = arith.addf %27, %29 : vector<6x32xf32>
    %31 = arith.truncf %30 : vector<6x32xf32> to vector<6x32xbf16>
    %c0_14 = arith.constant 0 : index
    %c0_15 = arith.constant 0 : index
    %32 = vector.load %arg6[%c0_14, %c0_15] : memref<6x32xbf16, #tpu.memory_space<vmem>>, vector<6x32xbf16>
    tpu.vector_store %arg6[%c0_14, %c0_15], %31 {strides = array<i32>} : memref<6x32xbf16, #tpu.memory_space<vmem>>, vector<6x32xbf16>,
    return
  }
  func.func @transform_0(%arg0: i32) -> (i32, i32) {
    %c0_i32 = arith.constant 0 : i32
    %c0_i32_0 = arith.constant 0 : i32
    return %arg0, %c0_i32 : i32, i32
  }
  func.func @transform_1(%arg0: i32) -> (i32, i32) {
    %c0_i32 = arith.constant 0 : i32
    %c0_i32_0 = arith.constant 0 : i32
    %c0_i32_1 = arith.constant 0 : i32
    return %c0_i32, %c0_i32_0 : i32, i32
  }
  func.func @transform_2(%arg0: i32) -> (i32, i32) {
    %c0_i32 = arith.constant 0 : i32
    %c0_i32_0 = arith.constant 0 : i32
    %c0_i32_1 = arith.constant 0 : i32
    return %c0_i32, %c0_i32_0 : i32, i32
  }
  func.func @transform_3(%arg0: i32) -> (i32, i32) {
    %c0_i32 = arith.constant 0 : i32
    %c0_i32_0 = arith.constant 0 : i32
    %c0_i32_1 = arith.constant 0 : i32
    return %c0_i32, %c0_i32_0 : i32, i32
  }
  func.func @transform_4(%arg0: i32) -> (i32, i32) {
    %c0_i32 = arith.constant 0 : i32
    %c0_i32_0 = arith.constant 0 : i32
    %c0_i32_1 = arith.constant 0 : i32
    return %c0_i32, %c0_i32_0 : i32, i32
  }
  func.func @transform_5(%arg0: i32) -> (i32, i32) {
    %c0_i32 = arith.constant 0 : i32
    %c0_i32_0 = arith.constant 0 : i32
    return %arg0, %c0_i32 : i32, i32
  }
}

module attributes {stable_mosaic.version = 11 : i64} {
  func.func @_ln_linear_kernel(%arg0: i32, %arg1: memref<10x32xf32, #tpu.memory_space<vmem>>, %arg2: memref<1x32xf32, #tpu.memory_space<vmem>>, %arg3: memref<1x32xf32, #tpu.memory_space<vmem>>, %arg4: memref<32x96xbf16, #tpu.memory_space<vmem>>, %arg5: memref<1x96xf32, #tpu.memory_space<vmem>>, %arg6: memref<10x96xbf16, #tpu.memory_space<vmem>>) attributes {dimension_semantics = [#tpu.dimension_semantics<parallel>], iteration_bounds = array<i64: 1>, scalar_prefetch = 0 : i64, scratch_operands = 0 : i64, tpu.core_type = #tpu.core_type<tc>, window_params = [{transform_indices = @transform_0, window_bounds = array<i64: 10, 32>}, {pipeline_mode = #tpu.pipeline_mode<synchronous>, transform_indices = @transform_1, window_bounds = array<i64: 1, 32>}, {pipeline_mode = #tpu.pipeline_mode<synchronous>, transform_indices = @transform_2, window_bounds = array<i64: 1, 32>}, {pipeline_mode = #tpu.pipeline_mode<synchronous>, transform_indices = @transform_3, window_bounds = array<i64: 32, 96>}, {pipeline_mode = #tpu.pipeline_mode<synchronous>, transform_indices = @transform_4, window_bounds = array<i64: 1, 96>}, {transform_indices = @transform_5, window_bounds = array<i64: 10, 96>}]} {
    %c0 = arith.constant 0 : index
    %c0_0 = arith.constant 0 : index
    %0 = vector.load %arg1[%c0, %c0_0] : memref<10x32xf32, #tpu.memory_space<vmem>>, vector<10x32xf32>
    %c0_1 = arith.constant 0 : index
    %c0_2 = arith.constant 0 : index
    %1 = vector.load %arg2[%c0_1, %c0_2] : memref<1x32xf32, #tpu.memory_space<vmem>>, vector<1x32xf32>
    %c0_3 = arith.constant 0 : index
    %c0_4 = arith.constant 0 : index
    %2 = vector.load %arg3[%c0_3, %c0_4] : memref<1x32xf32, #tpu.memory_space<vmem>>, vector<1x32xf32>
    %cst = arith.constant dense<0.000000e+00> : vector<10xf32>
    %3 = vector.multi_reduction <add>, %0, %cst [1] : vector<10x32xf32> to vector<10xf32>
    %4 = vector.shape_cast %3 : vector<10xf32> to vector<10x1xf32>
    %cst_5 = arith.constant 3.200000e+01 : f32
    %5 = vector.broadcast %cst_5 : f32 to vector<10x1xf32>
    %6 = arith.divf %4, %5 : vector<10x1xf32>
    %7 = vector.broadcast %6 : vector<10x1xf32> to vector<10x32xf32>
    %8 = arith.subf %0, %7 : vector<10x32xf32>
    %9 = arith.mulf %8, %8 : vector<10x32xf32>
    %cst_6 = arith.constant dense<0.000000e+00> : vector<10xf32>
    %10 = vector.multi_reduction <add>, %9, %cst_6 [1] : vector<10x32xf32> to vector<10xf32>
    %11 = vector.shape_cast %10 : vector<10xf32> to vector<10x1xf32>
    %cst_7 = arith.constant 3.200000e+01 : f32
    %12 = vector.broadcast %cst_7 : f32 to vector<10x1xf32>
    %13 = arith.divf %11, %12 : vector<10x1xf32>
    %14 = vector.broadcast %6 : vector<10x1xf32> to vector<10x32xf32>
    %15 = arith.subf %0, %14 : vector<10x32xf32>
    %cst_8 = arith.constant 9.99999974E-6 : f32
    %16 = vector.broadcast %cst_8 : f32 to vector<10x1xf32>
    %17 = arith.addf %13, %16 : vector<10x1xf32>
    %18 = math.rsqrt %17 : vector<10x1xf32>
    %19 = vector.broadcast %18 : vector<10x1xf32> to vector<10x32xf32>
    %20 = arith.mulf %15, %19 : vector<10x32xf32>
    %21 = vector.broadcast %1 : vector<1x32xf32> to vector<10x32xf32>
    %22 = arith.mulf %20, %21 : vector<10x32xf32>
    %23 = vector.broadcast %2 : vector<1x32xf32> to vector<10x32xf32>
    %24 = arith.addf %22, %23 : vector<10x32xf32>
    %25 = arith.truncf %24 : vector<10x32xf32> to vector<10x32xbf16>
    %c0_9 = arith.constant 0 : index
    %c0_10 = arith.constant 0 : index
    %26 = vector.load %arg4[%c0_9, %c0_10] : memref<32x96xbf16, #tpu.memory_space<vmem>>, vector<32x96xbf16>
    %cst_11 = arith.constant dense<0.000000e+00> : vector<10x96xf32>
    %27 = tpu.matmul %25, %26, %cst_11 {dimension_numbers = #tpu.dot_dimension_numbers<[1], [0], [0], [1], [0, 0, 1, 1], [], []>} : vector<10x32xbf16>, vector<32x96xbf16>, vector<10x96xf32> -> vector<10x96xf32>
    %c0_12 = arith.constant 0 : index
    %c0_13 = arith.constant 0 : index
    %28 = vector.load %arg5[%c0_12, %c0_13] : memref<1x96xf32, #tpu.memory_space<vmem>>, vector<1x96xf32>
    %29 = vector.broadcast %28 : vector<1x96xf32> to vector<10x96xf32>
    %30 = arith.addf %27, %29 : vector<10x96xf32>
    %31 = arith.truncf %30 : vector<10x96xf32> to vector<10x96xbf16>
    %c0_14 = arith.constant 0 : index
    %c0_15 = arith.constant 0 : index
    %32 = vector.load %arg6[%c0_14, %c0_15] : memref<10x96xbf16, #tpu.memory_space<vmem>>, vector<10x96xbf16>
    tpu.vector_store %arg6[%c0_14, %c0_15], %31 {strides = array<i32>} : memref<10x96xbf16, #tpu.memory_space<vmem>>, vector<10x96xbf16>,
    return
  }
  func.func @transform_0(%arg0: i32) -> (i32, i32) {
    %c0_i32 = arith.constant 0 : i32
    %c0_i32_0 = arith.constant 0 : i32
    return %arg0, %c0_i32 : i32, i32
  }
  func.func @transform_1(%arg0: i32) -> (i32, i32) {
    %c0_i32 = arith.constant 0 : i32
    %c0_i32_0 = arith.constant 0 : i32
    %c0_i32_1 = arith.constant 0 : i32
    return %c0_i32, %c0_i32_0 : i32, i32
  }
  func.func @transform_2(%arg0: i32) -> (i32, i32) {
    %c0_i32 = arith.constant 0 : i32
    %c0_i32_0 = arith.constant 0 : i32
    %c0_i32_1 = arith.constant 0 : i32
    return %c0_i32, %c0_i32_0 : i32, i32
  }
  func.func @transform_3(%arg0: i32) -> (i32, i32) {
    %c0_i32 = arith.constant 0 : i32
    %c0_i32_0 = arith.constant 0 : i32
    %c0_i32_1 = arith.constant 0 : i32
    return %c0_i32, %c0_i32_0 : i32, i32
  }
  func.func @transform_4(%arg0: i32) -> (i32, i32) {
    %c0_i32 = arith.constant 0 : i32
    %c0_i32_0 = arith.constant 0 : i32
    %c0_i32_1 = arith.constant 0 : i32
    return %c0_i32, %c0_i32_0 : i32, i32
  }
  func.func @transform_5(%arg0: i32) -> (i32, i32) {
    %c0_i32 = arith.constant 0 : i32
    %c0_i32_0 = arith.constant 0 : i32
    return %arg0, %c0_i32 : i32, i32
  }
}

module attributes {stable_mosaic.version = 11 : i64} {
  func.func @_attn_kernel(%arg0: i32, %arg1: memref<1x5x96xbf16, #tpu.memory_space<vmem>>, %arg2: memref<1x3x32xbf16, #tpu.memory_space<vmem>>, %arg3: memref<1x3x5xf32, #tpu.memory_space<vmem>>, %arg4: memref<1x8x32xbf16, #tpu.memory_space<vmem>>) attributes {dimension_semantics = [#tpu.dimension_semantics<parallel>], iteration_bounds = array<i64: 2>, scalar_prefetch = 0 : i64, scratch_operands = 0 : i64, tpu.core_type = #tpu.core_type<tc>, window_params = [{transform_indices = @transform_0, window_bounds = array<i64: 1, 5, 96>}, {transform_indices = @transform_1, window_bounds = array<i64: 1, 3, 32>}, {transform_indices = @transform_2, window_bounds = array<i64: 1, 3, 5>}, {transform_indices = @transform_3, window_bounds = array<i64: 1, 8, 32>}]} {
    %c0 = arith.constant 0 : index
    %c0_0 = arith.constant 0 : index
    %c0_1 = arith.constant 0 : index
    %0 = vector.load %arg1[%c0, %c0_0, %c0_1] : memref<1x5x96xbf16, #tpu.memory_space<vmem>>, vector<1x5x96xbf16>
    %1 = vector.shape_cast %0 : vector<1x5x96xbf16> to vector<5x96xbf16>
    %2 = vector.extract_strided_slice %1 {offsets = [0, 0], sizes = [5, 32], strides = [1, 1]} : vector<5x96xbf16> to vector<5x32xbf16>
    %3 = vector.extract_strided_slice %1 {offsets = [0, 32], sizes = [5, 32], strides = [1, 1]} : vector<5x96xbf16> to vector<5x32xbf16>
    %4 = tpu.transpose %3, [1, 0] : vector<5x32xbf16> -> vector<32x5xbf16>
    %5 = vector.extract_strided_slice %1 {offsets = [0, 64], sizes = [5, 32], strides = [1, 1]} : vector<5x96xbf16> to vector<5x32xbf16>
    %c0_2 = arith.constant 0 : index
    %c0_3 = arith.constant 0 : index
    %c0_4 = arith.constant 0 : index
    %6 = vector.load %arg2[%c0_2, %c0_3, %c0_4] : memref<1x3x32xbf16, #tpu.memory_space<vmem>>, vector<1x3x32xbf16>
    %7 = vector.shape_cast %6 : vector<1x3x32xbf16> to vector<3x32xbf16>
    %8 = tpu.concatenate %7, %2 in 0 : vector<3x32xbf16>, vector<5x32xbf16> -> vector<8x32xbf16>
    %c0_5 = arith.constant 0 : index
    %c0_6 = arith.constant 0 : index
    %c0_7 = arith.constant 0 : index
    %9 = vector.load %arg3[%c0_5, %c0_6, %c0_7] : memref<1x3x5xf32, #tpu.memory_space<vmem>>, vector<1x3x5xf32>
    %10 = vector.shape_cast %9 : vector<1x3x5xf32> to vector<3x5xf32>
    %cst = arith.constant 0.000000e+00 : f32
    %11 = vector.broadcast %cst : f32 to vector<5x5xf32>
    %12 = tpu.concatenate %10, %11 in 0 : vector<3x5xf32>, vector<5x5xf32> -> vector<8x5xf32>
    %13 = vector.extract_strided_slice %4 {offsets = [0, 0], sizes = [8, 5], strides = [1, 1]} : vector<32x5xbf16> to vector<8x5xbf16>
    %14 = vector.extract_strided_slice %5 {offsets = [0, 0], sizes = [5, 8], strides = [1, 1]} : vector<5x32xbf16> to vector<5x8xbf16>
    %15 = vector.extract_strided_slice %8 {offsets = [0, 0], sizes = [8, 8], strides = [1, 1]} : vector<8x32xbf16> to vector<8x8xbf16>
    %cst_8 = arith.constant dense<0.000000e+00> : vector<8x5xf32>
    %16 = tpu.matmul %15, %13, %cst_8 {dimension_numbers = #tpu.dot_dimension_numbers<[1], [0], [0], [1], [0, 0, 1, 1], [], []>} : vector<8x8xbf16>, vector<8x5xbf16>, vector<8x5xf32> -> vector<8x5xf32>
    %cst_9 = arith.constant 0.353553385 : f32
    %17 = vector.broadcast %cst_9 : f32 to vector<8x5xf32>
    %18 = arith.mulf %16, %17 : vector<8x5xf32>
    %19 = arith.addf %18, %12 : vector<8x5xf32>
    %cst_10 = arith.constant dense<0xFF800000> : vector<8xf32>
    %20 = vector.multi_reduction <maximumf>, %19, %cst_10 [1] : vector<8x5xf32> to vector<8xf32>
    %21 = vector.shape_cast %20 : vector<8xf32> to vector<8x1xf32>
    %22 = vector.broadcast %21 : vector<8x1xf32> to vector<8x5xf32>
    %23 = arith.subf %19, %22 : vector<8x5xf32>
    %24 = math.exp %23 : vector<8x5xf32>
    %cst_11 = arith.constant dense<0.000000e+00> : vector<8xf32>
    %25 = vector.multi_reduction <add>, %24, %cst_11 [1] : vector<8x5xf32> to vector<8xf32>
    %26 = vector.shape_cast %25 : vector<8xf32> to vector<8x1xf32>
    %27 = tpu.reciprocal %26 {approx = true} : vector<8x1xf32> -> vector<8x1xf32>
    %28 = vector.broadcast %27 : vector<8x1xf32> to vector<8x5xf32>
    %29 = arith.mulf %24, %28 : vector<8x5xf32>
    %30 = arith.truncf %29 : vector<8x5xf32> to vector<8x5xbf16>
    %cst_12 = arith.constant dense<0.000000e+00> : vector<8x8xf32>
    %31 = tpu.matmul %30, %14, %cst_12 {dimension_numbers = #tpu.dot_dimension_numbers<[1], [0], [0], [1], [0, 0, 1, 1], [], []>} : vector<8x5xbf16>, vector<5x8xbf16>, vector<8x8xf32> -> vector<8x8xf32>
    %32 = arith.truncf %31 : vector<8x8xf32> to vector<8x8xbf16>
    %c0_13 = arith.constant 0 : index
    %c0_14 = arith.constant 0 : index
    %c0_15 = arith.constant 0 : index
    %33 = vector.load %arg4[%c0_13, %c0_14, %c0_15] : memref<1x8x32xbf16, #tpu.memory_space<vmem>>, vector<1x8x8xbf16>
    %34 = vector.shape_cast %33 : vector<1x8x8xbf16> to vector<8x8xbf16>
    %35 = vector.shape_cast %32 : vector<8x8xbf16> to vector<1x8x8xbf16>
    tpu.vector_store %arg4[%c0_13, %c0_14, %c0_15], %35 {strides = array<i32>} : memref<1x8x32xbf16, #tpu.memory_space<vmem>>, vector<1x8x8xbf16>,
    %36 = vector.extract_strided_slice %4 {offsets = [8, 0], sizes = [8, 5], strides = [1, 1]} : vector<32x5xbf16> to vector<8x5xbf16>
    %37 = vector.extract_strided_slice %5 {offsets = [0, 8], sizes = [5, 8], strides = [1, 1]} : vector<5x32xbf16> to vector<5x8xbf16>
    %38 = vector.extract_strided_slice %8 {offsets = [0, 8], sizes = [8, 8], strides = [1, 1]} : vector<8x32xbf16> to vector<8x8xbf16>
    %cst_16 = arith.constant dense<0.000000e+00> : vector<8x5xf32>
    %39 = tpu.matmul %38, %36, %cst_16 {dimension_numbers = #tpu.dot_dimension_numbers<[1], [0], [0], [1], [0, 0, 1, 1], [], []>} : vector<8x8xbf16>, vector<8x5xbf16>, vector<8x5xf32> -> vector<8x5xf32>
    %cst_17 = arith.constant 0.353553385 : f32
    %40 = vector.broadcast %cst_17 : f32 to vector<8x5xf32>
    %41 = arith.mulf %39, %40 : vector<8x5xf32>
    %42 = arith.addf %41, %12 : vector<8x5xf32>
    %cst_18 = arith.constant dense<0xFF800000> : vector<8xf32>
    %43 = vector.multi_reduction <maximumf>, %42, %cst_18 [1] : vector<8x5xf32> to vector<8xf32>
    %44 = vector.shape_cast %43 : vector<8xf32> to vector<8x1xf32>
    %45 = vector.broadcast %44 : vector<8x1xf32> to vector<8x5xf32>
    %46 = arith.subf %42, %45 : vector<8x5xf32>
    %47 = math.exp %46 : vector<8x5xf32>
    %cst_19 = arith.constant dense<0.000000e+00> : vector<8xf32>
    %48 = vector.multi_reduction <add>, %47, %cst_19 [1] : vector<8x5xf32> to vector<8xf32>
    %49 = vector.shape_cast %48 : vector<8xf32> to vector<8x1xf32>
    %50 = tpu.reciprocal %49 {approx = true} : vector<8x1xf32> -> vector<8x1xf32>
    %51 = vector.broadcast %50 : vector<8x1xf32> to vector<8x5xf32>
    %52 = arith.mulf %47, %51 : vector<8x5xf32>
    %53 = arith.truncf %52 : vector<8x5xf32> to vector<8x5xbf16>
    %cst_20 = arith.constant dense<0.000000e+00> : vector<8x8xf32>
    %54 = tpu.matmul %53, %37, %cst_20 {dimension_numbers = #tpu.dot_dimension_numbers<[1], [0], [0], [1], [0, 0, 1, 1], [], []>} : vector<8x5xbf16>, vector<5x8xbf16>, vector<8x8xf32> -> vector<8x8xf32>
    %55 = arith.truncf %54 : vector<8x8xf32> to vector<8x8xbf16>
    %c0_21 = arith.constant 0 : index
    %c0_22 = arith.constant 0 : index
    %c8 = arith.constant 8 : index
    %56 = vector.load %arg4[%c0_21, %c0_22, %c8] : memref<1x8x32xbf16, #tpu.memory_space<vmem>>, vector<1x8x8xbf16>
    %57 = vector.shape_cast %56 : vector<1x8x8xbf16> to vector<8x8xbf16>
    %58 = vector.shape_cast %55 : vector<8x8xbf16> to vector<1x8x8xbf16>
    tpu.vector_store %arg4[%c0_21, %c0_22, %c8], %58 {strides = array<i32>} : memref<1x8x32xbf16, #tpu.memory_space<vmem>>, vector<1x8x8xbf16>,
    %59 = vector.extract_strided_slice %4 {offsets = [16, 0], sizes = [8, 5], strides = [1, 1]} : vector<32x5xbf16> to vector<8x5xbf16>
    %60 = vector.extract_strided_slice %5 {offsets = [0, 16], sizes = [5, 8], strides = [1, 1]} : vector<5x32xbf16> to vector<5x8xbf16>
    %61 = vector.extract_strided_slice %8 {offsets = [0, 16], sizes = [8, 8], strides = [1, 1]} : vector<8x32xbf16> to vector<8x8xbf16>
    %cst_23 = arith.constant dense<0.000000e+00> : vector<8x5xf32>
    %62 = tpu.matmul %61, %59, %cst_23 {dimension_numbers = #tpu.dot_dimension_numbers<[1], [0], [0], [1], [0, 0, 1, 1], [], []>} : vector<8x8xbf16>, vector<8x5xbf16>, vector<8x5xf32> -> vector<8x5xf32>
    %cst_24 = arith.constant 0.353553385 : f32
    %63 = vector.broadcast %cst_24 : f32 to vector<8x5xf32>
    %64 = arith.mulf %62, %63 : vector<8x5xf32>
    %65 = arith.addf %64, %12 : vector<8x5xf32>
    %cst_25 = arith.constant dense<0xFF800000> : vector<8xf32>
    %66 = vector.multi_reduction <maximumf>, %65, %cst_25 [1] : vector<8x5xf32> to vector<8xf32>
    %67 = vector.shape_cast %66 : vector<8xf32> to vector<8x1xf32>
    %68 = vector.broadcast %67 : vector<8x1xf32> to vector<8x5xf32>
    %69 = arith.subf %65, %68 : vector<8x5xf32>
    %70 = math.exp %69 : vector<8x5xf32>
    %cst_26 = arith.constant dense<0.000000e+00> : vector<8xf32>
    %71 = vector.multi_reduction <add>, %70, %cst_26 [1] : vector<8x5xf32> to vector<8xf32>
    %72 = vector.shape_cast %71 : vector<8xf32> to vector<8x1xf32>
    %73 = tpu.reciprocal %72 {approx = true} : vector<8x1xf32> -> vector<8x1xf32>
    %74 = vector.broadcast %73 : vector<8x1xf32> to vector<8x5xf32>
    %75 = arith.mulf %70, %74 : vector<8x5xf32>
    %76 = arith.truncf %75 : vector<8x5xf32> to vector<8x5xbf16>
    %cst_27 = arith.constant dense<0.000000e+00> : vector<8x8xf32>
    %77 = tpu.matmul %76, %60, %cst_27 {dimension_numbers = #tpu.dot_dimension_numbers<[1], [0], [0], [1], [0, 0, 1, 1], [], []>} : vector<8x5xbf16>, vector<5x8xbf16>, vector<8x8xf32> -> vector<8x8xf32>
    %78 = arith.truncf %77 : vector<8x8xf32> to vector<8x8xbf16>
    %c0_28 = arith.constant 0 : index
    %c0_29 = arith.constant 0 : index
    %c16 = arith.constant 16 : index
    %79 = vector.load %arg4[%c0_28, %c0_29, %c16] : memref<1x8x32xbf16, #tpu.memory_space<vmem>>, vector<1x8x8xbf16>
    %80 = vector.shape_cast %79 : vector<1x8x8xbf16> to vector<8x8xbf16>
    %81 = vector.shape_cast %78 : vector<8x8xbf16> to vector<1x8x8xbf16>
    tpu.vector_store %arg4[%c0_28, %c0_29, %c16], %81 {strides = array<i32>} : memref<1x8x32xbf16, #tpu.memory_space<vmem>>, vector<1x8x8xbf16>,
    %82 = vector.extract_strided_slice %4 {offsets = [24, 0], sizes = [8, 5], strides = [1, 1]} : vector<32x5xbf16> to vector<8x5xbf16>
    %83 = vector.extract_strided_slice %5 {offsets = [0, 24], sizes = [5, 8], strides = [1, 1]} : vector<5x32xbf16> to vector<5x8xbf16>
    %84 = vector.extract_strided_slice %8 {offsets = [0, 24], sizes = [8, 8], strides = [1, 1]} : vector<8x32xbf16> to vector<8x8xbf16>
    %cst_30 = arith.constant dense<0.000000e+00> : vector<8x5xf32>
    %85 = tpu.matmul %84, %82, %cst_30 {dimension_numbers = #tpu.dot_dimension_numbers<[1], [0], [0], [1], [0, 0, 1, 1], [], []>} : vector<8x8xbf16>, vector<8x5xbf16>, vector<8x5xf32> -> vector<8x5xf32>
    %cst_31 = arith.constant 0.353553385 : f32
    %86 = vector.broadcast %cst_31 : f32 to vector<8x5xf32>
    %87 = arith.mulf %85, %86 : vector<8x5xf32>
    %88 = arith.addf %87, %12 : vector<8x5xf32>
    %cst_32 = arith.constant dense<0xFF800000> : vector<8xf32>
    %89 = vector.multi_reduction <maximumf>, %88, %cst_32 [1] : vector<8x5xf32> to vector<8xf32>
    %90 = vector.shape_cast %89 : vector<8xf32> to vector<8x1xf32>
    %91 = vector.broadcast %90 : vector<8x1xf32> to vector<8x5xf32>
    %92 = arith.subf %88, %91 : vector<8x5xf32>
    %93 = math.exp %92 : vector<8x5xf32>
    %cst_33 = arith.constant dense<0.000000e+00> : vector<8xf32>
    %94 = vector.multi_reduction <add>, %93, %cst_33 [1] : vector<8x5xf32> to vector<8xf32>
    %95 = vector.shape_cast %94 : vector<8xf32> to vector<8x1xf32>
    %96 = tpu.reciprocal %95 {approx = true} : vector<8x1xf32> -> vector<8x1xf32>
    %97 = vector.broadcast %96 : vector<8x1xf32> to vector<8x5xf32>
    %98 = arith.mulf %93, %97 : vector<8x5xf32>
    %99 = arith.truncf %98 : vector<8x5xf32> to vector<8x5xbf16>
    %cst_34 = arith.constant dense<0.000000e+00> : vector<8x8xf32>
    %100 = tpu.matmul %99, %83, %cst_34 {dimension_numbers = #tpu.dot_dimension_numbers<[1], [0], [0], [1], [0, 0, 1, 1], [], []>} : vector<8x5xbf16>, vector<5x8xbf16>, vector<8x8xf32> -> vector<8x8xf32>
    %101 = arith.truncf %100 : vector<8x8xf32> to vector<8x8xbf16>
    %c0_35 = arith.constant 0 : index
    %c0_36 = arith.constant 0 : index
    %c24 = arith.constant 24 : index
    %102 = vector.load %arg4[%c0_35, %c0_36, %c24] : memref<1x8x32xbf16, #tpu.memory_space<vmem>>, vector<1x8x8xbf16>
    %103 = vector.shape_cast %102 : vector<1x8x8xbf16> to vector<8x8xbf16>
    %104 = vector.shape_cast %101 : vector<8x8xbf16> to vector<1x8x8xbf16>
    tpu.vector_store %arg4[%c0_35, %c0_36, %c24], %104 {strides = array<i32>} : memref<1x8x32xbf16, #tpu.memory_space<vmem>>, vector<1x8x8xbf16>,
    return
  }
  func.func @transform_0(%arg0: i32) -> (i32, i32, i32) {
    %c0_i32 = arith.constant 0 : i32
    %c0_i32_0 = arith.constant 0 : i32
    %c0_i32_1 = arith.constant 0 : i32
    return %arg0, %c0_i32, %c0_i32_0 : i32, i32, i32
  }
  func.func @transform_1(%arg0: i32) -> (i32, i32, i32) {
    %c0_i32 = arith.constant 0 : i32
    %c0_i32_0 = arith.constant 0 : i32
    %c0_i32_1 = arith.constant 0 : i32
    return %arg0, %c0_i32, %c0_i32_0 : i32, i32, i32
  }
  func.func @transform_2(%arg0: i32) -> (i32, i32, i32) {
    %c0_i32 = arith.constant 0 : i32
    %c0_i32_0 = arith.constant 0 : i32
    %c0_i32_1 = arith.constant 0 : i32
    return %arg0, %c0_i32, %c0_i32_0 : i32, i32, i32
  }
  func.func @transform_3(%arg0: i32) -> (i32, i32, i32) {
    %c0_i32 = arith.constant 0 : i32
    %c0_i32_0 = arith.constant 0 : i32
    %c0_i32_1 = arith.constant 0 : i32
    return %arg0, %c0_i32, %c0_i32_0 : i32, i32, i32
  }
}

module attributes {stable_mosaic.version = 11 : i64} {
  func.func @_out_mlp_kernel(%arg0: i32, %arg1: memref<16x32xbf16, #tpu.memory_space<vmem>>, %arg2: memref<16x32xf32, #tpu.memory_space<vmem>>, %arg3: memref<32x32xbf16, #tpu.memory_space<vmem>>, %arg4: memref<1x32xf32, #tpu.memory_space<vmem>>, %arg5: memref<1x32xf32, #tpu.memory_space<vmem>>, %arg6: memref<1x32xf32, #tpu.memory_space<vmem>>, %arg7: memref<32x128xbf16, #tpu.memory_space<vmem>>, %arg8: memref<1x128xf32, #tpu.memory_space<vmem>>, %arg9: memref<128x32xbf16, #tpu.memory_space<vmem>>, %arg10: memref<1x32xf32, #tpu.memory_space<vmem>>, %arg11: memref<16x32xf32, #tpu.memory_space<vmem>>) attributes {dimension_semantics = [#tpu.dimension_semantics<parallel>], iteration_bounds = array<i64: 1>, scalar_prefetch = 0 : i64, scratch_operands = 0 : i64, tpu.core_type = #tpu.core_type<tc>, window_params = [{transform_indices = @transform_0, window_bounds = array<i64: 16, 32>}, {transform_indices = @transform_1, window_bounds = array<i64: 16, 32>}, {pipeline_mode = #tpu.pipeline_mode<synchronous>, transform_indices = @transform_2, window_bounds = array<i64: 32, 32>}, {pipeline_mode = #tpu.pipeline_mode<synchronous>, transform_indices = @transform_3, window_bounds = array<i64: 1, 32>}, {pipeline_mode = #tpu.pipeline_mode<synchronous>, transform_indices = @transform_4, window_bounds = array<i64: 1, 32>}, {pipeline_mode = #tpu.pipeline_mode<synchronous>, transform_indices = @transform_5, window_bounds = array<i64: 1, 32>}, {pipeline_mode = #tpu.pipeline_mode<synchronous>, transform_indices = @transform_6, window_bounds = array<i64: 32, 128>}, {pipeline_mode = #tpu.pipeline_mode<synchronous>, transform_indices = @transform_7, window_bounds = array<i64: 1, 128>}, {pipeline_mode = #tpu.pipeline_mode<synchronous>, transform_indices = @transform_8, window_bounds = array<i64: 128, 32>}, {pipeline_mode = #tpu.pipeline_mode<synchronous>, transform_indices = @transform_9, window_bounds = array<i64: 1, 32>}, {transform_indices = @transform_10, window_bounds = array<i64: 16, 32>}]} {
    %c0 = arith.constant 0 : index
    %c0_0 = arith.constant 0 : index
    %0 = vector.load %arg1[%c0, %c0_0] : memref<16x32xbf16, #tpu.memory_space<vmem>>, vector<16x32xbf16>
    %c0_1 = arith.constant 0 : index
    %c0_2 = arith.constant 0 : index
    %1 = vector.load %arg3[%c0_1, %c0_2] : memref<32x32xbf16, #tpu.memory_space<vmem>>, vector<32x32xbf16>
    %cst = arith.constant dense<0.000000e+00> : vector<16x32xf32>
    %2 = tpu.matmul %0, %1, %cst {dimension_numbers = #tpu.dot_dimension_numbers<[1], [0], [0], [1], [0, 0, 1, 1], [], []>} : vector<16x32xbf16>, vector<32x32xbf16>, vector<16x32xf32> -> vector<16x32xf32>
    %c0_3 = arith.constant 0 : index
    %c0_4 = arith.constant 0 : index
    %3 = vector.load %arg4[%c0_3, %c0_4] : memref<1x32xf32, #tpu.memory_space<vmem>>, vector<1x32xf32>
    %4 = vector.broadcast %3 : vector<1x32xf32> to vector<16x32xf32>
    %5 = arith.addf %2, %4 : vector<16x32xf32>
    %c0_5 = arith.constant 0 : index
    %c0_6 = arith.constant 0 : index
    %6 = vector.load %arg2[%c0_5, %c0_6] : memref<16x32xf32, #tpu.memory_space<vmem>>, vector<16x32xf32>
    %7 = arith.addf %6, %5 : vector<16x32xf32>
    %c0_7 = arith.constant 0 : index
    %c0_8 = arith.constant 0 : index
    %8 = vector.load %arg5[%c0_7, %c0_8] : memref<1x32xf32, #tpu.memory_space<vmem>>, vector<1x32xf32>
    %c0_9 = arith.constant 0 : index
    %c0_10 = arith.constant 0 : index
    %9 = vector.load %arg6[%c0_9, %c0_10] : memref<1x32xf32, #tpu.memory_space<vmem>>, vector<1x32xf32>
    %cst_11 = arith.constant dense<0.000000e+00> : vector<16xf32>
    %10 = vector.multi_reduction <add>, %7, %cst_11 [1] : vector<16x32xf32> to vector<16xf32>
    %11 = vector.shape_cast %10 : vector<16xf32> to vector<16x1xf32>
    %cst_12 = arith.constant 3.200000e+01 : f32
    %12 = vector.broadcast %cst_12 : f32 to vector<16x1xf32>
    %13 = arith.divf %11, %12 : vector<16x1xf32>
    %14 = vector.broadcast %13 : vector<16x1xf32> to vector<16x32xf32>
    %15 = arith.subf %7, %14 : vector<16x32xf32>
    %16 = arith.mulf %15, %15 : vector<16x32xf32>
    %cst_13 = arith.constant dense<0.000000e+00> : vector<16xf32>
    %17 = vector.multi_reduction <add>, %16, %cst_13 [1] : vector<16x32xf32> to vector<16xf32>
    %18 = vector.shape_cast %17 : vector<16xf32> to vector<16x1xf32>
    %cst_14 = arith.constant 3.200000e+01 : f32
    %19 = vector.broadcast %cst_14 : f32 to vector<16x1xf32>
    %20 = arith.divf %18, %19 : vector<16x1xf32>
    %21 = vector.broadcast %13 : vector<16x1xf32> to vector<16x32xf32>
    %22 = arith.subf %7, %21 : vector<16x32xf32>
    %cst_15 = arith.constant 9.99999974E-6 : f32
    %23 = vector.broadcast %cst_15 : f32 to vector<16x1xf32>
    %24 = arith.addf %20, %23 : vector<16x1xf32>
    %25 = math.rsqrt %24 : vector<16x1xf32>
    %26 = vector.broadcast %25 : vector<16x1xf32> to vector<16x32xf32>
    %27 = arith.mulf %22, %26 : vector<16x32xf32>
    %28 = vector.broadcast %8 : vector<1x32xf32> to vector<16x32xf32>
    %29 = arith.mulf %27, %28 : vector<16x32xf32>
    %30 = vector.broadcast %9 : vector<1x32xf32> to vector<16x32xf32>
    %31 = arith.addf %29, %30 : vector<16x32xf32>
    %32 = arith.truncf %31 : vector<16x32xf32> to vector<16x32xbf16>
    %c0_16 = arith.constant 0 : index
    %c0_17 = arith.constant 0 : index
    %33 = vector.load %arg7[%c0_16, %c0_17] : memref<32x128xbf16, #tpu.memory_space<vmem>>, vector<32x128xbf16>
    %cst_18 = arith.constant dense<0.000000e+00> : vector<16x128xf32>
    %34 = tpu.matmul %32, %33, %cst_18 {dimension_numbers = #tpu.dot_dimension_numbers<[1], [0], [0], [1], [0, 0, 1, 1], [], []>} : vector<16x32xbf16>, vector<32x128xbf16>, vector<16x128xf32> -> vector<16x128xf32>
    %c0_19 = arith.constant 0 : index
    %c0_20 = arith.constant 0 : index
    %35 = vector.load %arg8[%c0_19, %c0_20] : memref<1x128xf32, #tpu.memory_space<vmem>>, vector<1x128xf32>
    %36 = vector.broadcast %35 : vector<1x128xf32> to vector<16x128xf32>
    %37 = arith.addf %34, %36 : vector<16x128xf32>
    %cst_21 = arith.constant -1.702000e+00 : f32
    %38 = vector.broadcast %cst_21 : f32 to vector<16x128xf32>
    %39 = arith.mulf %38, %37 : vector<16x128xf32>
    %40 = math.exp %39 : vector<16x128xf32>
    %cst_22 = arith.constant 1.000000e+00 : f32
    %41 = vector.broadcast %cst_22 : f32 to vector<16x128xf32>
    %42 = arith.addf %41, %40 : vector<16x128xf32>
    %43 = tpu.reciprocal %42 {approx = true} : vector<16x128xf32> -> vector<16x128xf32>
    %44 = arith.mulf %37, %43 : vector<16x128xf32>
    %45 = arith.truncf %44 : vector<16x128xf32> to vector<16x128xbf16>
    %c0_23 = arith.constant 0 : index
    %c0_24 = arith.constant 0 : index
    %46 = vector.load %arg9[%c0_23, %c0_24] : memref<128x32xbf16, #tpu.memory_space<vmem>>, vector<128x32xbf16>
    %cst_25 = arith.constant dense<0.000000e+00> : vector<16x32xf32>
    %47 = tpu.matmul %45, %46, %cst_25 {dimension_numbers = #tpu.dot_dimension_numbers<[1], [0], [0], [1], [0, 0, 1, 1], [], []>} : vector<16x128xbf16>, vector<128x32xbf16>, vector<16x32xf32> -> vector<16x32xf32>
    %c0_26 = arith.constant 0 : index
    %c0_27 = arith.constant 0 : index
    %48 = vector.load %arg10[%c0_26, %c0_27] : memref<1x32xf32, #tpu.memory_space<vmem>>, vector<1x32xf32>
    %49 = vector.broadcast %48 : vector<1x32xf32> to vector<16x32xf32>
    %50 = arith.addf %47, %49 : vector<16x32xf32>
    %51 = arith.addf %7, %50 : vector<16x32xf32>
    %c0_28 = arith.constant 0 : index
    %c0_29 = arith.constant 0 : index
    %52 = vector.load %arg11[%c0_28, %c0_29] : memref<16x32xf32, #tpu.memory_space<vmem>>, vector<16x32xf32>
    tpu.vector_store %arg11[%c0_28, %c0_29], %51 {strides = array<i32>} : memref<16x32xf32, #tpu.memory_space<vmem>>, vector<16x32xf32>,
    return
  }
  func.func @transform_0(%arg0: i32) -> (i32, i32) {
    %c0_i32 = arith.constant 0 : i32
    %c0_i32_0 = arith.constant 0 : i32
    return %arg0, %c0_i32 : i32, i32
  }
  func.func @transform_1(%arg0: i32) -> (i32, i32) {
    %c0_i32 = arith.constant 0 : i32
    %c0_i32_0 = arith.constant 0 : i32
    return %arg0, %c0_i32 : i32, i32
  }
  func.func @transform_2(%arg0: i32) -> (i32, i32) {
    %c0_i32 = arith.constant 0 : i32
    %c0_i32_0 = arith.constant 0 : i32
    %c0_i32_1 = arith.constant 0 : i32
    return %c0_i32, %c0_i32_0 : i32, i32
  }
  func.func @transform_3(%arg0: i32) -> (i32, i32) {
    %c0_i32 = arith.constant 0 : i32
    %c0_i32_0 = arith.constant 0 : i32
    %c0_i32_1 = arith.constant 0 : i32
    return %c0_i32, %c0_i32_0 : i32, i32
  }
  func.func @transform_4(%arg0: i32) -> (i32, i32) {
    %c0_i32 = arith.constant 0 : i32
    %c0_i32_0 = arith.constant 0 : i32
    %c0_i32_1 = arith.constant 0 : i32
    return %c0_i32, %c0_i32_0 : i32, i32
  }
  func.func @transform_5(%arg0: i32) -> (i32, i32) {
    %c0_i32 = arith.constant 0 : i32
    %c0_i32_0 = arith.constant 0 : i32
    %c0_i32_1 = arith.constant 0 : i32
    return %c0_i32, %c0_i32_0 : i32, i32
  }
  func.func @transform_6(%arg0: i32) -> (i32, i32) {
    %c0_i32 = arith.constant 0 : i32
    %c0_i32_0 = arith.constant 0 : i32
    %c0_i32_1 = arith.constant 0 : i32
    return %c0_i32, %c0_i32_0 : i32, i32
  }
  func.func @transform_7(%arg0: i32) -> (i32, i32) {
    %c0_i32 = arith.constant 0 : i32
    %c0_i32_0 = arith.constant 0 : i32
    %c0_i32_1 = arith.constant 0 : i32
    return %c0_i32, %c0_i32_0 : i32, i32
  }
  func.func @transform_8(%arg0: i32) -> (i32, i32) {
    %c0_i32 = arith.constant 0 : i32
    %c0_i32_0 = arith.constant 0 : i32
    %c0_i32_1 = arith.constant 0 : i32
    return %c0_i32, %c0_i32_0 : i32, i32
  }
  func.func @transform_9(%arg0: i32) -> (i32, i32) {
    %c0_i32 = arith.constant 0 : i32
    %c0_i32_0 = arith.constant 0 : i32
    %c0_i32_1 = arith.constant 0 : i32
    return %c0_i32, %c0_i32_0 : i32, i32
  }
  func.func @transform_10(%arg0: i32) -> (i32, i32) {
    %c0_i32 = arith.constant 0 : i32
    %c0_i32_0 = arith.constant 0 : i32
    return %arg0, %c0_i32 : i32, i32
  }
}

</mosaic_0001>

<bundles_post_ra>
// kernel: residual_attention_block.5
= control target key start
LH: loop header
LB: loop body
LE: loop exit
PB: predicated region body
PF: predicated region fallthrough
CT: control target
= control target key end

     0   :  { %vm24_vm0 = vcmask 259072   ;;  %v151_v7 = vmov 0.0   ;;  %vm152_vm1 = vmmov 0   ;;  %vm77_vm2 = vcmask 261120   ;;  %s204_s0 = inlined_call_operand.vmem [shape: f32[6,32], index: 0, kind: input, shape index: {}]   ;;  %s205_s3 = inlined_call_operand.vmem [shape: bf16[32,32], index: 3, kind: input, shape index: {}]   ;;  %s206_s1 = inlined_call_operand.vmem [shape: f32[1,32], index: 1, kind: input, shape index: {}]   ;;  %s207_s2 = inlined_call_operand.vmem [shape: f32[1,32], index: 2, kind: input, shape index: {}]   ;;  %s208_s4 = inlined_call_operand.vmem [shape: f32[1,32], index: 4, kind: input, shape index: {}]   ;;  %s209_s5 = inlined_call_operand.vmem [shape: bf16[6,32], index: 5, kind: output, shape index: {}]  }
   0x1   :  { %v21_v0 = vld [vmem:[%s204_s0] sm:$0x3f]  ;;  %137 = vmatprep.subr.bf16.mxu0 %v151_v7  ;;  %v147_v8 = vld [vmem:[%s205_s3 + $0x8] sm:$0xff]   ;;  %141 = vmatprep.mubr.msk.bf16.mxu0 %vm152_vm1, %v151_v7  ;;  %vm122_vm3 = vcmask 256000  }
   0x2   :  { %v25_v1 = vsel %vm24_vm0, %v21_v0, 0.0  ;;  %138 = vmatpush3.bf16.msra.mxu0 %v147_v8  ;;  %v148_v9 = vld [vmem:[%s205_s3] sm:$0xff]  }
   0x3   :  { %26 = vadd.xlane.f32.xlu0 %v25_v1  ;;  %139 = vmatprep.subr.bf16.mxu0 %v151_v7  ;;  %v128_v14 = vld [vmem:[%s206_s1] ss:$0 sm:$0xff] }
   0x4   :  { %v129_v16 = vld [vmem:[%s207_s2] ss:$0 sm:$0xff] }
   0x5   :  { %v130_v20 = vld [vmem:[%s208_s4] ss:$0 sm:$0xff] }
   0x6   :  { %140 = vmatpush3.bf16.msra.mxu0 %v148_v9 }
  0x8c   :  { %v27_v2 = vpop.xlane.xlu0 %26 }
  0x8d   :  { %v29_v3 = vmul.f32 0.03125, %v27_v2 }
  0x8f   :  { %v30_v4 = vsub.f32 %v21_v0, %v29_v3 }
  0x91   :  { %v31_v5 = vmul.f32 %v30_v4, %v30_v4 }
  0x93   :  { %v32_v6 = vsel %vm24_vm0, %v31_v5, 0.0 }
  0x94   :  { %33 = vadd.xlane.f32.xlu0 %v32_v6 }
 0x11d   :  { %v34_v10 = vpop.xlane.xlu0 %33 }
 0x11e   :  { %v35_v11 = vmul.f32 0.03125, %v34_v10 }
 0x120   :  { %v36_v12 = vadd.f32 1e-05, %v35_v11 }
 0x122   :  { %149 = vrsqrt.f32 %v36_v12 }
 0x12f   :  { %v150_v13 = vpop.eup %149 }
 0x130   :  { %v38_v15 = vmul.f32 %v150_v13, %v30_v4 }
 0x132   :  { %v45_v17 = vmul.f32 %v128_v14, %v38_v15 }
 0x134   :  { %v52_v18 = vadd.f32 %v129_v16, %v45_v17 }
 0x136   :  { %v53_v19 = vpack.c.bf16 %v52_v18, %v52_v18 }
 0x138   :  { %142 = vmatmul.mubr.msk.bf16.vlgmr.msra.gmra.mxu0 %vm77_vm2, %v53_v19 }
 0x1f8   :  { %v115_v21 = vpop.f32.mrf.mxu0 }
 0x1f9   :  { %v116_v22 = vadd.f32 %v130_v20, %v115_v21 }
 0x1fa   :  { %v143_v23 = vpop.f32.mrf.mxu0 }
 0x1fb   :  { %v121_v24 = vpack.c.bf16 %v116_v22, %v116_v22 }
 0x1fc   :  { %v118_v25 = vpop.f32.mrf.mxu0 }
 0x1fd   :  { %123 = vst.msk [vmem:[%s209_s5] sm:$0x7] %vm122_vm3, %v121_v24 }
 0x1fe   :  { %v144_v26 = vpop.f32.mrf.mxu0 }

// kernel: residual_attention_block.4
= control target key start
LH: loop header
LB: loop body
LE: loop exit
PB: predicated region body
PF: predicated region fallthrough
CT: control target
= control target key end

     0   :  { %vm25_vm0 = vcmask 261120   ;;  %vm29_vm1 = vcmask 254976   ;;  %v183_v14 = vmov 0.0   ;;  %vm184_vm2 = vmmov 0   ;;  %s245_s0 = inlined_call_operand.vmem [shape: f32[10,32], index: 0, kind: input, shape index: {}]   ;;  %s246_s3 = inlined_call_operand.vmem [shape: bf16[32,96], index: 3, kind: input, shape index: {}]   ;;  %s247_s1 = inlined_call_operand.vmem [shape: f32[1,32], index: 1, kind: input, shape index: {}]   ;;  %s248_s2 = inlined_call_operand.vmem [shape: f32[1,32], index: 2, kind: input, shape index: {}]   ;;  %s249_s4 = inlined_call_operand.vmem [shape: f32[1,96], index: 4, kind: input, shape index: {}]   ;;  %s250_s5 = inlined_call_operand.vmem [shape: bf16[10,96], index: 5, kind: output, shape index: {}]  }
   0x1   :  { %v21_v0 = vld [vmem:[%s245_s0] sm:$0xff]  ;;  %v22_v1 = vld [vmem:[%s245_s0 + $0x8] sm:$0x3]  ;;  %167 = vmatprep.subr.bf16.mxu0 %v183_v14  ;;  %171 = vmatprep.mubr.msk.bf16.mxu0 %vm184_vm2, %v183_v14  ;;  %vm146_vm3 = vcmask 781312   ;;  %vm148_vm4 = vcmask 778240  }
   0x2   :  { %v26_v2 = vsel %vm25_vm0, %v21_v0, 0.0  ;;  %v30_v3 = vsel %vm29_vm1, %v22_v1, 0.0  ;;  %v177_v15 = vld [vmem:[%s246_s3 + $0x8] sm:$0xff]   ;;  %v178_v16 = vld [vmem:[%s246_s3] sm:$0xff]  }
   0x3   :  { %27 = vadd.xlane.f32.xlu0 %v26_v2  ;;  %168 = vmatpush3.bf16.msra.mxu0 %v177_v15  ;;  %v154_v25 = vld [vmem:[%s247_s1] ss:$0 sm:$0xff] }
   0x4   :  { %169 = vmatprep.subr.bf16.mxu0 %v183_v14  ;;  %v155_v29 = vld [vmem:[%s248_s2] ss:$0 sm:$0xff] }
   0x5   :  { %v156_v34 = vld [vmem:[%s249_s4] ss:$0 sm:$0xff] }
   0x7   :  { %31 = vadd.xlane.f32.xlu0 %v30_v3  ;;  %170 = vmatpush3.bf16.msra.mxu0 %v178_v16 }
  0x8c   :  { %v28_v4 = vpop.xlane.xlu0 %27 }
  0x8d   :  { %v34_v5 = vmul.f32 0.03125, %v28_v4 }
  0x8f   :  { %v36_v6 = vsub.f32 %v21_v0, %v34_v5 }
  0x90   :  { %v32_v7 = vpop.xlane.xlu0 %31 }
  0x91   :  { %v35_v8 = vmul.f32 0.03125, %v32_v7  ;;  %v38_v9 = vmul.f32 %v36_v6, %v36_v6 }
  0x93   :  { %v37_v10 = vsub.f32 %v22_v1, %v35_v8  ;;  %v40_v11 = vsel %vm25_vm0, %v38_v9, 0.0 }
  0x94   :  { %41 = vadd.xlane.f32.xlu1 %v40_v11 }
  0x95   :  { %v39_v12 = vmul.f32 %v37_v10, %v37_v10 }
  0x97   :  { %v43_v13 = vsel %vm29_vm1, %v39_v12, 0.0 }
  0x98   :  { %44 = vadd.xlane.f32.xlu1 %v43_v13 }
 0x11d   :  { %v42_v17 = vpop.xlane.xlu1 %41 }
 0x11e   :  { %v46_v18 = vmul.f32 0.03125, %v42_v17 }
 0x120   :  { %v48_v19 = vadd.f32 1e-05, %v46_v18 }
 0x121   :  { %v45_v20 = vpop.xlane.xlu1 %44 }
 0x122   :  { %179 = vrsqrt.f32 %v48_v19  ;;  %v47_v21 = vmul.f32 0.03125, %v45_v20 }
 0x124   :  { %v49_v22 = vadd.f32 1e-05, %v47_v21 }
 0x126   :  { %181 = vrsqrt.f32 %v49_v22 }
 0x12f   :  { %v180_v23 = vpop.eup %179 }
 0x130   :  { %v52_v24 = vmul.f32 %v180_v23, %v36_v6 }
 0x132   :  { %v60_v28 = vmul.f32 %v154_v25, %v52_v24 }
 0x133   :  { %v182_v26 = vpop.eup %181 }
 0x134   :  { %v53_v27 = vmul.f32 %v182_v26, %v37_v10  ;;  %v68_v31 = vadd.f32 %v155_v29, %v60_v28 }
 0x136   :  { %v61_v30 = vmul.f32 %v154_v25, %v53_v27 }
 0x138   :  { %v69_v32 = vadd.f32 %v155_v29, %v61_v30 }
 0x13a   :  { %v70_v33 = vpack.c.bf16 %v69_v32, %v68_v31 }
 0x13c   :  { %172 = vmatmul.mubr.msk.bf16.vlgmr.msra.gmra.mxu0 %vm25_vm0, %v70_v33 }
 0x1fc   :  { %v131_v35 = vpop.f32.mrf.mxu0 }
 0x1fd   :  { %v132_v36 = vadd.f32 %v156_v34, %v131_v35 }
 0x1fe   :  { %v173_v37 = vpop.f32.mrf.mxu0 }
 0x1ff   :  { %v162_v38 = vpack.c.bf16 %v132_v36, %v132_v36 }
 0x200   :  { %v134_v39 = vpop.f32.mrf.mxu0 }
 0x201   :  { %147 = vst.msk [vmem:[%s250_s5] sm:$0xf] %vm146_vm3, %v162_v38  ;;  %v135_v40 = vadd.f32 %v156_v34, %v134_v39 }
 0x202   :  { %v174_v41 = vpop.f32.mrf.mxu0 }
 0x203   :  { %v163_v42 = vpack.c.bf16 %v135_v40, %v135_v40 }
 0x205   :  { %149 = vst.msk [vmem:[%s250_s5 + $0x4] sm:$0x1] %vm148_vm4, %v163_v42 }

// kernel: residual_attention_block.7
= control target key start
LH: loop header
LB: loop body
LE: loop exit
PB: predicated region body
PF: predicated region fallthrough
CT: control target
= control target key end

     0   :  { %v459_v0 = vmov 0.0   ;;  %vm460_vm0 = vmmov 0   ;;  %vm66_vm1 = vcmask 261120   ;;  %s615_s2 = inlined_call_operand.vmem [shape: bf16[32,32], index: 2, kind: input, shape index: {}]   ;;  %s616_s0 = inlined_call_operand.vmem [shape: bf16[16,32], index: 0, kind: input, shape index: {}]   ;;  %s617_s3 = inlined_call_operand.vmem [shape: f32[1,32], index: 3, kind: input, shape index: {}]   ;;  %s618_s1 = inlined_call_operand.vmem [shape: f32[16,32], index: 1, kind: input, shape index: {}, may-alias: {1,10}]   ;;  %s619_s6 = inlined_call_operand.vmem [shape: bf16[32,128], index: 6, kind: input, shape index: {}]   ;;  %s620_s4 = inlined_call_operand.vmem [shape: f32[1,32], index: 4, kind: input, shape index: {}]   ;;  %s621_s5 = inlined_call_operand.vmem [shape: f32[1,32], index: 5, kind: input, shape index: {}]   ;;  %s622_s8 = inlined_call_operand.vmem [shape: bf16[128,32], index: 8, kind: input, shape index: {}]   ;;  %s623_s7 = inlined_call_operand.vmem [shape: f32[1,128], index: 7, kind: input, shape index: {}]   ;;  %s624_s9 = inlined_call_operand.vmem [shape: f32[1,32], index: 9, kind: input, shape index: {}]   ;;  %s625_s10 = inlined_call_operand.vmem [shape: f32[16,32], index: 10, kind: output, shape index: {}, may-alias: {1,10}]  }
   0x1   :  { %396 = vmatprep.subr.bf16.mxu1 %v459_v0  ;;  %v434_v1 = vld [vmem:[%s615_s2 + $0x8] sm:$0xff]   ;;  %400 = vmatprep.mubr.msk.bf16.mxu1 %vm460_vm0, %v459_v0  ;;  %v435_v2 = vld [vmem:[%s615_s2] sm:$0xff]   ;;  %v439_v46 = vld [vmem:[%s622_s8 + $0x38] sm:$0xff]  }
   0x2   :  { %412 = vmatprep.subr.bf16.mxu0 %v459_v0  ;;  %428 = vmatprep.mubr.msk.bf16.mxu0 %vm460_vm0, %v459_v0  ;;  %v436_v3 = vld [vmem:[%s616_s0] sm:$0xff]   ;;  %v112_v11 = vld [vmem:[%s618_s1 + $0x8] sm:$0xff]  ;;  %v440_v47 = vld [vmem:[%s622_s8 + $0x30] sm:$0xff]  }
   0x3   :  { %397 = vmatpush3.bf16.msra.mxu1 %v434_v1  ;;  %v361_v4 = vld [vmem:[%s617_s3] ss:$0 sm:$0xff]  ;;  %v437_v27 = vld [vmem:[%s619_s6 + $0x8] sm:$0xff]   ;;  %413 = vmatpush3.bf16.msra.mxu0 %v439_v46  ;;  %v443_v50 = vld [vmem:[%s622_s8 + $0x18] sm:$0xff]  }
   0x4   :  { %398 = vmatprep.subr.bf16.mxu1 %v459_v0  ;;  %v111_v6 = vld [vmem:[%s618_s1] sm:$0xff]  ;;  %414 = vmatprep.subr.bf16.mxu0 %v459_v0  ;;  %v441_v48 = vld [vmem:[%s622_s8 + $0x28] sm:$0xff]   ;;  %v444_v51 = vld [vmem:[%s622_s8 + $0x10] sm:$0xff]  }
   0x5   :  { %v438_v28 = vld [vmem:[%s619_s6] sm:$0xff]   ;;  %v445_v52 = vld [vmem:[%s622_s8 + $0x8] sm:$0xff]  }
   0x6   :  { %v366_v37 = vld [vmem:[%s620_s4] ss:$0 sm:$0xff] }
   0x7   :  { %399 = vmatpush3.bf16.msra.mxu1 %v435_v2  ;;  %v367_v41 = vld [vmem:[%s621_s5] ss:$0 sm:$0xff]  ;;  %415 = vmatpush3.bf16.msra.mxu0 %v440_v47 }
   0x8   :  { %404 = vmatprep.subr.bf16.mxu1 %v459_v0  ;;  %416 = vmatprep.subr.bf16.mxu0 %v459_v0  ;;  %v442_v49 = vld [vmem:[%s622_s8 + $0x20] sm:$0xff]  }
   0x9   :  { %v446_v53 = vld [vmem:[%s622_s8] sm:$0xff]  }
   0xa   :  { %401 = vmatmul.mubr.msk.bf16.vlgmr.msra.gmra.mxu1 %vm66_vm1, %v436_v3  ;;  %v368_v54 = vld [vmem:[%s623_s7] ss:$0 sm:$0xff] }
   0xb   :  { %408 = vmatprep.mubr.msk.bf16.mxu1 %vm460_vm0, %v459_v0  ;;  %405 = vmatpush3.bf16.msra.mxu1 %v437_v27 }
   0xc   :  { %406 = vmatprep.subr.bf16.mxu1 %v459_v0  ;;  %417 = vmatpush3.bf16.msra.mxu0 %v441_v48 }
   0xd   :  { %418 = vmatprep.subr.bf16.mxu0 %v459_v0 }
   0xf   :  { %407 = vmatpush3.bf16.msra.mxu1 %v438_v28 }
  0x10   :  { %419 = vmatpush3.bf16.msra.mxu0 %v442_v49 }
  0x11   :  { %420 = vmatprep.subr.bf16.mxu0 %v459_v0 }
  0x14   :  { %421 = vmatpush3.bf16.msra.mxu0 %v443_v50 }
  0x15   :  { %422 = vmatprep.subr.bf16.mxu0 %v459_v0 }
  0x18   :  { %423 = vmatpush3.bf16.msra.mxu0 %v444_v51 }
  0x19   :  { %424 = vmatprep.subr.bf16.mxu0 %v459_v0 }
  0x1c   :  { %425 = vmatpush3.bf16.msra.mxu0 %v445_v52 }
  0x1d   :  { %426 = vmatprep.subr.bf16.mxu0 %v459_v0 }
  0x20   :  { %427 = vmatpush3.bf16.msra.mxu0 %v446_v53 }
  0xca   :  { %v104_v5 = vpop.f32.mrf.mxu1 }
  0xcb   :  { %v105_v7 = vadd.f32 %v361_v4, %v104_v5 }
  0xcc   :  { %v402_v8 = vpop.f32.mrf.mxu1 }
  0xcd   :  { %v539_v9 = vadd.f32 %v111_v6, %v105_v7 }
  0xce   :  { %v107_v10 = vpop.f32.mrf.mxu1 }
  0xcf   :  { %v108_v12 = vadd.f32 %v361_v4, %v107_v10  ;;  %v117_v13 = vsel %vm66_vm1, %v539_v9, 0.0 }
  0xd0   :  { %118 = vadd.xlane.f32.xlu0 %v117_v13  ;;  %v403_v14 = vpop.f32.mrf.mxu1 }
  0xd1   :  { %v546_v15 = vadd.f32 %v112_v11, %v108_v12  ;;  %v372_v11 = vld [vmem:[%s624_s9] ss:$0 sm:$0xff] }
  0xd3   :  { %v120_v16 = vsel %vm66_vm1, %v546_v15, 0.0 }
  0xd4   :  { %121 = vadd.xlane.f32.xlu0 %v120_v16 }
 0x159   :  { %v119_v17 = vpop.xlane.xlu0 %118 }
 0x15a   :  { %v124_v18 = vmul.f32 0.03125, %v119_v17 }
 0x15c   :  { %v126_v19 = vsub.f32 %v539_v9, %v124_v18 }
 0x15d   :  { %v122_v20 = vpop.xlane.xlu0 %121 }
 0x15e   :  { %v125_v21 = vmul.f32 0.03125, %v122_v20  ;;  %v128_v22 = vmul.f32 %v126_v19, %v126_v19 }
 0x160   :  { %v127_v23 = vsub.f32 %v546_v15, %v125_v21  ;;  %v130_v24 = vsel %vm66_vm1, %v128_v22, 0.0 }
 0x161   :  { %131 = vadd.xlane.f32.xlu1 %v130_v24 }
 0x162   :  { %v129_v25 = vmul.f32 %v127_v23, %v127_v23 }
 0x164   :  { %v133_v26 = vsel %vm66_vm1, %v129_v25, 0.0 }
 0x165   :  { %134 = vadd.xlane.f32.xlu1 %v133_v26 }
 0x1ea   :  { %v132_v29 = vpop.xlane.xlu1 %131 }
 0x1eb   :  { %v136_v30 = vmul.f32 0.03125, %v132_v29 }
 0x1ed   :  { %v138_v31 = vadd.f32 1e-05, %v136_v30 }
 0x1ee   :  { %v135_v32 = vpop.xlane.xlu1 %134 }
 0x1ef   :  { %447 = vrsqrt.f32 %v138_v31  ;;  %v137_v33 = vmul.f32 0.03125, %v135_v32 }
 0x1f1   :  { %v139_v34 = vadd.f32 1e-05, %v137_v33 }
 0x1f3   :  { %449 = vrsqrt.f32 %v139_v34 }
 0x1fc   :  { %v448_v35 = vpop.eup %447 }
 0x1fd   :  { %v142_v36 = vmul.f32 %v448_v35, %v126_v19 }
 0x1ff   :  { %v150_v40 = vmul.f32 %v366_v37, %v142_v36 }
 0x200   :  { %v450_v38 = vpop.eup %449 }
 0x201   :  { %v143_v39 = vmul.f32 %v450_v38, %v127_v23  ;;  %v158_v43 = vadd.f32 %v367_v41, %v150_v40 }
 0x203   :  { %v151_v42 = vmul.f32 %v366_v37, %v143_v39 }
 0x205   :  { %v159_v44 = vadd.f32 %v367_v41, %v151_v42 }
 0x207   :  { %v160_v45 = vpack.c.bf16 %v159_v44, %v158_v43 }
 0x209   :  { %409 = vmatmul.mubr.msk.bf16.vlgmr.msra.gmra.mxu1 %vm66_vm1, %v160_v45 }
 0x2c9   :  { %v221_v55 = vpop.f32.mrf.mxu1 }
 0x2ca   :  { %v222_v56 = vadd.f32 %v368_v54, %v221_v55 }
 0x2cb   :  { %v410_v57 = vpop.f32.mrf.mxu1 }
 0x2cc   :  { %v228_v58 = vmul.f32 -1.702, %v222_v56 }
 0x2cd   :  { %v224_v59 = vpop.f32.mrf.mxu1 }
 0x2ce   :  { %v230_v60 = vmul.f32 1.442695, %v228_v58  ;;  %v225_v61 = vadd.f32 %v368_v54, %v224_v59 }
 0x2cf   :  { %v411_v62 = vpop.f32.mrf.mxu1 }
 0x2d0   :  { %451 = vpow2.f32 %v230_v60  ;;  %v229_v63 = vmul.f32 -1.702, %v225_v61 }
 0x2d2   :  { %v232_v0 = vmul.f32 1.442695, %v229_v63 }
 0x2d4   :  { %453 = vpow2.f32 %v232_v0 }
 0x2dd   :  { %v452_v1 = vpop.eup %451 }
 0x2de   :  { %v234_v2 = vadd.f32 1.0, %v452_v1 }
 0x2e0   :  { %455 = vrcp.f32 %v234_v2 }
 0x2e1   :  { %v454_v3 = vpop.eup %453 }
 0x2e2   :  { %v235_v4 = vadd.f32 1.0, %v454_v3 }
 0x2e4   :  { %457 = vrcp.f32 %v235_v4 }
 0x2ed   :  { %v456_v5 = vpop.eup %455 }
 0x2ee   :  { %v238_v7 = vmul.f32 %v456_v5, %v222_v56 }
 0x2f1   :  { %v458_v6 = vpop.eup %457 }
 0x2f2   :  { %v239_v8 = vmul.f32 %v458_v6, %v225_v61 }
 0x2f4   :  { %v240_v10 = vpack.c.bf16 %v239_v8, %v238_v7 }
 0x2f6   :  { %429 = vmatmul.mubr.bf16.vlgmr.msra.gmra.mxu0 %v240_v10 }
 0x3b6   :  { %v346_v12 = vpop.f32.mrf.mxu0 }
 0x3b7   :  { %v347_v13 = vadd.f32 %v372_v11, %v346_v12 }
 0x3b8   :  { %v430_v14 = vpop.f32.mrf.mxu0 }
 0x3b9   :  { %v353_v16 = vadd.f32 %v347_v13, %v539_v9 }
 0x3ba   :  { %v349_v17 = vpop.f32.mrf.mxu0 }
 0x3bb   :  { %355 = vst.msk [vmem:[%s625_s10] sm:$0xff] %vm66_vm1, %v353_v16  ;;  %v350_v18 = vadd.f32 %v372_v11, %v349_v17 }
 0x3bc   :  { %v431_v19 = vpop.f32.mrf.mxu0 }
 0x3bd   :  { %v354_v20 = vadd.f32 %v350_v18, %v546_v15 }
 0x3bf   :  { %356 = vst.msk [vmem:[%s625_s10 + $0x8] sm:$0xff] %vm66_vm1, %v354_v20 }

// kernel: residual_attention_block.6
= control target key start
LH: loop header
LB: loop body
LE: loop exit
PB: predicated region body
PF: predicated region fallthrough
CT: control target
= control target key end

     0   :  { %s958_s12 = smov 0   ;;  %s1064_s0 = inlined_call_operand.vmem [shape: bf16[2,5,96], index: 0, kind: input, shape index: {}]   ;;  %s1065_s1 = inlined_call_operand.vmem [shape: bf16[2,3,32], index: 1, kind: input, shape index: {}]   ;;  %s1066_s2 = inlined_call_operand.vmem [shape: f32[2,3,5], index: 2, kind: input, shape index: {}]   ;;  %s1067_s3 = inlined_call_operand.vmem [shape: bf16[2,8,32], index: 3, kind: output, shape index: {}]  }
   0x1 LB: > { %s781_s13 = sadd.s32 4294967295, %s919_s12   ;;  %p785_p0 = scmp.ge.s32.totalorder %s919_s12, 1  ;;  %s919_s12 = sphi %s958_s12, %s13_s12  }
   0x2   : > { %p154_p1 = scmp.lt.s32.totalorder %s919_s12, 3 }
   0x4   : > { %p155_p2 = pnand %p785_p0, %p154_p1 }
   0x5   : > { %p184_p3 = scmp.lt.s32.totalorder (!%p155_p2), %s781_s13, 1  ;;  %s923_s18 = smov (!%p155_p2), 96  }
   0x6   : > { %158 = sbr.rel (%p155_p2) target bundleno = 1540 (0x604), region = 32  ;;  %s924_s23 = smov (!%p155_p2), 64  }
   0x7   : > { %s925_s24 = smov (!%p155_p2), 88   ;;  %s926_s28 = smov (!%p155_p2), 72  }
   0x8   : > { %s928_s29 = smov (!%p155_p2), 120   ;;  %s929_s30 = smov (!%p155_p2), 80  }
   0x9   : > { %s930_s4 = smov (!%p155_p2), 112   ;;  %s931_s5 = smov (!%p155_p2), 104  }
   0xa   : > { %s932_s9 = smov (!%p155_p2), 56   ;;  %s933_s10 = smov (!%p155_p2), 48  }
   0xb   : > { %v921_v0 = vmov 0.0   ;;  %vm922_vm0 = vmmov 0   ;;  %s1069_s13 = smov (!%p184_p3, %s781_s13), 1  ;;  %vm224_vm1 = vcmask 64512   ;;  %vm215_vm2 = vcmask 1041408   ;;  %s934_s11 = smov 40  }
   0xc   : > { %823 = vmatprep.subr.bf16.mxu0 %v921_v0  ;;  %825 = vmatprep.mubr.msk.bf16.mxu0 %vm922_vm0, %v921_v0  ;;  %s972_s14 = sshll.u32 %s1069_s13, 2  ;;  %s787_s19 = sshll.u32 %s1069_s13, 1  ;;  %vm216_vm3 = vsmask.f32 1280  ;;  %vm220_vm5 = vcmask 1042432   ;;  %vm273_vm6 = vcmask 39936  }
   0xd   : > { %829 = vmatprep.subr.bf16.mxu1 %v921_v0  ;;  %831 = vmatprep.mubr.msk.bf16.mxu1 %vm922_vm0, %v921_v0  ;;  %s187_s17 = scalar_lea.vmem %s1064_s0, %s972_s14  ;;  %s191_s22 = scalar_lea.vmem %s1065_s1, %s787_s19  ;;  %vm217_vm4 = vmand %vm215_vm2, %vm216_vm3  ;;  %v927_v21 = vmov 65535   ;;  %vm338_vm7 = vcmask 60416   ;;  %vm460_vm8 = vcmask 126016   ;;  %vm581_vm9 = vcmask 191616  }
   0xe   : > { %v978_v1 = vld [vmem:[%s187_s17] ss:$0 sps:$4 sm:$0x77]   ;;  %s195_s27 = scalar_lea.vmem %s1066_s2, %s972_s14  ;;  %v292_v22 = vsel %vm215_vm2, 4294967295, %v927_v21  ;;  %s1031_s8 = scalar_lea.vmem %s1067_s3, %s972_s14  ;;  %vm702_vm10 = vcmask 257216  }
   0xf   : > { %222 = vrot.lane.b32.xlu0 %v978_v1, %s923_s18  ;;  %v207_v2 = vshrl.u32 %v978_v1, 16  ;;  %v210_v3 = vshll.u32 %v978_v1, 16  ;;  %v202_v9 = vld [vmem:[%s191_s22] sm:$0x3]  ;;  %286 = vrot.lane.b32.xlu1 %v978_v1, %s924_s23  ;;  %v1006_v23 = vsel %vm220_vm5, %v292_v22, 0  ;;  %s935_s13 = smov 8  }
  0x10   : > { %v219_v11 = vld [vmem:[%s195_s27] sm:$0x7]  ;;  %s936_s14 = smov 16   ;;  %s937_s15 = smov 24  }
  0x11   : > { %v209_v4 = vrot.slane %v207_v2, 6  ;;  %v212_v5 = vrot.slane %v210_v3, 7  ;;  %v999_v13 = vsel %vm220_vm5, %v219_v11, 0.0 }
  0x13   : > { %v213_v8 = vor.u32 %v212_v5, %v209_v4  ;;  %343 = vrot.lane.b32.xlu1 %v978_v1, %s925_s24 }
  0x15   : > { %v218_v10 = vsel %vm217_vm4, %v202_v9, %v213_v8 }
  0x81   : > { %v223_v6 = vpop.permute.xlu0 %222  ;;  %v287_v20 = vpop.permute.xlu1 %286 }
  0x82   : > { %v229_v7 = vsel %vm224_vm1, %v223_v6, 0  ;;  %v295_v24 = vand.u32 %v1006_v23, %v287_v20 }
  0x83   : > { %824 = vmatpush3.bf16.xpose.msra.mxu0 %v229_v7 }
  0x84   : > { %841 = vmatprep.subr.bf16.mxu0 %v921_v0  ;;  %830 = vmatpush3.bf16.msra.mxu1 %v295_v24 }
  0x85   : > { %835 = vmatprep.subr.bf16.mxu1 %v921_v0  ;;  %v344_v30 = vpop.permute.xlu1 %343 }
  0x86   : > { %v349_v36 = vsel %vm224_vm1, %v344_v30, 0 }
  0x8a   : > { %826 = vmatmul.mubr.msk.bf16.vlgmr.msra.gmra.mxu0 %vm224_vm1, %v218_v10 }
  0x8b   : > { %843 = vmatprep.mubr.msk.bf16.mxu0 %vm922_vm0, %v921_v0 }
 0x14a   : > { %v265_v12 = vpop.f32.mrf.mxu0 }
 0x14b   : > { %v271_v14 = vmul.f32 0.35355338, %v265_v12 }
 0x14c   : > { %v827_v15 = vpop.f32.mrf.mxu0 }
 0x14d   : > { %v272_v16 = vadd.f32 %v271_v14, %v999_v13 }
 0x14e   : > { %v268_v17 = vpop.f32.mrf.mxu0 }
 0x14f   : > { %v274_v18 = vsel %vm273_vm6, %v272_v16, -inf }
 0x150   : > { %275 = vmax.xlane.f32.xlu0 %v274_v18  ;;  %v828_v19 = vpop.f32.mrf.mxu0 }
 0x166   : > { %585 = vrot.lane.b32.xlu0 %v978_v1, %s926_s28 }
 0x1d9   : > { %v276_v25 = vpop.xlane.xlu0 %275 }
 0x1da   : > { %v277_v26 = vsub.f32 %v272_v16, %v276_v25 }
 0x1dc   : > { %v278_v27 = vmul.f32 1.442695, %v277_v26 }
 0x1dd   : > { %v586_v39 = vpop.permute.xlu0 %585 }
 0x1de   : > { %897 = vpow2.f32 %v278_v27  ;;  %v591_v41 = vsel %vm224_vm1, %v586_v39, 0 }
 0x1eb   : > { %v898_v28 = vpop.eup %897 }
 0x1ec   : > { %v280_v29 = vsel %vm273_vm6, %v898_v28, 0.0 }
 0x1ed   : > { %281 = vadd.xlane.f32.xlu1 %v280_v29 }
 0x1fe   : > { %341 = vrot.lane.b32.xlu1 %v218_v10, %s928_s29 }
 0x202   : > { %464 = vrot.lane.b32.xlu1 %v978_v1, %s929_s30 }
 0x206   : > { %462 = vrot.lane.b32.xlu1 %v218_v10, %s930_s4 }
 0x20a   : > { %583 = vrot.lane.b32.xlu1 %v218_v10, %s931_s5 }
 0x276   : > { %v282_v31 = vpop.xlane.xlu1 %281 }
 0x277   : > { %899 = vrcp.f32 %v282_v31 }
 0x27a   : > { %v342_v34 = vpop.permute.xlu1 %341 }
 0x27e   : > { %v465_v37 = vpop.permute.xlu1 %464 }
 0x27f   : > { %v470_v38 = vsel %vm224_vm1, %v465_v37, 0 }
 0x282   : > { %v463_v40 = vpop.permute.xlu1 %462 }
 0x284   : > { %v900_v32 = vpop.eup %899 }
 0x285   : > { %v284_v33 = vmul.f32 %v900_v32, %v898_v28 }
 0x286   : > { %v584_v42 = vpop.permute.xlu1 %583 }
 0x287   : > { %v285_v35 = vpack.c.bf16 %v284_v33, %v284_v33 }
 0x289   : > { %832 = vmatmul.mubr.msk.bf16.vlgmr.msra.gmra.mxu1 %vm273_vm6, %v285_v35 }
 0x28a   : > { %836 = vmatpush3.bf16.xpose.msra.mxu1 %v349_v36  ;;  %837 = vmatprep.mubr.msk.bf16.mxu1 %vm922_vm0, %v921_v0 }
 0x28b   : > { %847 = vmatprep.subr.bf16.mxu1 %v921_v0 }
 0x291   : > { %838 = vmatmul.mubr.msk.bf16.vlgmr.msra.gmra.mxu1 %vm224_vm1, %v342_v34 }
 0x292   : > { %848 = vmatpush3.bf16.xpose.msra.mxu1 %v470_v38  ;;  %849 = vmatprep.mubr.msk.bf16.mxu1 %vm922_vm0, %v921_v0 }
 0x293   : > { %859 = vmatprep.subr.bf16.mxu1 %v921_v0 }
 0x299   : > { %850 = vmatmul.mubr.msk.bf16.vlgmr.msra.gmra.mxu1 %vm224_vm1, %v463_v40 }
 0x29a   : > { %860 = vmatpush3.bf16.xpose.msra.mxu1 %v591_v41  ;;  %861 = vmatprep.mubr.msk.bf16.mxu1 %vm922_vm0, %v921_v0 }
 0x2a1   : > { %862 = vmatmul.mubr.msk.bf16.vlgmr.msra.gmra.mxu1 %vm224_vm1, %v584_v42 }
 0x349   : > { %v331_v43 = vpop.f32.mrf.mxu1 }
 0x34a   : > { %v337_v44 = vpack.c.bf16 %v331_v43, %v331_v43 }
 0x34b   : > { %v833_v45 = vpop.f32.mrf.mxu1 }
 0x34c   : > { %339 = vst.msk [vmem:[%s1031_s8] sm:$0xf] %vm338_vm7, %v337_v44 }
 0x34d   : > { %v334_v46 = vpop.f32.mrf.mxu1 }
 0x34f   : > { %v834_v47 = vpop.f32.mrf.mxu1 }
 0x351   : > { %v385_v48 = vpop.f32.mrf.mxu1 }
 0x352   : > { %v391_v49 = vmul.f32 0.35355338, %v385_v48 }
 0x353   : > { %v839_v50 = vpop.f32.mrf.mxu1 }
 0x354   : > { %v392_v51 = vadd.f32 %v391_v49, %v999_v13 }
 0x355   : > { %v388_v52 = vpop.f32.mrf.mxu1 }
 0x356   : > { %v393_v53 = vsel %vm273_vm6, %v392_v51, -inf }
 0x357   : > { %394 = vmax.xlane.f32.xlu1 %v393_v53  ;;  %v840_v54 = vpop.f32.mrf.mxu1 }
 0x359   : > { %v506_v55 = vpop.f32.mrf.mxu1 }
 0x35a   : > { %v512_v56 = vmul.f32 0.35355338, %v506_v55 }
 0x35b   : > { %v851_v57 = vpop.f32.mrf.mxu1 }
 0x35c   : > { %v513_v58 = vadd.f32 %v512_v56, %v999_v13 }
 0x35d   : > { %v509_v59 = vpop.f32.mrf.mxu1 }
 0x35e   : > { %v514_v60 = vsel %vm273_vm6, %v513_v58, -inf }
 0x35f   : > { %515 = vmax.xlane.f32.xlu0 %v514_v60  ;;  %v852_v61 = vpop.f32.mrf.mxu1 }
 0x361   : > { %v627_v62 = vpop.f32.mrf.mxu1 }
 0x362   : > { %v633_v63 = vmul.f32 0.35355338, %v627_v62 }
 0x363   : > { %v863_v2 = vpop.f32.mrf.mxu1 }
 0x364   : > { %v634_v3 = vadd.f32 %v633_v63, %v999_v13 }
 0x365   : > { %v630_v4 = vpop.f32.mrf.mxu1 }
 0x366   : > { %v635_v5 = vsel %vm273_vm6, %v634_v3, -inf }
 0x367   : > { %636 = vmax.xlane.f32.xlu1 %v635_v5  ;;  %v864_v6 = vpop.f32.mrf.mxu1 }
 0x3e0   : > { %v395_v7 = vpop.xlane.xlu1 %394 }
 0x3e1   : > { %v396_v8 = vsub.f32 %v392_v51, %v395_v7 }
 0x3e3   : > { %v397_v9 = vmul.f32 1.442695, %v396_v8 }
 0x3e5   : > { %901 = vpow2.f32 %v397_v9 }
 0x3e8   : > { %v516_v17 = vpop.xlane.xlu0 %515 }
 0x3e9   : > { %v517_v18 = vsub.f32 %v513_v58, %v516_v17 }
 0x3eb   : > { %v518_v19 = vmul.f32 1.442695, %v517_v18 }
 0x3f0   : > { %v637_v10 = vpop.xlane.xlu1 %636 }
 0x3f1   : > { %v638_v11 = vsub.f32 %v634_v3, %v637_v10 }
 0x3f2   : > { %v902_v12 = vpop.eup %901 }
 0x3f3   : > { %v639_v14 = vmul.f32 1.442695, %v638_v11  ;;  %v399_v15 = vsel %vm273_vm6, %v902_v12, 0.0 }
 0x3f4   : > { %400 = vadd.xlane.f32.xlu1 %v399_v15 }
 0x3f5   : > { %903 = vpow2.f32 %v639_v14 }
 0x3f6   : > { %905 = vpow2.f32 %v518_v19 }
 0x402   : > { %v904_v16 = vpop.eup %903 }
 0x403   : > { %v641_v13 = vsel %vm273_vm6, %v904_v16, 0.0  ;;  %v906_v20 = vpop.eup %905 }
 0x404   : > { %642 = vadd.xlane.f32.xlu0 %v641_v13  ;;  %v520_v21 = vsel %vm273_vm6, %v906_v20, 0.0 }
 0x405   : > { %405 = vrot.lane.b32.xlu1 %v978_v1, %s932_s9 }
 0x41a   : > { %526 = vrot.lane.b32.xlu0 %v978_v1, %s933_s10 }
 0x429   : > { %521 = vadd.xlane.f32.xlu1 %v520_v21 }
 0x43a   : > { %647 = vrot.lane.b32.xlu1 %v978_v1, %s934_s11 }
 0x47d   : > { %v401_v22 = vpop.xlane.xlu1 %400 }
 0x47e   : > { %907 = vrcp.f32 %v401_v22 }
 0x481   : > { %v406_v24 = vpop.permute.xlu1 %405 }
 0x482   : > { %v411_v25 = vand.u32 %v406_v24, %v1006_v23 }
 0x484   : > { %842 = vmatpush3.bf16.msra.mxu0 %v411_v25 }
 0x485   : > { %853 = vmatprep.subr.bf16.mxu0 %v921_v0 }
 0x48b   : > { %v908_v26 = vpop.eup %907 }
 0x48c   : > { %v403_v27 = vmul.f32 %v908_v26, %v902_v12 }
 0x48d   : > { %v643_v28 = vpop.xlane.xlu0 %642 }
 0x48e   : > { %v404_v29 = vpack.c.bf16 %v403_v27, %v403_v27 }
 0x490   : > { %844 = vmatmul.mubr.msk.bf16.vlgmr.msra.gmra.mxu0 %vm273_vm6, %v404_v29 }
 0x491   : > { %v527_v30 = vpop.permute.xlu0 %526  ;;  %855 = vmatprep.mubr.msk.bf16.mxu0 %vm922_vm0, %v921_v0 }
 0x492   : > { %v532_v1 = vand.u32 %v527_v30, %v1006_v23 }
 0x494   : > { %854 = vmatpush3.bf16.msra.mxu0 %v532_v1 }
 0x495   : > { %865 = vmatprep.subr.bf16.mxu0 %v921_v0 }
 0x4b2   : > { %v522_v31 = vpop.xlane.xlu1 %521 }
 0x4b3   : > { %909 = vrcp.f32 %v522_v31 }
 0x4b4   : > { %911 = vrcp.f32 %v643_v28 }
 0x4b6   : > { %v648_v32 = vpop.permute.xlu1 %647 }
 0x4b7   : > { %v653_v35 = vand.u32 %v648_v32, %v1006_v23 }
 0x4c0   : > { %v910_v33 = vpop.eup %909 }
 0x4c1   : > { %v524_v34 = vmul.f32 %v910_v33, %v906_v20  ;;  %v912_v37 = vpop.eup %911 }
 0x4c2   : > { %v645_v38 = vmul.f32 %v912_v37, %v904_v16 }
 0x4c3   : > { %v525_v36 = vpack.c.bf16 %v524_v34, %v524_v34 }
 0x4c4   : > { %v646_v39 = vpack.c.bf16 %v645_v38, %v645_v38 }
 0x4c5   : > { %856 = vmatmul.mubr.msk.bf16.vlgmr.msra.gmra.mxu0 %vm273_vm6, %v525_v36 }
 0x4c6   : > { %866 = vmatpush3.bf16.msra.mxu0 %v653_v35  ;;  %867 = vmatprep.mubr.msk.bf16.mxu0 %vm922_vm0, %v921_v0 }
 0x4cd   : > { %868 = vmatmul.mubr.msk.bf16.vlgmr.msra.gmra.mxu0 %vm273_vm6, %v646_v39 }
 0x550   : > { %v447_v40 = vpop.f32.mrf.mxu0 }
 0x551   : > { %v804_v41 = vpack.c.bf16 %v447_v40, %v447_v40 }
 0x552   : > { %v845_v42 = vpop.f32.mrf.mxu0 }
 0x553   : > { %457 = vrot.lane.b32.xlu1 %v804_v41, %s935_s13 }
 0x554   : > { %v450_v43 = vpop.f32.mrf.mxu0 }
 0x556   : > { %v846_v44 = vpop.f32.mrf.mxu0 }
 0x585   : > { %v568_v23 = vpop.f32.mrf.mxu0 }
 0x586   : > { %v805_v45 = vpack.c.bf16 %v568_v23, %v568_v23 }
 0x587   : > { %v857_v46 = vpop.f32.mrf.mxu0 }
 0x588   : > { %578 = vrot.lane.b32.xlu0 %v805_v45, %s936_s14 }
 0x589   : > { %v571_v47 = vpop.f32.mrf.mxu0 }
 0x58b   : > { %v858_v0 = vpop.f32.mrf.mxu0 }
 0x58d   : > { %v689_v48 = vpop.f32.mrf.mxu0 }
 0x58e   : > { %v806_v49 = vpack.c.bf16 %v689_v48, %v689_v48 }
 0x58f   : > { %v869_v50 = vpop.f32.mrf.mxu0 }
 0x590   : > { %699 = vrot.lane.b32.xlu1 %v806_v49, %s937_s15 }
 0x591   : > { %v692_v51 = vpop.f32.mrf.mxu0 }
 0x593   : > { %v870_v52 = vpop.f32.mrf.mxu0 }
 0x5c5   : > { %v458_v53 = vpop.permute.xlu1 %457 }
 0x5c6   : > { %461 = vst.msk [vmem:[%s1031_s8] sm:$0xf] %vm460_vm8, %v458_v53 }
 0x5fa   : > { %v579_v54 = vpop.permute.xlu0 %578 }
 0x5fb   : > { %582 = vst.msk [vmem:[%s1031_s8] sm:$0xf] %vm581_vm9, %v579_v54 }
 0x602   : > { %v700_v55 = vpop.permute.xlu1 %699 }
 0x603   : > { %703 = vst.msk [vmem:[%s1031_s8] sm:$0xf] %vm702_vm10, %v700_v55 }
 0x604 PF: > { %s13_s12 = sadd.s32 1, %s919_s12  }
 0x605   : > { %p10_p4 = scmp.ge.s32.totalorder %s13_s12, 4  }
 0x607   :  { %12 = sbr.rel (!%p10_p4) target bundleno = 1 (0x1), region = 68 }

// kernel: residual_attention_block.5
= control target key start
LH: loop header
LB: loop body
LE: loop exit
PB: predicated region body
PF: predicated region fallthrough
CT: control target
= control target key end

     0   :  { %vm24_vm0 = vcmask 259072   ;;  %v151_v7 = vmov 0.0   ;;  %vm152_vm1 = vmmov 0   ;;  %vm77_vm2 = vcmask 261120   ;;  %s204_s0 = inlined_call_operand.vmem [shape: f32[6,32], index: 0, kind: input, shape index: {}]   ;;  %s205_s3 = inlined_call_operand.vmem [shape: bf16[32,32], index: 3, kind: input, shape index: {}]   ;;  %s206_s1 = inlined_call_operand.vmem [shape: f32[1,32], index: 1, kind: input, shape index: {}]   ;;  %s207_s2 = inlined_call_operand.vmem [shape: f32[1,32], index: 2, kind: input, shape index: {}]   ;;  %s208_s4 = inlined_call_operand.vmem [shape: f32[1,32], index: 4, kind: input, shape index: {}]   ;;  %s209_s5 = inlined_call_operand.vmem [shape: bf16[6,32], index: 5, kind: output, shape index: {}]  }
   0x1   :  { %v21_v0 = vld [vmem:[%s204_s0] sm:$0x3f]  ;;  %137 = vmatprep.subr.bf16.mxu0 %v151_v7  ;;  %v147_v8 = vld [vmem:[%s205_s3 + $0x8] sm:$0xff]   ;;  %141 = vmatprep.mubr.msk.bf16.mxu0 %vm152_vm1, %v151_v7  ;;  %vm122_vm3 = vcmask 256000  }
   0x2   :  { %v25_v1 = vsel %vm24_vm0, %v21_v0, 0.0  ;;  %138 = vmatpush3.bf16.msra.mxu0 %v147_v8  ;;  %v148_v9 = vld [vmem:[%s205_s3] sm:$0xff]  }
   0x3   :  { %26 = vadd.xlane.f32.xlu0 %v25_v1  ;;  %139 = vmatprep.subr.bf16.mxu0 %v151_v7  ;;  %v128_v14 = vld [vmem:[%s206_s1] ss:$0 sm:$0xff] }
   0x4   :  { %v129_v16 = vld [vmem:[%s207_s2] ss:$0 sm:$0xff] }
   0x5   :  { %v130_v20 = vld [vmem:[%s208_s4] ss:$0 sm:$0xff] }
   0x6   :  { %140 = vmatpush3.bf16.msra.mxu0 %v148_v9 }
  0x8c   :  { %v27_v2 = vpop.xlane.xlu0 %26 }
  0x8d   :  { %v29_v3 = vmul.f32 0.03125, %v27_v2 }
  0x8f   :  { %v30_v4 = vsub.f32 %v21_v0, %v29_v3 }
  0x91   :  { %v31_v5 = vmul.f32 %v30_v4, %v30_v4 }
  0x93   :  { %v32_v6 = vsel %vm24_vm0, %v31_v5, 0.0 }
  0x94   :  { %33 = vadd.xlane.f32.xlu0 %v32_v6 }
 0x11d   :  { %v34_v10 = vpop.xlane.xlu0 %33 }
 0x11e   :  { %v35_v11 = vmul.f32 0.03125, %v34_v10 }
 0x120   :  { %v36_v12 = vadd.f32 1e-05, %v35_v11 }
 0x122   :  { %149 = vrsqrt.f32 %v36_v12 }
 0x12f   :  { %v150_v13 = vpop.eup %149 }
 0x130   :  { %v38_v15 = vmul.f32 %v150_v13, %v30_v4 }
 0x132   :  { %v45_v17 = vmul.f32 %v128_v14, %v38_v15 }
 0x134   :  { %v52_v18 = vadd.f32 %v129_v16, %v45_v17 }
 0x136   :  { %v53_v19 = vpack.c.bf16 %v52_v18, %v52_v18 }
 0x138   :  { %142 = vmatmul.mubr.msk.bf16.vlgmr.msra.gmra.mxu0 %vm77_vm2, %v53_v19 }
 0x1f8   :  { %v115_v21 = vpop.f32.mrf.mxu0 }
 0x1f9   :  { %v116_v22 = vadd.f32 %v130_v20, %v115_v21 }
 0x1fa   :  { %v143_v23 = vpop.f32.mrf.mxu0 }
 0x1fb   :  { %v121_v24 = vpack.c.bf16 %v116_v22, %v116_v22 }
 0x1fc   :  { %v118_v25 = vpop.f32.mrf.mxu0 }
 0x1fd   :  { %123 = vst.msk [vmem:[%s209_s5] sm:$0x7] %vm122_vm3, %v121_v24 }
 0x1fe   :  { %v144_v26 = vpop.f32.mrf.mxu0 }

// kernel: residual_attention_block.4
= control target key start
LH: loop header
LB: loop body
LE: loop exit
PB: predicated region body
PF: predicated region fallthrough
CT: control target
= control target key end

     0   :  { %vm25_vm0 = vcmask 261120   ;;  %vm29_vm1 = vcmask 254976   ;;  %v183_v14 = vmov 0.0   ;;  %vm184_vm2 = vmmov 0   ;;  %s245_s0 = inlined_call_operand.vmem [shape: f32[10,32], index: 0, kind: input, shape index: {}]   ;;  %s246_s3 = inlined_call_operand.vmem [shape: bf16[32,96], index: 3, kind: input, shape index: {}]   ;;  %s247_s1 = inlined_call_operand.vmem [shape: f32[1,32], index: 1, kind: input, shape index: {}]   ;;  %s248_s2 = inlined_call_operand.vmem [shape: f32[1,32], index: 2, kind: input, shape index: {}]   ;;  %s249_s4 = inlined_call_operand.vmem [shape: f32[1,96], index: 4, kind: input, shape index: {}]   ;;  %s250_s5 = inlined_call_operand.vmem [shape: bf16[10,96], index: 5, kind: output, shape index: {}]  }
   0x1   :  { %v21_v0 = vld [vmem:[%s245_s0] sm:$0xff]  ;;  %v22_v1 = vld [vmem:[%s245_s0 + $0x8] sm:$0x3]  ;;  %167 = vmatprep.subr.bf16.mxu0 %v183_v14  ;;  %171 = vmatprep.mubr.msk.bf16.mxu0 %vm184_vm2, %v183_v14  ;;  %vm146_vm3 = vcmask 781312   ;;  %vm148_vm4 = vcmask 778240  }
   0x2   :  { %v26_v2 = vsel %vm25_vm0, %v21_v0, 0.0  ;;  %v30_v3 = vsel %vm29_vm1, %v22_v1, 0.0  ;;  %v177_v15 = vld [vmem:[%s246_s3 + $0x8] sm:$0xff]   ;;  %v178_v16 = vld [vmem:[%s246_s3] sm:$0xff]  }
   0x3   :  { %27 = vadd.xlane.f32.xlu0 %v26_v2  ;;  %168 = vmatpush3.bf16.msra.mxu0 %v177_v15  ;;  %v154_v25 = vld [vmem:[%s247_s1] ss:$0 sm:$0xff] }
   0x4   :  { %169 = vmatprep.subr.bf16.mxu0 %v183_v14  ;;  %v155_v29 = vld [vmem:[%s248_s2] ss:$0 sm:$0xff] }
   0x5   :  { %v156_v34 = vld [vmem:[%s249_s4] ss:$0 sm:$0xff] }
   0x7   :  { %31 = vadd.xlane.f32.xlu0 %v30_v3  ;;  %170 = vmatpush3.bf16.msra.mxu0 %v178_v16 }
  0x8c   :  { %v28_v4 = vpop.xlane.xlu0 %27 }
  0x8d   :  { %v34_v5 = vmul.f32 0.03125, %v28_v4 }
  0x8f   :  { %v36_v6 = vsub.f32 %v21_v0, %v34_v5 }
  0x90   :  { %v32_v7 = vpop.xlane.xlu0 %31 }
  0x91   :  { %v35_v8 = vmul.f32 0.03125, %v32_v7  ;;  %v38_v9 = vmul.f32 %v36_v6, %v36_v6 }
  0x93   :  { %v37_v10 = vsub.f32 %v22_v1, %v35_v8  ;;  %v40_v11 = vsel %vm25_vm0, %v38_v9, 0.0 }
  0x94   :  { %41 = vadd.xlane.f32.xlu1 %v40_v11 }
  0x95   :  { %v39_v12 = vmul.f32 %v37_v10, %v37_v10 }
  0x97   :  { %v43_v13 = vsel %vm29_vm1, %v39_v12, 0.0 }
  0x98   :  { %44 = vadd.xlane.f32.xlu1 %v43_v13 }
 0x11d   :  { %v42_v17 = vpop.xlane.xlu1 %41 }
 0x11e   :  { %v46_v18 = vmul.f32 0.03125, %v42_v17 }
 0x120   :  { %v48_v19 = vadd.f32 1e-05, %v46_v18 }
 0x121   :  { %v45_v20 = vpop.xlane.xlu1 %44 }
 0x122   :  { %179 = vrsqrt.f32 %v48_v19  ;;  %v47_v21 = vmul.f32 0.03125, %v45_v20 }
 0x124   :  { %v49_v22 = vadd.f32 1e-05, %v47_v21 }
 0x126   :  { %181 = vrsqrt.f32 %v49_v22 }
 0x12f   :  { %v180_v23 = vpop.eup %179 }
 0x130   :  { %v52_v24 = vmul.f32 %v180_v23, %v36_v6 }
 0x132   :  { %v60_v28 = vmul.f32 %v154_v25, %v52_v24 }
 0x133   :  { %v182_v26 = vpop.eup %181 }
 0x134   :  { %v53_v27 = vmul.f32 %v182_v26, %v37_v10  ;;  %v68_v31 = vadd.f32 %v155_v29, %v60_v28 }
 0x136   :  { %v61_v30 = vmul.f32 %v154_v25, %v53_v27 }
 0x138   :  { %v69_v32 = vadd.f32 %v155_v29, %v61_v30 }
 0x13a   :  { %v70_v33 = vpack.c.bf16 %v69_v32, %v68_v31 }
 0x13c   :  { %172 = vmatmul.mubr.msk.bf16.vlgmr.msra.gmra.mxu0 %vm25_vm0, %v70_v33 }
 0x1fc   :  { %v131_v35 = vpop.f32.mrf.mxu0 }
 0x1fd   :  { %v132_v36 = vadd.f32 %v156_v34, %v131_v35 }
 0x1fe   :  { %v173_v37 = vpop.f32.mrf.mxu0 }
 0x1ff   :  { %v162_v38 = vpack.c.bf16 %v132_v36, %v132_v36 }
 0x200   :  { %v134_v39 = vpop.f32.mrf.mxu0 }
 0x201   :  { %147 = vst.msk [vmem:[%s250_s5] sm:$0xf] %vm146_vm3, %v162_v38  ;;  %v135_v40 = vadd.f32 %v156_v34, %v134_v39 }
 0x202   :  { %v174_v41 = vpop.f32.mrf.mxu0 }
 0x203   :  { %v163_v42 = vpack.c.bf16 %v135_v40, %v135_v40 }
 0x205   :  { %149 = vst.msk [vmem:[%s250_s5 + $0x4] sm:$0x1] %vm148_vm4, %v163_v42 }

// kernel: residual_attention_block.6
= control target key start
LH: loop header
LB: loop body
LE: loop exit
PB: predicated region body
PF: predicated region fallthrough
CT: control target
= control target key end

     0   :  { %s958_s12 = smov 0   ;;  %s1064_s0 = inlined_call_operand.vmem [shape: bf16[2,5,96], index: 0, kind: input, shape index: {}]   ;;  %s1065_s1 = inlined_call_operand.vmem [shape: bf16[2,3,32], index: 1, kind: input, shape index: {}]   ;;  %s1066_s2 = inlined_call_operand.vmem [shape: f32[2,3,5], index: 2, kind: input, shape index: {}]   ;;  %s1067_s3 = inlined_call_operand.vmem [shape: bf16[2,8,32], index: 3, kind: output, shape index: {}]  }
   0x1 LB: > { %s781_s13 = sadd.s32 4294967295, %s919_s12   ;;  %p785_p0 = scmp.ge.s32.totalorder %s919_s12, 1  ;;  %s919_s12 = sphi %s958_s12, %s13_s12  }
   0x2   : > { %p154_p1 = scmp.lt.s32.totalorder %s919_s12, 3 }
   0x4   : > { %p155_p2 = pnand %p785_p0, %p154_p1 }
   0x5   : > { %p184_p3 = scmp.lt.s32.totalorder (!%p155_p2), %s781_s13, 1  ;;  %s923_s18 = smov (!%p155_p2), 96  }
   0x6   : > { %158 = sbr.rel (%p155_p2) target bundleno = 1540 (0x604), region = 32  ;;  %s924_s23 = smov (!%p155_p2), 64  }
   0x7   : > { %s925_s24 = smov (!%p155_p2), 88   ;;  %s926_s28 = smov (!%p155_p2), 72  }
   0x8   : > { %s928_s29 = smov (!%p155_p2), 120   ;;  %s929_s30 = smov (!%p155_p2), 80  }
   0x9   : > { %s930_s4 = smov (!%p155_p2), 112   ;;  %s931_s5 = smov (!%p155_p2), 104  }
   0xa   : > { %s932_s9 = smov (!%p155_p2), 56   ;;  %s933_s10 = smov (!%p155_p2), 48  }
   0xb   : > { %v921_v0 = vmov 0.0   ;;  %vm922_vm0 = vmmov 0   ;;  %s1069_s13 = smov (!%p184_p3, %s781_s13), 1  ;;  %vm224_vm1 = vcmask 64512   ;;  %vm215_vm2 = vcmask 1041408   ;;  %s934_s11 = smov 40  }
   0xc   : > { %823 = vmatprep.subr.bf16.mxu0 %v921_v0  ;;  %825 = vmatprep.mubr.msk.bf16.mxu0 %vm922_vm0, %v921_v0  ;;  %s972_s14 = sshll.u32 %s1069_s13, 2  ;;  %s787_s19 = sshll.u32 %s1069_s13, 1  ;;  %vm216_vm3 = vsmask.f32 1280  ;;  %vm220_vm5 = vcmask 1042432   ;;  %vm273_vm6 = vcmask 39936  }
   0xd   : > { %829 = vmatprep.subr.bf16.mxu1 %v921_v0  ;;  %831 = vmatprep.mubr.msk.bf16.mxu1 %vm922_vm0, %v921_v0  ;;  %s187_s17 = scalar_lea.vmem %s1064_s0, %s972_s14  ;;  %s191_s22 = scalar_lea.vmem %s1065_s1, %s787_s19  ;;  %vm217_vm4 = vmand %vm215_vm2, %vm216_vm3  ;;  %v927_v21 = vmov 65535   ;;  %vm338_vm7 = vcmask 60416   ;;  %vm460_vm8 = vcmask 126016   ;;  %vm581_vm9 = vcmask 191616  }
   0xe   : > { %v978_v1 = vld [vmem:[%s187_s17] ss:$0 sps:$4 sm:$0x77]   ;;  %s195_s27 = scalar_lea.vmem %s1066_s2, %s972_s14  ;;  %v292_v22 = vsel %vm215_vm2, 4294967295, %v927_v21  ;;  %s1031_s8 = scalar_lea.vmem %s1067_s3, %s972_s14  ;;  %vm702_vm10 = vcmask 257216  }
   0xf   : > { %222 = vrot.lane.b32.xlu0 %v978_v1, %s923_s18  ;;  %v207_v2 = vshrl.u32 %v978_v1, 16  ;;  %v210_v3 = vshll.u32 %v978_v1, 16  ;;  %v202_v9 = vld [vmem:[%s191_s22] sm:$0x3]  ;;  %286 = vrot.lane.b32.xlu1 %v978_v1, %s924_s23  ;;  %v1006_v23 = vsel %vm220_vm5, %v292_v22, 0  ;;  %s935_s13 = smov 8  }
  0x10   : > { %v219_v11 = vld [vmem:[%s195_s27] sm:$0x7]  ;;  %s936_s14 = smov 16   ;;  %s937_s15 = smov 24  }
  0x11   : > { %v209_v4 = vrot.slane %v207_v2, 6  ;;  %v212_v5 = vrot.slane %v210_v3, 7  ;;  %v999_v13 = vsel %vm220_vm5, %v219_v11, 0.0 }
  0x13   : > { %v213_v8 = vor.u32 %v212_v5, %v209_v4  ;;  %343 = vrot.lane.b32.xlu1 %v978_v1, %s925_s24 }
  0x15   : > { %v218_v10 = vsel %vm217_vm4, %v202_v9, %v213_v8 }
  0x81   : > { %v223_v6 = vpop.permute.xlu0 %222  ;;  %v287_v20 = vpop.permute.xlu1 %286 }
  0x82   : > { %v229_v7 = vsel %vm224_vm1, %v223_v6, 0  ;;  %v295_v24 = vand.u32 %v1006_v23, %v287_v20 }
  0x83   : > { %824 = vmatpush3.bf16.xpose.msra.mxu0 %v229_v7 }
  0x84   : > { %841 = vmatprep.subr.bf16.mxu0 %v921_v0  ;;  %830 = vmatpush3.bf16.msra.mxu1 %v295_v24 }
  0x85   : > { %835 = vmatprep.subr.bf16.mxu1 %v921_v0  ;;  %v344_v30 = vpop.permute.xlu1 %343 }
  0x86   : > { %v349_v36 = vsel %vm224_vm1, %v344_v30, 0 }
  0x8a   : > { %826 = vmatmul.mubr.msk.bf16.vlgmr.msra.gmra.mxu0 %vm224_vm1, %v218_v10 }
  0x8b   : > { %843 = vmatprep.mubr.msk.bf16.mxu0 %vm922_vm0, %v921_v0 }
 0x14a   : > { %v265_v12 = vpop.f32.mrf.mxu0 }
 0x14b   : > { %v271_v14 = vmul.f32 0.35355338, %v265_v12 }
 0x14c   : > { %v827_v15 = vpop.f32.mrf.mxu0 }
 0x14d   : > { %v272_v16 = vadd.f32 %v271_v14, %v999_v13 }
 0x14e   : > { %v268_v17 = vpop.f32.mrf.mxu0 }
 0x14f   : > { %v274_v18 = vsel %vm273_vm6, %v272_v16, -inf }
 0x150   : > { %275 = vmax.xlane.f32.xlu0 %v274_v18  ;;  %v828_v19 = vpop.f32.mrf.mxu0 }
 0x166   : > { %585 = vrot.lane.b32.xlu0 %v978_v1, %s926_s28 }
 0x1d9   : > { %v276_v25 = vpop.xlane.xlu0 %275 }
 0x1da   : > { %v277_v26 = vsub.f32 %v272_v16, %v276_v25 }
 0x1dc   : > { %v278_v27 = vmul.f32 1.442695, %v277_v26 }
 0x1dd   : > { %v586_v39 = vpop.permute.xlu0 %585 }
 0x1de   : > { %897 = vpow2.f32 %v278_v27  ;;  %v591_v41 = vsel %vm224_vm1, %v586_v39, 0 }
 0x1eb   : > { %v898_v28 = vpop.eup %897 }
 0x1ec   : > { %v280_v29 = vsel %vm273_vm6, %v898_v28, 0.0 }
 0x1ed   : > { %281 = vadd.xlane.f32.xlu1 %v280_v29 }
 0x1fe   : > { %341 = vrot.lane.b32.xlu1 %v218_v10, %s928_s29 }
 0x202   : > { %464 = vrot.lane.b32.xlu1 %v978_v1, %s929_s30 }
 0x206   : > { %462 = vrot.lane.b32.xlu1 %v218_v10, %s930_s4 }
 0x20a   : > { %583 = vrot.lane.b32.xlu1 %v218_v10, %s931_s5 }
 0x276   : > { %v282_v31 = vpop.xlane.xlu1 %281 }
 0x277   : > { %899 = vrcp.f32 %v282_v31 }
 0x27a   : > { %v342_v34 = vpop.permute.xlu1 %341 }
 0x27e   : > { %v465_v37 = vpop.permute.xlu1 %464 }
 0x27f   : > { %v470_v38 = vsel %vm224_vm1, %v465_v37, 0 }
 0x282   : > { %v463_v40 = vpop.permute.xlu1 %462 }
 0x284   : > { %v900_v32 = vpop.eup %899 }
 0x285   : > { %v284_v33 = vmul.f32 %v900_v32, %v898_v28 }
 0x286   : > { %v584_v42 = vpop.permute.xlu1 %583 }
 0x287   : > { %v285_v35 = vpack.c.bf16 %v284_v33, %v284_v33 }
 0x289   : > { %832 = vmatmul.mubr.msk.bf16.vlgmr.msra.gmra.mxu1 %vm273_vm6, %v285_v35 }
 0x28a   : > { %836 = vmatpush3.bf16.xpose.msra.mxu1 %v349_v36  ;;  %837 = vmatprep.mubr.msk.bf16.mxu1 %vm922_vm0, %v921_v0 }
 0x28b   : > { %847 = vmatprep.subr.bf16.mxu1 %v921_v0 }
 0x291   : > { %838 = vmatmul.mubr.msk.bf16.vlgmr.msra.gmra.mxu1 %vm224_vm1, %v342_v34 }
 0x292   : > { %848 = vmatpush3.bf16.xpose.msra.mxu1 %v470_v38  ;;  %849 = vmatprep.mubr.msk.bf16.mxu1 %vm922_vm0, %v921_v0 }
 0x293   : > { %859 = vmatprep.subr.bf16.mxu1 %v921_v0 }
 0x299   : > { %850 = vmatmul.mubr.msk.bf16.vlgmr.msra.gmra.mxu1 %vm224_vm1, %v463_v40 }
 0x29a   : > { %860 = vmatpush3.bf16.xpose.msra.mxu1 %v591_v41  ;;  %861 = vmatprep.mubr.msk.bf16.mxu1 %vm922_vm0, %v921_v0 }
 0x2a1   : > { %862 = vmatmul.mubr.msk.bf16.vlgmr.msra.gmra.mxu1 %vm224_vm1, %v584_v42 }
 0x349   : > { %v331_v43 = vpop.f32.mrf.mxu1 }
 0x34a   : > { %v337_v44 = vpack.c.bf16 %v331_v43, %v331_v43 }
 0x34b   : > { %v833_v45 = vpop.f32.mrf.mxu1 }
 0x34c   : > { %339 = vst.msk [vmem:[%s1031_s8] sm:$0xf] %vm338_vm7, %v337_v44 }
 0x34d   : > { %v334_v46 = vpop.f32.mrf.mxu1 }
 0x34f   : > { %v834_v47 = vpop.f32.mrf.mxu1 }
 0x351   : > { %v385_v48 = vpop.f32.mrf.mxu1 }
 0x352   : > { %v391_v49 = vmul.f32 0.35355338, %v385_v48 }
 0x353   : > { %v839_v50 = vpop.f32.mrf.mxu1 }
 0x354   : > { %v392_v51 = vadd.f32 %v391_v49, %v999_v13 }
 0x355   : > { %v388_v52 = vpop.f32.mrf.mxu1 }
 0x356   : > { %v393_v53 = vsel %vm273_vm6, %v392_v51, -inf }
 0x357   : > { %394 = vmax.xlane.f32.xlu1 %v393_v53  ;;  %v840_v54 = vpop.f32.mrf.mxu1 }
 0x359   : > { %v506_v55 = vpop.f32.mrf.mxu1 }
 0x35a   : > { %v512_v56 = vmul.f32 0.35355338, %v506_v55 }
 0x35b   : > { %v851_v57 = vpop.f32.mrf.mxu1 }
 0x35c   : > { %v513_v58 = vadd.f32 %v512_v56, %v999_v13 }
 0x35d   : > { %v509_v59 = vpop.f32.mrf.mxu1 }
 0x35e   : > { %v514_v60 = vsel %vm273_vm6, %v513_v58, -inf }
 0x35f   : > { %515 = vmax.xlane.f32.xlu0 %v514_v60  ;;  %v852_v61 = vpop.f32.mrf.mxu1 }
 0x361   : > { %v627_v62 = vpop.f32.mrf.mxu1 }
 0x362   : > { %v633_v63 = vmul.f32 0.35355338, %v627_v62 }
 0x363   : > { %v863_v2 = vpop.f32.mrf.mxu1 }
 0x364   : > { %v634_v3 = vadd.f32 %v633_v63, %v999_v13 }
 0x365   : > { %v630_v4 = vpop.f32.mrf.mxu1 }
 0x366   : > { %v635_v5 = vsel %vm273_vm6, %v634_v3, -inf }
 0x367   : > { %636 = vmax.xlane.f32.xlu1 %v635_v5  ;;  %v864_v6 = vpop.f32.mrf.mxu1 }
 0x3e0   : > { %v395_v7 = vpop.xlane.xlu1 %394 }
 0x3e1   : > { %v396_v8 = vsub.f32 %v392_v51, %v395_v7 }
 0x3e3   : > { %v397_v9 = vmul.f32 1.442695, %v396_v8 }
 0x3e5   : > { %901 = vpow2.f32 %v397_v9 }
 0x3e8   : > { %v516_v17 = vpop.xlane.xlu0 %515 }
 0x3e9   : > { %v517_v18 = vsub.f32 %v513_v58, %v516_v17 }
 0x3eb   : > { %v518_v19 = vmul.f32 1.442695, %v517_v18 }
 0x3f0   : > { %v637_v10 = vpop.xlane.xlu1 %636 }
 0x3f1   : > { %v638_v11 = vsub.f32 %v634_v3, %v637_v10 }
 0x3f2   : > { %v902_v12 = vpop.eup %901 }
 0x3f3   : > { %v639_v14 = vmul.f32 1.442695, %v638_v11  ;;  %v399_v15 = vsel %vm273_vm6, %v902_v12, 0.0 }
 0x3f4   : > { %400 = vadd.xlane.f32.xlu1 %v399_v15 }
 0x3f5   : > { %903 = vpow2.f32 %v639_v14 }
 0x3f6   : > { %905 = vpow2.f32 %v518_v19 }
 0x402   : > { %v904_v16 = vpop.eup %903 }
 0x403   : > { %v641_v13 = vsel %vm273_vm6, %v904_v16, 0.0  ;;  %v906_v20 = vpop.eup %905 }
 0x404   : > { %642 = vadd.xlane.f32.xlu0 %v641_v13  ;;  %v520_v21 = vsel %vm273_vm6, %v906_v20, 0.0 }
 0x405   : > { %405 = vrot.lane.b32.xlu1 %v978_v1, %s932_s9 }
 0x41a   : > { %526 = vrot.lane.b32.xlu0 %v978_v1, %s933_s10 }
 0x429   : > { %521 = vadd.xlane.f32.xlu1 %v520_v21 }
 0x43a   : > { %647 = vrot.lane.b32.xlu1 %v978_v1, %s934_s11 }
 0x47d   : > { %v401_v22 = vpop.xlane.xlu1 %400 }
 0x47e   : > { %907 = vrcp.f32 %v401_v22 }
 0x481   : > { %v406_v24 = vpop.permute.xlu1 %405 }
 0x482   : > { %v411_v25 = vand.u32 %v406_v24, %v1006_v23 }
 0x484   : > { %842 = vmatpush3.bf16.msra.mxu0 %v411_v25 }
 0x485   : > { %853 = vmatprep.subr.bf16.mxu0 %v921_v0 }
 0x48b   : > { %v908_v26 = vpop.eup %907 }
 0x48c   : > { %v403_v27 = vmul.f32 %v908_v26, %v902_v12 }
 0x48d   : > { %v643_v28 = vpop.xlane.xlu0 %642 }
 0x48e   : > { %v404_v29 = vpack.c.bf16 %v403_v27, %v403_v27 }
 0x490   : > { %844 = vmatmul.mubr.msk.bf16.vlgmr.msra.gmra.mxu0 %vm273_vm6, %v404_v29 }
 0x491   : > { %v527_v30 = vpop.permute.xlu0 %526  ;;  %855 = vmatprep.mubr.msk.bf16.mxu0 %vm922_vm0, %v921_v0 }
 0x492   : > { %v532_v1 = vand.u32 %v527_v30, %v1006_v23 }
 0x494   : > { %854 = vmatpush3.bf16.msra.mxu0 %v532_v1 }
 0x495   : > { %865 = vmatprep.subr.bf16.mxu0 %v921_v0 }
 0x4b2   : > { %v522_v31 = vpop.xlane.xlu1 %521 }
 0x4b3   : > { %909 = vrcp.f32 %v522_v31 }
 0x4b4   : > { %911 = vrcp.f32 %v643_v28 }
 0x4b6   : > { %v648_v32 = vpop.permute.xlu1 %647 }
 0x4b7   : > { %v653_v35 = vand.u32 %v648_v32, %v1006_v23 }
 0x4c0   : > { %v910_v33 = vpop.eup %909 }
 0x4c1   : > { %v524_v34 = vmul.f32 %v910_v33, %v906_v20  ;;  %v912_v37 = vpop.eup %911 }
 0x4c2   : > { %v645_v38 = vmul.f32 %v912_v37, %v904_v16 }
 0x4c3   : > { %v525_v36 = vpack.c.bf16 %v524_v34, %v524_v34 }
 0x4c4   : > { %v646_v39 = vpack.c.bf16 %v645_v38, %v645_v38 }
 0x4c5   : > { %856 = vmatmul.mubr.msk.bf16.vlgmr.msra.gmra.mxu0 %vm273_vm6, %v525_v36 }
 0x4c6   : > { %866 = vmatpush3.bf16.msra.mxu0 %v653_v35  ;;  %867 = vmatprep.mubr.msk.bf16.mxu0 %vm922_vm0, %v921_v0 }
 0x4cd   : > { %868 = vmatmul.mubr.msk.bf16.vlgmr.msra.gmra.mxu0 %vm273_vm6, %v646_v39 }
 0x550   : > { %v447_v40 = vpop.f32.mrf.mxu0 }
 0x551   : > { %v804_v41 = vpack.c.bf16 %v447_v40, %v447_v40 }
 0x552   : > { %v845_v42 = vpop.f32.mrf.mxu0 }
 0x553   : > { %457 = vrot.lane.b32.xlu1 %v804_v41, %s935_s13 }
 0x554   : > { %v450_v43 = vpop.f32.mrf.mxu0 }
 0x556   : > { %v846_v44 = vpop.f32.mrf.mxu0 }
 0x585   : > { %v568_v23 = vpop.f32.mrf.mxu0 }
 0x586   : > { %v805_v45 = vpack.c.bf16 %v568_v23, %v568_v23 }
 0x587   : > { %v857_v46 = vpop.f32.mrf.mxu0 }
 0x588   : > { %578 = vrot.lane.b32.xlu0 %v805_v45, %s936_s14 }
 0x589   : > { %v571_v47 = vpop.f32.mrf.mxu0 }
 0x58b   : > { %v858_v0 = vpop.f32.mrf.mxu0 }
 0x58d   : > { %v689_v48 = vpop.f32.mrf.mxu0 }
 0x58e   : > { %v806_v49 = vpack.c.bf16 %v689_v48, %v689_v48 }
 0x58f   : > { %v869_v50 = vpop.f32.mrf.mxu0 }
 0x590   : > { %699 = vrot.lane.b32.xlu1 %v806_v49, %s937_s15 }
 0x591   : > { %v692_v51 = vpop.f32.mrf.mxu0 }
 0x593   : > { %v870_v52 = vpop.f32.mrf.mxu0 }
 0x5c5   : > { %v458_v53 = vpop.permute.xlu1 %457 }
 0x5c6   : > { %461 = vst.msk [vmem:[%s1031_s8] sm:$0xf] %vm460_vm8, %v458_v53 }
 0x5fa   : > { %v579_v54 = vpop.permute.xlu0 %578 }
 0x5fb   : > { %582 = vst.msk [vmem:[%s1031_s8] sm:$0xf] %vm581_vm9, %v579_v54 }
 0x602   : > { %v700_v55 = vpop.permute.xlu1 %699 }
 0x603   : > { %703 = vst.msk [vmem:[%s1031_s8] sm:$0xf] %vm702_vm10, %v700_v55 }
 0x604 PF: > { %s13_s12 = sadd.s32 1, %s919_s12  }
 0x605   : > { %p10_p4 = scmp.ge.s32.totalorder %s13_s12, 4  }
 0x607   :  { %12 = sbr.rel (!%p10_p4) target bundleno = 1 (0x1), region = 68 }

// kernel: residual_attention_block.7
= control target key start
LH: loop header
LB: loop body
LE: loop exit
PB: predicated region body
PF: predicated region fallthrough
CT: control target
= control target key end

     0   :  { %v459_v0 = vmov 0.0   ;;  %vm460_vm0 = vmmov 0   ;;  %vm66_vm1 = vcmask 261120   ;;  %s615_s2 = inlined_call_operand.vmem [shape: bf16[32,32], index: 2, kind: input, shape index: {}]   ;;  %s616_s0 = inlined_call_operand.vmem [shape: bf16[16,32], index: 0, kind: input, shape index: {}]   ;;  %s617_s3 = inlined_call_operand.vmem [shape: f32[1,32], index: 3, kind: input, shape index: {}]   ;;  %s618_s1 = inlined_call_operand.vmem [shape: f32[16,32], index: 1, kind: input, shape index: {}, may-alias: {1,10}]   ;;  %s619_s6 = inlined_call_operand.vmem [shape: bf16[32,128], index: 6, kind: input, shape index: {}]   ;;  %s620_s4 = inlined_call_operand.vmem [shape: f32[1,32], index: 4, kind: input, shape index: {}]   ;;  %s621_s5 = inlined_call_operand.vmem [shape: f32[1,32], index: 5, kind: input, shape index: {}]   ;;  %s622_s8 = inlined_call_operand.vmem [shape: bf16[128,32], index: 8, kind: input, shape index: {}]   ;;  %s623_s7 = inlined_call_operand.vmem [shape: f32[1,128], index: 7, kind: input, shape index: {}]   ;;  %s624_s9 = inlined_call_operand.vmem [shape: f32[1,32], index: 9, kind: input, shape index: {}]   ;;  %s625_s10 = inlined_call_operand.vmem [shape: f32[16,32], index: 10, kind: output, shape index: {}, may-alias: {1,10}]  }
   0x1   :  { %396 = vmatprep.subr.bf16.mxu1 %v459_v0  ;;  %v434_v1 = vld [vmem:[%s615_s2 + $0x8] sm:$0xff]   ;;  %400 = vmatprep.mubr.msk.bf16.mxu1 %vm460_vm0, %v459_v0  ;;  %v435_v2 = vld [vmem:[%s615_s2] sm:$0xff]   ;;  %v439_v46 = vld [vmem:[%s622_s8 + $0x38] sm:$0xff]  }
   0x2   :  { %412 = vmatprep.subr.bf16.mxu0 %v459_v0  ;;  %428 = vmatprep.mubr.msk.bf16.mxu0 %vm460_vm0, %v459_v0  ;;  %v436_v3 = vld [vmem:[%s616_s0] sm:$0xff]   ;;  %v112_v11 = vld [vmem:[%s618_s1 + $0x8] sm:$0xff]  ;;  %v440_v47 = vld [vmem:[%s622_s8 + $0x30] sm:$0xff]  }
   0x3   :  { %397 = vmatpush3.bf16.msra.mxu1 %v434_v1  ;;  %v361_v4 = vld [vmem:[%s617_s3] ss:$0 sm:$0xff]  ;;  %v437_v27 = vld [vmem:[%s619_s6 + $0x8] sm:$0xff]   ;;  %413 = vmatpush3.bf16.msra.mxu0 %v439_v46  ;;  %v443_v50 = vld [vmem:[%s622_s8 + $0x18] sm:$0xff]  }
   0x4   :  { %398 = vmatprep.subr.bf16.mxu1 %v459_v0  ;;  %v111_v6 = vld [vmem:[%s618_s1] sm:$0xff]  ;;  %414 = vmatprep.subr.bf16.mxu0 %v459_v0  ;;  %v441_v48 = vld [vmem:[%s622_s8 + $0x28] sm:$0xff]   ;;  %v444_v51 = vld [vmem:[%s622_s8 + $0x10] sm:$0xff]  }
   0x5   :  { %v438_v28 = vld [vmem:[%s619_s6] sm:$0xff]   ;;  %v445_v52 = vld [vmem:[%s622_s8 + $0x8] sm:$0xff]  }
   0x6   :  { %v366_v37 = vld [vmem:[%s620_s4] ss:$0 sm:$0xff] }
   0x7   :  { %399 = vmatpush3.bf16.msra.mxu1 %v435_v2  ;;  %v367_v41 = vld [vmem:[%s621_s5] ss:$0 sm:$0xff]  ;;  %415 = vmatpush3.bf16.msra.mxu0 %v440_v47 }
   0x8   :  { %404 = vmatprep.subr.bf16.mxu1 %v459_v0  ;;  %416 = vmatprep.subr.bf16.mxu0 %v459_v0  ;;  %v442_v49 = vld [vmem:[%s622_s8 + $0x20] sm:$0xff]  }
   0x9   :  { %v446_v53 = vld [vmem:[%s622_s8] sm:$0xff]  }
   0xa   :  { %401 = vmatmul.mubr.msk.bf16.vlgmr.msra.gmra.mxu1 %vm66_vm1, %v436_v3  ;;  %v368_v54 = vld [vmem:[%s623_s7] ss:$0 sm:$0xff] }
   0xb   :  { %408 = vmatprep.mubr.msk.bf16.mxu1 %vm460_vm0, %v459_v0  ;;  %405 = vmatpush3.bf16.msra.mxu1 %v437_v27 }
   0xc   :  { %406 = vmatprep.subr.bf16.mxu1 %v459_v0  ;;  %417 = vmatpush3.bf16.msra.mxu0 %v441_v48 }
   0xd   :  { %418 = vmatprep.subr.bf16.mxu0 %v459_v0 }
   0xf   :  { %407 = vmatpush3.bf16.msra.mxu1 %v438_v28 }
  0x10   :  { %419 = vmatpush3.bf16.msra.mxu0 %v442_v49 }
  0x11   :  { %420 = vmatprep.subr.bf16.mxu0 %v459_v0 }
  0x14   :  { %421 = vmatpush3.bf16.msra.mxu0 %v443_v50 }
  0x15   :  { %422 = vmatprep.subr.bf16.mxu0 %v459_v0 }
  0x18   :  { %423 = vmatpush3.bf16.msra.mxu0 %v444_v51 }
  0x19   :  { %424 = vmatprep.subr.bf16.mxu0 %v459_v0 }
  0x1c   :  { %425 = vmatpush3.bf16.msra.mxu0 %v445_v52 }
  0x1d   :  { %426 = vmatprep.subr.bf16.mxu0 %v459_v0 }
  0x20   :  { %427 = vmatpush3.bf16.msra.mxu0 %v446_v53 }
  0xca   :  { %v104_v5 = vpop.f32.mrf.mxu1 }
  0xcb   :  { %v105_v7 = vadd.f32 %v361_v4, %v104_v5 }
  0xcc   :  { %v402_v8 = vpop.f32.mrf.mxu1 }
  0xcd   :  { %v539_v9 = vadd.f32 %v111_v6, %v105_v7 }
  0xce   :  { %v107_v10 = vpop.f32.mrf.mxu1 }
  0xcf   :  { %v108_v12 = vadd.f32 %v361_v4, %v107_v10  ;;  %v117_v13 = vsel %vm66_vm1, %v539_v9, 0.0 }
  0xd0   :  { %118 = vadd.xlane.f32.xlu0 %v117_v13  ;;  %v403_v14 = vpop.f32.mrf.mxu1 }
  0xd1   :  { %v546_v15 = vadd.f32 %v112_v11, %v108_v12  ;;  %v372_v11 = vld [vmem:[%s624_s9] ss:$0 sm:$0xff] }
  0xd3   :  { %v120_v16 = vsel %vm66_vm1, %v546_v15, 0.0 }
  0xd4   :  { %121 = vadd.xlane.f32.xlu0 %v120_v16 }
 0x159   :  { %v119_v17 = vpop.xlane.xlu0 %118 }
 0x15a   :  { %v124_v18 = vmul.f32 0.03125, %v119_v17 }
 0x15c   :  { %v126_v19 = vsub.f32 %v539_v9, %v124_v18 }
 0x15d   :  { %v122_v20 = vpop.xlane.xlu0 %121 }
 0x15e   :  { %v125_v21 = vmul.f32 0.03125, %v122_v20  ;;  %v128_v22 = vmul.f32 %v126_v19, %v126_v19 }
 0x160   :  { %v127_v23 = vsub.f32 %v546_v15, %v125_v21  ;;  %v130_v24 = vsel %vm66_vm1, %v128_v22, 0.0 }
 0x161   :  { %131 = vadd.xlane.f32.xlu1 %v130_v24 }
 0x162   :  { %v129_v25 = vmul.f32 %v127_v23, %v127_v23 }
 0x164   :  { %v133_v26 = vsel %vm66_vm1, %v129_v25, 0.0 }
 0x165   :  { %134 = vadd.xlane.f32.xlu1 %v133_v26 }
 0x1ea   :  { %v132_v29 = vpop.xlane.xlu1 %131 }
 0x1eb   :  { %v136_v30 = vmul.f32 0.03125, %v132_v29 }
 0x1ed   :  { %v138_v31 = vadd.f32 1e-05, %v136_v30 }
 0x1ee   :  { %v135_v32 = vpop.xlane.xlu1 %134 }
 0x1ef   :  { %447 = vrsqrt.f32 %v138_v31  ;;  %v137_v33 = vmul.f32 0.03125, %v135_v32 }
 0x1f1   :  { %v139_v34 = vadd.f32 1e-05, %v137_v33 }
 0x1f3   :  { %449 = vrsqrt.f32 %v139_v34 }
 0x1fc   :  { %v448_v35 = vpop.eup %447 }
 0x1fd   :  { %v142_v36 = vmul.f32 %v448_v35, %v126_v19 }
 0x1ff   :  { %v150_v40 = vmul.f32 %v366_v37, %v142_v36 }
 0x200   :  { %v450_v38 = vpop.eup %449 }
 0x201   :  { %v143_v39 = vmul.f32 %v450_v38, %v127_v23  ;;  %v158_v43 = vadd.f32 %v367_v41, %v150_v40 }
 0x203   :  { %v151_v42 = vmul.f32 %v366_v37, %v143_v39 }
 0x205   :  { %v159_v44 = vadd.f32 %v367_v41, %v151_v42 }
 0x207   :  { %v160_v45 = vpack.c.bf16 %v159_v44, %v158_v43 }
 0x209   :  { %409 = vmatmul.mubr.msk.bf16.vlgmr.msra.gmra.mxu1 %vm66_vm1, %v160_v45 }
 0x2c9   :  { %v221_v55 = vpop.f32.mrf.mxu1 }
 0x2ca   :  { %v222_v56 = vadd.f32 %v368_v54, %v221_v55 }
 0x2cb   :  { %v410_v57 = vpop.f32.mrf.mxu1 }
 0x2cc   :  { %v228_v58 = vmul.f32 -1.702, %v222_v56 }
 0x2cd   :  { %v224_v59 = vpop.f32.mrf.mxu1 }
 0x2ce   :  { %v230_v60 = vmul.f32 1.442695, %v228_v58  ;;  %v225_v61 = vadd.f32 %v368_v54, %v224_v59 }
 0x2cf   :  { %v411_v62 = vpop.f32.mrf.mxu1 }
 0x2d0   :  { %451 = vpow2.f32 %v230_v60  ;;  %v229_v63 = vmul.f32 -1.702, %v225_v61 }
 0x2d2   :  { %v232_v0 = vmul.f32 1.442695, %v229_v63 }
 0x2d4   :  { %453 = vpow2.f32 %v232_v0 }
 0x2dd   :  { %v452_v1 = vpop.eup %451 }
 0x2de   :  { %v234_v2 = vadd.f32 1.0, %v452_v1 }
 0x2e0   :  { %455 = vrcp.f32 %v234_v2 }
 0x2e1   :  { %v454_v3 = vpop.eup %453 }
 0x2e2   :  { %v235_v4 = vadd.f32 1.0, %v454_v3 }
 0x2e4   :  { %457 = vrcp.f32 %v235_v4 }
 0x2ed   :  { %v456_v5 = vpop.eup %455 }
 0x2ee   :  { %v238_v7 = vmul.f32 %v456_v5, %v222_v56 }
 0x2f1   :  { %v458_v6 = vpop.eup %457 }
 0x2f2   :  { %v239_v8 = vmul.f32 %v458_v6, %v225_v61 }
 0x2f4   :  { %v240_v10 = vpack.c.bf16 %v239_v8, %v238_v7 }
 0x2f6   :  { %429 = vmatmul.mubr.bf16.vlgmr.msra.gmra.mxu0 %v240_v10 }
 0x3b6   :  { %v346_v12 = vpop.f32.mrf.mxu0 }
 0x3b7   :  { %v347_v13 = vadd.f32 %v372_v11, %v346_v12 }
 0x3b8   :  { %v430_v14 = vpop.f32.mrf.mxu0 }
 0x3b9   :  { %v353_v16 = vadd.f32 %v347_v13, %v539_v9 }
 0x3ba   :  { %v349_v17 = vpop.f32.mrf.mxu0 }
 0x3bb   :  { %355 = vst.msk [vmem:[%s625_s10] sm:$0xff] %vm66_vm1, %v353_v16  ;;  %v350_v18 = vadd.f32 %v372_v11, %v349_v17 }
 0x3bc   :  { %v431_v19 = vpop.f32.mrf.mxu0 }
 0x3bd   :  { %v354_v20 = vadd.f32 %v350_v18, %v546_v15 }
 0x3bf   :  { %356 = vst.msk [vmem:[%s625_s10 + $0x8] sm:$0xff] %vm66_vm1, %v354_v20 }

</bundles_post_ra>
